<compile_context>
chip_gen: v5e
topology: v5e:2x2
jax: 0.10.0
libtpu: 0.0.40
codegen_flags: <defaults>
</compile_context>

<pallas_src>
import functools

import jax
import jax.numpy as jnp
from jax.experimental import pallas as pl
from jax.experimental.pallas import tpu as pltpu

LANE = 128
EPS = 1e-5


def _round_up(x, m):
    return (x + m - 1) // m * m


# ---------------------------------------------------------------------------
# InstanceNorm epilogue helper (f32, in-register, per-channel over axis 0).
# For ConvTranspose the matmul emits `phases` groups of `cout` columns (the
# stride^2 sub-pixel phases); the stats are shared across groups so the result
# equals InstanceNorm over the fully-upsampled image.
# ---------------------------------------------------------------------------
def _instance_norm_cols(y, phases, cout, eps):
    if phases == 1:
        mean = jnp.mean(y, axis=0, keepdims=True)
        var = jnp.mean(jnp.square(y - mean), axis=0, keepdims=True)
        return (y - mean) * jax.lax.rsqrt(var + eps)
    gm = jnp.mean(y, axis=0, keepdims=True)                              # (1, P*C)
    mean_c = sum(gm[:, p * cout:(p + 1) * cout] for p in range(phases)) / phases
    mean_full = jnp.concatenate([mean_c] * phases, axis=1)               # (1, P*C)
    d = y - mean_full
    gv = jnp.mean(jnp.square(d), axis=0, keepdims=True)                  # (1, P*C)
    var_c = sum(gv[:, p * cout:(p + 1) * cout] for p in range(phases)) / phases
    inv_full = jnp.concatenate([jax.lax.rsqrt(var_c + eps)] * phases, axis=1)
    return d * inv_full


# ---------------------------------------------------------------------------
# Fused conv kernels: one whole image per program, K in a single step.
#   a_ref : (M, Kp)    bf16 im2col patches, Kp pre-padded to a multiple of 128
#   b_ref : (Kp, Nc)   bf16 weights, Nc = cout (or phases*cout for ConvTranspose)
#   bias  : (1, Nc)    f32
# ---------------------------------------------------------------------------
def _conv_kernel(a_ref, b_ref, bias_ref, o_ref, *, epilogue, phases, cout, eps):
    y = jnp.dot(a_ref[...], b_ref[...],
                preferred_element_type=jnp.float32) + bias_ref[...]
    if epilogue == "tanh":
        y = jnp.tanh(y)
    elif epilogue in ("in_relu", "in"):
        y = _instance_norm_cols(y, phases, cout, eps)
        if epilogue == "in_relu":
            y = jnp.maximum(y, 0.0)
    o_ref[...] = y.astype(o_ref.dtype)


def _conv_res_kernel(a_ref, b_ref, bias_ref, r_ref, o_ref, *, cout, eps):
    y = jnp.dot(a_ref[...], b_ref[...],
                preferred_element_type=jnp.float32) + bias_ref[...]
    y = _instance_norm_cols(y, 1, cout, eps) + r_ref[...].astype(jnp.float32)
    o_ref[...] = y.astype(o_ref.dtype)


def fused_conv(patches, w, bias, *, epilogue, phases, cout, residual=None,
               out_dtype=jnp.bfloat16):
    N, M, Kp = patches.shape
    Kb, Ncols = w.shape
    assert Kb == Kp and Kp % LANE == 0

    in_specs = [pl.BlockSpec((None, M, Kp), lambda i: (i, 0, 0)),
                pl.BlockSpec((Kp, Ncols), lambda i: (0, 0)),
                pl.BlockSpec((1, Ncols), lambda i: (0, 0))]
    args = [patches, w, bias]
    if residual is None:
        kernel = functools.partial(_conv_kernel, epilogue=epilogue,
                                   phases=phases, cout=cout, eps=EPS)
    else:
        kernel = functools.partial(_conv_res_kernel, cout=cout, eps=EPS)
        in_specs.append(pl.BlockSpec((None, M, cout), lambda i: (i, 0, 0)))
        args.append(residual)

    return pl.pallas_call(
        kernel,
        out_shape=jax.ShapeDtypeStruct((N, M, Ncols), out_dtype),
        grid=(N,),
        in_specs=in_specs,
        out_specs=pl.BlockSpec((None, M, Ncols), lambda i: (i, 0, 0)),
        compiler_params=pltpu.CompilerParams(
            dimension_semantics=("parallel",)),
    )(*args)


# ---------------------------------------------------------------------------
# Squeeze-Excitation: pool -> FC1 -> ReLU -> FC2 -> sigmoid -> scale, one
# kernel per image (grid over batch so v7x's 2nd TensorCore is used).
# ---------------------------------------------------------------------------
def _se_kernel(x_ref, w1_ref, b1_ref, w2t_ref, b2_ref, o_ref):
    x = x_ref[...].astype(jnp.float32)                          # (HW, C)
    pool = jnp.mean(x, axis=0, keepdims=True)                   # (1, C)  avg pool
    h = jnp.sum(pool * w1_ref[...], axis=1, keepdims=True)      # (mid, 1) FC1
    h = jnp.maximum(h + b1_ref[...], 0.0)                       # ReLU
    s = jnp.sum(h * w2t_ref[...], axis=0, keepdims=True)        # (1, C)  FC2
    s = jax.nn.sigmoid(s + b2_ref[...])
    o_ref[...] = (x * s).astype(o_ref.dtype)


def se_block(x, se):
    N, H, W, C = x.shape
    hw = H * W
    mid = se["w1"].shape[0]
    xr = x.reshape(N, hw, C)
    out = pl.pallas_call(
        _se_kernel,
        out_shape=jax.ShapeDtypeStruct((N, hw, C), x.dtype),
        grid=(N,),
        in_specs=[pl.BlockSpec((None, hw, C), lambda i: (i, 0, 0)),
                  pl.BlockSpec((mid, C), lambda i: (0, 0)),
                  pl.BlockSpec((mid, 1), lambda i: (0, 0)),
                  pl.BlockSpec((mid, C), lambda i: (0, 0)),
                  pl.BlockSpec((1, C), lambda i: (0, 0))],
        out_specs=pl.BlockSpec((None, hw, C), lambda i: (i, 0, 0)),
        compiler_params=pltpu.CompilerParams(
            dimension_semantics=("parallel",)),
    )(xr, se["w1"], se["b1"], se["w2t"], se["b2"])
    return out.reshape(N, H, W, C)


# ---------------------------------------------------------------------------
# im2col patch builders (NHWC, bf16, K padded to 128 inside the concat).
# ---------------------------------------------------------------------------
def _im2col(x, kh, kw, stride, padding, kp):
    N, H, W, Cin = x.shape
    xb = x.astype(jnp.bfloat16)
    if padding > 0:
        xb = jnp.pad(xb, ((0, 0), (padding, padding), (padding, padding), (0, 0)),
                     mode="reflect")
    Hp, Wp = xb.shape[1], xb.shape[2]
    OH = (Hp - kh) // stride + 1
    OW = (Wp - kw) // stride + 1
    cols = []
    for i in range(kh):
        for j in range(kw):
            cols.append(xb[:, i:i + stride * (OH - 1) + 1:stride,
                           j:j + stride * (OW - 1) + 1:stride, :])
    k = kh * kw * Cin
    if kp > k:
        cols.append(jnp.zeros((N, OH, OW, kp - k), jnp.bfloat16))
    patches = jnp.concatenate(cols, axis=-1).reshape(N, OH * OW, kp)
    return patches, OH, OW


def _im2col_phases(x, kp):
    """2x2-tap patches for the sub-pixel ConvTranspose2d decomposition."""
    N, H, W, Cin = x.shape
    xb = x.astype(jnp.bfloat16)
    xp = jnp.pad(xb, ((0, 0), (0, 1), (0, 1), (0, 0)))          # zero bottom/right
    cols = [xp[:, a:a + H, c:c + W, :] for a in (0, 1) for c in (0, 1)]
    k = 4 * Cin
    if kp > k:
        cols.append(jnp.zeros((N, H, W, kp - k), jnp.bfloat16))
    return jnp.concatenate(cols, axis=-1).reshape(N, H * W, kp)


# ---------------------------------------------------------------------------
# Layer wrappers (NHWC activations, kernel-ready weights).
# ---------------------------------------------------------------------------
def conv2d_in(x, layer, *, kh, kw, stride, padding, epilogue,
              residual=None, out_dtype=jnp.bfloat16):
    N = x.shape[0]
    kp = layer["w"].shape[0]
    cout = layer["w"].shape[1]
    patches, OH, OW = _im2col(x, kh, kw, stride, padding, kp)
    res_r = None if residual is None else residual.reshape(N, OH * OW, cout)
    out = fused_conv(patches, layer["w"], layer["b"], epilogue=epilogue,
                     phases=1, cout=cout, residual=res_r, out_dtype=out_dtype)
    return out.reshape(N, OH, OW, cout)


def conv_transpose2d_in(x, layer):
    """ConvTranspose2d(k=3, s=2, p=1, op=1) + InstanceNorm + ReLU, via the
    sub-pixel phase decomposition with IN fused into the matmul epilogue."""
    N, H, W, _ = x.shape
    kp = layer["w"].shape[0]
    cout = layer["w"].shape[1] // 4
    patches = _im2col_phases(x, kp)
    out = fused_conv(patches, layer["w"], layer["b"], epilogue="in_relu",
                     phases=4, cout=cout, out_dtype=jnp.bfloat16)
    out = out.reshape(N, H, W, 2, 2, cout)
    out = jnp.transpose(out, (0, 1, 3, 2, 4, 5)).reshape(N, 2 * H, 2 * W, cout)
    return out


# ---------------------------------------------------------------------------
# Parameters: raw (PyTorch layout) init + one-time formatting outside jit.
# ---------------------------------------------------------------------------
def init_params(key, img_channels=3, num_features=8, num_residuals=2, reduction=16):
    keys = iter(jax.random.split(key, 64))

    def w(shape):
        return jax.random.normal(next(keys), shape, jnp.float32) * 0.05

    F = num_features
    mid = max(1, (4 * F) // reduction)
    return dict(
        init_w=w((F, img_channels, 7, 7)), init_b=w((F,)),
        d1_w=w((2 * F, F, 3, 3)), d1_b=w((2 * F,)),
        d2_w=w((4 * F, 2 * F, 3, 3)), d2_b=w((4 * F,)),
        res=[dict(w1=w((4 * F, 4 * F, 3, 3)), b1=w((4 * F,)),
                  w2=w((4 * F, 4 * F, 3, 3)), b2=w((4 * F,)))
             for _ in range(num_residuals)],
        se=dict(w1=w((mid, 4 * F)), b1=w((mid,)),
                w2=w((4 * F, mid)), b2=w((4 * F,))),
        u1_w=w((4 * F, 2 * F, 3, 3)), u1_b=w((2 * F,)),
        u2_w=w((2 * F, F, 3, 3)), u2_b=w((F,)),
        last_w=w((img_channels, F, 7, 7)), last_b=w((img_channels,)),
    )


def format_params(raw):
    """One-time weight formatting (transpose/pad/cast/phase assembly), hoisted
    out of the jitted forward.  Resulting pytree contains only arrays."""

    def conv_layer(w, b):
        cout, cin, kh, kw = w.shape
        k = kh * kw * cin
        kp = _round_up(k, LANE)
        wm = jnp.transpose(w, (2, 3, 1, 0)).reshape(k, cout)          # (K, Cout)
        wm = jnp.pad(wm, ((0, kp - k), (0, 0))).astype(jnp.bfloat16)
        return dict(w=wm, b=b.reshape(1, cout).astype(jnp.float32))

    def convt_layer(w, b):
        cin, cout, kh, kw = w.shape
        assert kh == 3 and kw == 3
        k = 4 * cin
        kp = _round_up(k, LANE)
        zero = jnp.zeros((cin, cout), w.dtype)

        def tap(phase, a):
            # output row 2m (phase 0) uses kernel row 1 with input row m;
            # output row 2m+1 (phase 1) uses kernel row 2 (row m) and 0 (row m+1).
            if phase == 0:
                return 1 if a == 0 else None
            return 2 if a == 0 else 0

        mats = []
        for ph in (0, 1):
            for pw in (0, 1):
                blocks = []
                for a in (0, 1):
                    for c in (0, 1):
                        ki, kj = tap(ph, a), tap(pw, c)
                        blocks.append(zero if (ki is None or kj is None)
                                      else w[:, :, ki, kj])
                mats.append(jnp.concatenate(blocks, axis=0))          # (4*Cin, Cout)
        w_all = jnp.concatenate(mats, axis=1)                         # (4*Cin, 4*Cout)
        w_all = jnp.pad(w_all, ((0, kp - k), (0, 0))).astype(jnp.bfloat16)
        b_all = jnp.tile(b, 4).reshape(1, 4 * cout).astype(jnp.float32)
        return dict(w=w_all, b=b_all)

    return dict(
        init=conv_layer(raw["init_w"], raw["init_b"]),
        d1=conv_layer(raw["d1_w"], raw["d1_b"]),
        d2=conv_layer(raw["d2_w"], raw["d2_b"]),
        res=[dict(c1=conv_layer(r["w1"], r["b1"]),
                  c2=conv_layer(r["w2"], r["b2"])) for r in raw["res"]],
        se=dict(w1=raw["se"]["w1"].astype(jnp.float32),
                b1=raw["se"]["b1"].reshape(-1, 1).astype(jnp.float32),
                w2t=jnp.transpose(raw["se"]["w2"]).astype(jnp.float32),
                b2=raw["se"]["b2"].reshape(1, -1).astype(jnp.float32)),
        u1=convt_layer(raw["u1_w"], raw["u1_b"]),
        u2=convt_layer(raw["u2_w"], raw["u2_b"]),
        last=conv_layer(raw["last_w"], raw["last_b"]),
    )


# ---------------------------------------------------------------------------
# Generator forward pass (NHWC end-to-end, one transpose in / one out).
# ---------------------------------------------------------------------------
def generator_forward(x_nchw, p):
    x = jnp.transpose(x_nchw, (0, 2, 3, 1))
    # initial: 7x7 reflect conv + IN + ReLU (fused)
    y = conv2d_in(x, p["init"], kh=7, kw=7, stride=1, padding=3,
                  epilogue="in_relu")
    # down blocks: reflect-padded stride-2 conv + IN + ReLU (fused)
    y = conv2d_in(y, p["d1"], kh=3, kw=3, stride=2, padding=1,
                  epilogue="in_relu")
    y = conv2d_in(y, p["d2"], kh=3, kw=3, stride=2, padding=1,
                  epilogue="in_relu")
    # residual blocks: conv+IN+ReLU, then conv+IN+residual (both fused)
    for rb in p["res"]:
        h = conv2d_in(y, rb["c1"], kh=3, kw=3, stride=1, padding=1,
                      epilogue="in_relu")
        y = conv2d_in(h, rb["c2"], kh=3, kw=3, stride=1, padding=1,
                      epilogue="in", residual=y)
    # squeeze-excitation (single fused per-image kernel)
    y = se_block(y, p["se"])
    # up blocks: ConvTranspose2d + IN + ReLU (phase decomposition, fused IN)
    y = conv_transpose2d_in(y, p["u1"])
    y = conv_transpose2d_in(y, p["u2"])
    # last: 7x7 reflect conv with tanh fused into the epilogue
    y = conv2d_in(y, p["last"], kh=7, kw=7, stride=1, padding=3,
                  epilogue="tanh", out_dtype=jnp.float32)
    return jnp.transpose(y, (0, 3, 1, 2))


if __name__ == "__main__":
    key = jax.random.PRNGKey(0)
    pkey, xkey = jax.random.split(key)
    # Small config consistent with the module: img_channels=3, num_features=8,
    # num_residuals=2, input (2, 3, 16, 16).
    raw = init_params(pkey, img_channels=3, num_features=8, num_residuals=2)
    params = format_params(raw)
    x = jax.random.normal(xkey, (2, 3, 16, 16), jnp.float32)

    fwd = jax.jit(generator_forward)
    y = fwd(x, params)
    jax.block_until_ready(y)

    assert y.shape == (2, 3, 16, 16), y.shape
    assert bool(jnp.all(jnp.isfinite(y)))
    assert bool(jnp.all(jnp.abs(y) <= 1.0))  # tanh range
    print("KERNEL_OK")
</pallas_src>

<mosaic_0001>
module attributes {stable_mosaic.version = 11 : i64} {
  func.func @_conv_kernel(%arg0: i32, %arg1: memref<1x256x256xbf16, #tpu.memory_space<vmem>>, %arg2: memref<256x8xbf16, #tpu.memory_space<vmem>>, %arg3: memref<1x8xf32, #tpu.memory_space<vmem>>, %arg4: memref<1x256x8xbf16, #tpu.memory_space<vmem>>) attributes {dimension_semantics = [#tpu.dimension_semantics<parallel>], iteration_bounds = array<i64: 2>, scalar_prefetch = 0 : i64, scratch_operands = 0 : i64, tpu.core_type = #tpu.core_type<tc>, window_params = [{transform_indices = @transform_0, window_bounds = array<i64: 1, 256, 256>}, {pipeline_mode = #tpu.pipeline_mode<synchronous>, transform_indices = @transform_1, window_bounds = array<i64: 256, 8>}, {pipeline_mode = #tpu.pipeline_mode<synchronous>, transform_indices = @transform_2, window_bounds = array<i64: 1, 8>}, {transform_indices = @transform_3, window_bounds = array<i64: 1, 256, 8>}]} {
    %c0 = arith.constant 0 : index
    %c0_0 = arith.constant 0 : index
    %c0_1 = arith.constant 0 : index
    %0 = vector.load %arg1[%c0, %c0_0, %c0_1] : memref<1x256x256xbf16, #tpu.memory_space<vmem>>, vector<1x256x256xbf16>
    %1 = vector.shape_cast %0 : vector<1x256x256xbf16> to vector<256x256xbf16>
    %c0_2 = arith.constant 0 : index
    %c0_3 = arith.constant 0 : index
    %2 = vector.load %arg2[%c0_2, %c0_3] : memref<256x8xbf16, #tpu.memory_space<vmem>>, vector<256x8xbf16>
    %cst = arith.constant dense<0.000000e+00> : vector<256x8xf32>
    %3 = tpu.matmul %1, %2, %cst {dimension_numbers = #tpu.dot_dimension_numbers<[1], [0], [0], [1], [0, 0, 1, 1], [], []>} : vector<256x256xbf16>, vector<256x8xbf16>, vector<256x8xf32> -> vector<256x8xf32>
    %c0_4 = arith.constant 0 : index
    %c0_5 = arith.constant 0 : index
    %4 = vector.load %arg3[%c0_4, %c0_5] : memref<1x8xf32, #tpu.memory_space<vmem>>, vector<1x8xf32>
    %5 = vector.broadcast %4 : vector<1x8xf32> to vector<256x8xf32>
    %6 = arith.addf %3, %5 : vector<256x8xf32>
    %cst_6 = arith.constant dense<0.000000e+00> : vector<8xf32>
    %7 = vector.multi_reduction <add>, %6, %cst_6 [0] : vector<256x8xf32> to vector<8xf32>
    %8 = vector.shape_cast %7 : vector<8xf32> to vector<1x8xf32>
    %cst_7 = arith.constant 2.560000e+02 : f32
    %9 = vector.broadcast %cst_7 : f32 to vector<1x8xf32>
    %10 = arith.divf %8, %9 : vector<1x8xf32>
    %11 = vector.broadcast %10 : vector<1x8xf32> to vector<256x8xf32>
    %12 = arith.subf %6, %11 : vector<256x8xf32>
    %13 = arith.mulf %12, %12 : vector<256x8xf32>
    %cst_8 = arith.constant dense<0.000000e+00> : vector<8xf32>
    %14 = vector.multi_reduction <add>, %13, %cst_8 [0] : vector<256x8xf32> to vector<8xf32>
    %15 = vector.shape_cast %14 : vector<8xf32> to vector<1x8xf32>
    %cst_9 = arith.constant 2.560000e+02 : f32
    %16 = vector.broadcast %cst_9 : f32 to vector<1x8xf32>
    %17 = arith.divf %15, %16 : vector<1x8xf32>
    %18 = vector.broadcast %10 : vector<1x8xf32> to vector<256x8xf32>
    %19 = arith.subf %6, %18 : vector<256x8xf32>
    %cst_10 = arith.constant 9.99999974E-6 : f32
    %20 = vector.broadcast %cst_10 : f32 to vector<1x8xf32>
    %21 = arith.addf %17, %20 : vector<1x8xf32>
    %22 = math.rsqrt %21 : vector<1x8xf32>
    %23 = vector.broadcast %22 : vector<1x8xf32> to vector<256x8xf32>
    %24 = arith.mulf %19, %23 : vector<256x8xf32>
    %cst_11 = arith.constant 0.000000e+00 : f32
    %25 = vector.broadcast %cst_11 : f32 to vector<256x8xf32>
    %26 = arith.maximumf %24, %25 : vector<256x8xf32>
    %27 = arith.truncf %26 : vector<256x8xf32> to vector<256x8xbf16>
    %c0_12 = arith.constant 0 : index
    %c0_13 = arith.constant 0 : index
    %c0_14 = arith.constant 0 : index
    %28 = vector.load %arg4[%c0_12, %c0_13, %c0_14] : memref<1x256x8xbf16, #tpu.memory_space<vmem>>, vector<1x256x8xbf16>
    %29 = vector.shape_cast %28 : vector<1x256x8xbf16> to vector<256x8xbf16>
    %30 = vector.shape_cast %27 : vector<256x8xbf16> to vector<1x256x8xbf16>
    tpu.vector_store %arg4[%c0_12, %c0_13, %c0_14], %30 {strides = array<i32>} : memref<1x256x8xbf16, #tpu.memory_space<vmem>>, vector<1x256x8xbf16>,
    return
  }
  func.func @transform_0(%arg0: i32) -> (i32, i32, i32) {
    %c0_i32 = arith.constant 0 : i32
    %c0_i32_0 = arith.constant 0 : i32
    %c0_i32_1 = arith.constant 0 : i32
    return %arg0, %c0_i32, %c0_i32_0 : i32, i32, i32
  }
  func.func @transform_1(%arg0: i32) -> (i32, i32) {
    %c0_i32 = arith.constant 0 : i32
    %c0_i32_0 = arith.constant 0 : i32
    %c0_i32_1 = arith.constant 0 : i32
    return %c0_i32, %c0_i32_0 : i32, i32
  }
  func.func @transform_2(%arg0: i32) -> (i32, i32) {
    %c0_i32 = arith.constant 0 : i32
    %c0_i32_0 = arith.constant 0 : i32
    %c0_i32_1 = arith.constant 0 : i32
    return %c0_i32, %c0_i32_0 : i32, i32
  }
  func.func @transform_3(%arg0: i32) -> (i32, i32, i32) {
    %c0_i32 = arith.constant 0 : i32
    %c0_i32_0 = arith.constant 0 : i32
    %c0_i32_1 = arith.constant 0 : i32
    return %arg0, %c0_i32, %c0_i32_0 : i32, i32, i32
  }
}

module attributes {stable_mosaic.version = 11 : i64} {
  func.func @_conv_kernel(%arg0: i32, %arg1: memref<1x64x128xbf16, #tpu.memory_space<vmem>>, %arg2: memref<128x16xbf16, #tpu.memory_space<vmem>>, %arg3: memref<1x16xf32, #tpu.memory_space<vmem>>, %arg4: memref<1x64x16xbf16, #tpu.memory_space<vmem>>) attributes {dimension_semantics = [#tpu.dimension_semantics<parallel>], iteration_bounds = array<i64: 2>, scalar_prefetch = 0 : i64, scratch_operands = 0 : i64, tpu.core_type = #tpu.core_type<tc>, window_params = [{transform_indices = @transform_0, window_bounds = array<i64: 1, 64, 128>}, {pipeline_mode = #tpu.pipeline_mode<synchronous>, transform_indices = @transform_1, window_bounds = array<i64: 128, 16>}, {pipeline_mode = #tpu.pipeline_mode<synchronous>, transform_indices = @transform_2, window_bounds = array<i64: 1, 16>}, {transform_indices = @transform_3, window_bounds = array<i64: 1, 64, 16>}]} {
    %c0 = arith.constant 0 : index
    %c0_0 = arith.constant 0 : index
    %c0_1 = arith.constant 0 : index
    %0 = vector.load %arg1[%c0, %c0_0, %c0_1] : memref<1x64x128xbf16, #tpu.memory_space<vmem>>, vector<1x64x128xbf16>
    %1 = vector.shape_cast %0 : vector<1x64x128xbf16> to vector<64x128xbf16>
    %c0_2 = arith.constant 0 : index
    %c0_3 = arith.constant 0 : index
    %2 = vector.load %arg2[%c0_2, %c0_3] : memref<128x16xbf16, #tpu.memory_space<vmem>>, vector<128x16xbf16>
    %cst = arith.constant dense<0.000000e+00> : vector<64x16xf32>
    %3 = tpu.matmul %1, %2, %cst {dimension_numbers = #tpu.dot_dimension_numbers<[1], [0], [0], [1], [0, 0, 1, 1], [], []>} : vector<64x128xbf16>, vector<128x16xbf16>, vector<64x16xf32> -> vector<64x16xf32>
    %c0_4 = arith.constant 0 : index
    %c0_5 = arith.constant 0 : index
    %4 = vector.load %arg3[%c0_4, %c0_5] : memref<1x16xf32, #tpu.memory_space<vmem>>, vector<1x16xf32>
    %5 = vector.broadcast %4 : vector<1x16xf32> to vector<64x16xf32>
    %6 = arith.addf %3, %5 : vector<64x16xf32>
    %cst_6 = arith.constant dense<0.000000e+00> : vector<16xf32>
    %7 = vector.multi_reduction <add>, %6, %cst_6 [0] : vector<64x16xf32> to vector<16xf32>
    %8 = vector.shape_cast %7 : vector<16xf32> to vector<1x16xf32>
    %cst_7 = arith.constant 6.400000e+01 : f32
    %9 = vector.broadcast %cst_7 : f32 to vector<1x16xf32>
    %10 = arith.divf %8, %9 : vector<1x16xf32>
    %11 = vector.broadcast %10 : vector<1x16xf32> to vector<64x16xf32>
    %12 = arith.subf %6, %11 : vector<64x16xf32>
    %13 = arith.mulf %12, %12 : vector<64x16xf32>
    %cst_8 = arith.constant dense<0.000000e+00> : vector<16xf32>
    %14 = vector.multi_reduction <add>, %13, %cst_8 [0] : vector<64x16xf32> to vector<16xf32>
    %15 = vector.shape_cast %14 : vector<16xf32> to vector<1x16xf32>
    %cst_9 = arith.constant 6.400000e+01 : f32
    %16 = vector.broadcast %cst_9 : f32 to vector<1x16xf32>
    %17 = arith.divf %15, %16 : vector<1x16xf32>
    %18 = vector.broadcast %10 : vector<1x16xf32> to vector<64x16xf32>
    %19 = arith.subf %6, %18 : vector<64x16xf32>
    %cst_10 = arith.constant 9.99999974E-6 : f32
    %20 = vector.broadcast %cst_10 : f32 to vector<1x16xf32>
    %21 = arith.addf %17, %20 : vector<1x16xf32>
    %22 = math.rsqrt %21 : vector<1x16xf32>
    %23 = vector.broadcast %22 : vector<1x16xf32> to vector<64x16xf32>
    %24 = arith.mulf %19, %23 : vector<64x16xf32>
    %cst_11 = arith.constant 0.000000e+00 : f32
    %25 = vector.broadcast %cst_11 : f32 to vector<64x16xf32>
    %26 = arith.maximumf %24, %25 : vector<64x16xf32>
    %27 = arith.truncf %26 : vector<64x16xf32> to vector<64x16xbf16>
    %c0_12 = arith.constant 0 : index
    %c0_13 = arith.constant 0 : index
    %c0_14 = arith.constant 0 : index
    %28 = vector.load %arg4[%c0_12, %c0_13, %c0_14] : memref<1x64x16xbf16, #tpu.memory_space<vmem>>, vector<1x64x16xbf16>
    %29 = vector.shape_cast %28 : vector<1x64x16xbf16> to vector<64x16xbf16>
    %30 = vector.shape_cast %27 : vector<64x16xbf16> to vector<1x64x16xbf16>
    tpu.vector_store %arg4[%c0_12, %c0_13, %c0_14], %30 {strides = array<i32>} : memref<1x64x16xbf16, #tpu.memory_space<vmem>>, vector<1x64x16xbf16>,
    return
  }
  func.func @transform_0(%arg0: i32) -> (i32, i32, i32) {
    %c0_i32 = arith.constant 0 : i32
    %c0_i32_0 = arith.constant 0 : i32
    %c0_i32_1 = arith.constant 0 : i32
    return %arg0, %c0_i32, %c0_i32_0 : i32, i32, i32
  }
  func.func @transform_1(%arg0: i32) -> (i32, i32) {
    %c0_i32 = arith.constant 0 : i32
    %c0_i32_0 = arith.constant 0 : i32
    %c0_i32_1 = arith.constant 0 : i32
    return %c0_i32, %c0_i32_0 : i32, i32
  }
  func.func @transform_2(%arg0: i32) -> (i32, i32) {
    %c0_i32 = arith.constant 0 : i32
    %c0_i32_0 = arith.constant 0 : i32
    %c0_i32_1 = arith.constant 0 : i32
    return %c0_i32, %c0_i32_0 : i32, i32
  }
  func.func @transform_3(%arg0: i32) -> (i32, i32, i32) {
    %c0_i32 = arith.constant 0 : i32
    %c0_i32_0 = arith.constant 0 : i32
    %c0_i32_1 = arith.constant 0 : i32
    return %arg0, %c0_i32, %c0_i32_0 : i32, i32, i32
  }
}

module attributes {stable_mosaic.version = 11 : i64} {
  func.func @_conv_kernel(%arg0: i32, %arg1: memref<1x16x256xbf16, #tpu.memory_space<vmem>>, %arg2: memref<256x32xbf16, #tpu.memory_space<vmem>>, %arg3: memref<1x32xf32, #tpu.memory_space<vmem>>, %arg4: memref<1x16x32xbf16, #tpu.memory_space<vmem>>) attributes {dimension_semantics = [#tpu.dimension_semantics<parallel>], iteration_bounds = array<i64: 2>, scalar_prefetch = 0 : i64, scratch_operands = 0 : i64, tpu.core_type = #tpu.core_type<tc>, window_params = [{transform_indices = @transform_0, window_bounds = array<i64: 1, 16, 256>}, {pipeline_mode = #tpu.pipeline_mode<synchronous>, transform_indices = @transform_1, window_bounds = array<i64: 256, 32>}, {pipeline_mode = #tpu.pipeline_mode<synchronous>, transform_indices = @transform_2, window_bounds = array<i64: 1, 32>}, {transform_indices = @transform_3, window_bounds = array<i64: 1, 16, 32>}]} {
    %c0 = arith.constant 0 : index
    %c0_0 = arith.constant 0 : index
    %c0_1 = arith.constant 0 : index
    %0 = vector.load %arg1[%c0, %c0_0, %c0_1] : memref<1x16x256xbf16, #tpu.memory_space<vmem>>, vector<1x16x256xbf16>
    %1 = vector.shape_cast %0 : vector<1x16x256xbf16> to vector<16x256xbf16>
    %c0_2 = arith.constant 0 : index
    %c0_3 = arith.constant 0 : index
    %2 = vector.load %arg2[%c0_2, %c0_3] : memref<256x32xbf16, #tpu.memory_space<vmem>>, vector<256x32xbf16>
    %cst = arith.constant dense<0.000000e+00> : vector<16x32xf32>
    %3 = tpu.matmul %1, %2, %cst {dimension_numbers = #tpu.dot_dimension_numbers<[1], [0], [0], [1], [0, 0, 1, 1], [], []>} : vector<16x256xbf16>, vector<256x32xbf16>, vector<16x32xf32> -> vector<16x32xf32>
    %c0_4 = arith.constant 0 : index
    %c0_5 = arith.constant 0 : index
    %4 = vector.load %arg3[%c0_4, %c0_5] : memref<1x32xf32, #tpu.memory_space<vmem>>, vector<1x32xf32>
    %5 = vector.broadcast %4 : vector<1x32xf32> to vector<16x32xf32>
    %6 = arith.addf %3, %5 : vector<16x32xf32>
    %cst_6 = arith.constant dense<0.000000e+00> : vector<32xf32>
    %7 = vector.multi_reduction <add>, %6, %cst_6 [0] : vector<16x32xf32> to vector<32xf32>
    %8 = vector.shape_cast %7 : vector<32xf32> to vector<1x32xf32>
    %cst_7 = arith.constant 1.600000e+01 : f32
    %9 = vector.broadcast %cst_7 : f32 to vector<1x32xf32>
    %10 = arith.divf %8, %9 : vector<1x32xf32>
    %11 = vector.broadcast %10 : vector<1x32xf32> to vector<16x32xf32>
    %12 = arith.subf %6, %11 : vector<16x32xf32>
    %13 = arith.mulf %12, %12 : vector<16x32xf32>
    %cst_8 = arith.constant dense<0.000000e+00> : vector<32xf32>
    %14 = vector.multi_reduction <add>, %13, %cst_8 [0] : vector<16x32xf32> to vector<32xf32>
    %15 = vector.shape_cast %14 : vector<32xf32> to vector<1x32xf32>
    %cst_9 = arith.constant 1.600000e+01 : f32
    %16 = vector.broadcast %cst_9 : f32 to vector<1x32xf32>
    %17 = arith.divf %15, %16 : vector<1x32xf32>
    %18 = vector.broadcast %10 : vector<1x32xf32> to vector<16x32xf32>
    %19 = arith.subf %6, %18 : vector<16x32xf32>
    %cst_10 = arith.constant 9.99999974E-6 : f32
    %20 = vector.broadcast %cst_10 : f32 to vector<1x32xf32>
    %21 = arith.addf %17, %20 : vector<1x32xf32>
    %22 = math.rsqrt %21 : vector<1x32xf32>
    %23 = vector.broadcast %22 : vector<1x32xf32> to vector<16x32xf32>
    %24 = arith.mulf %19, %23 : vector<16x32xf32>
    %cst_11 = arith.constant 0.000000e+00 : f32
    %25 = vector.broadcast %cst_11 : f32 to vector<16x32xf32>
    %26 = arith.maximumf %24, %25 : vector<16x32xf32>
    %27 = arith.truncf %26 : vector<16x32xf32> to vector<16x32xbf16>
    %c0_12 = arith.constant 0 : index
    %c0_13 = arith.constant 0 : index
    %c0_14 = arith.constant 0 : index
    %28 = vector.load %arg4[%c0_12, %c0_13, %c0_14] : memref<1x16x32xbf16, #tpu.memory_space<vmem>>, vector<1x16x32xbf16>
    %29 = vector.shape_cast %28 : vector<1x16x32xbf16> to vector<16x32xbf16>
    %30 = vector.shape_cast %27 : vector<16x32xbf16> to vector<1x16x32xbf16>
    tpu.vector_store %arg4[%c0_12, %c0_13, %c0_14], %30 {strides = array<i32>} : memref<1x16x32xbf16, #tpu.memory_space<vmem>>, vector<1x16x32xbf16>,
    return
  }
  func.func @transform_0(%arg0: i32) -> (i32, i32, i32) {
    %c0_i32 = arith.constant 0 : i32
    %c0_i32_0 = arith.constant 0 : i32
    %c0_i32_1 = arith.constant 0 : i32
    return %arg0, %c0_i32, %c0_i32_0 : i32, i32, i32
  }
  func.func @transform_1(%arg0: i32) -> (i32, i32) {
    %c0_i32 = arith.constant 0 : i32
    %c0_i32_0 = arith.constant 0 : i32
    %c0_i32_1 = arith.constant 0 : i32
    return %c0_i32, %c0_i32_0 : i32, i32
  }
  func.func @transform_2(%arg0: i32) -> (i32, i32) {
    %c0_i32 = arith.constant 0 : i32
    %c0_i32_0 = arith.constant 0 : i32
    %c0_i32_1 = arith.constant 0 : i32
    return %c0_i32, %c0_i32_0 : i32, i32
  }
  func.func @transform_3(%arg0: i32) -> (i32, i32, i32) {
    %c0_i32 = arith.constant 0 : i32
    %c0_i32_0 = arith.constant 0 : i32
    %c0_i32_1 = arith.constant 0 : i32
    return %arg0, %c0_i32, %c0_i32_0 : i32, i32, i32
  }
}

module attributes {stable_mosaic.version = 11 : i64} {
  func.func @_conv_kernel(%arg0: i32, %arg1: memref<1x16x384xbf16, #tpu.memory_space<vmem>>, %arg2: memref<384x32xbf16, #tpu.memory_space<vmem>>, %arg3: memref<1x32xf32, #tpu.memory_space<vmem>>, %arg4: memref<1x16x32xbf16, #tpu.memory_space<vmem>>) attributes {dimension_semantics = [#tpu.dimension_semantics<parallel>], iteration_bounds = array<i64: 2>, scalar_prefetch = 0 : i64, scratch_operands = 0 : i64, tpu.core_type = #tpu.core_type<tc>, window_params = [{transform_indices = @transform_0, window_bounds = array<i64: 1, 16, 384>}, {pipeline_mode = #tpu.pipeline_mode<synchronous>, transform_indices = @transform_1, window_bounds = array<i64: 384, 32>}, {pipeline_mode = #tpu.pipeline_mode<synchronous>, transform_indices = @transform_2, window_bounds = array<i64: 1, 32>}, {transform_indices = @transform_3, window_bounds = array<i64: 1, 16, 32>}]} {
    %c0 = arith.constant 0 : index
    %c0_0 = arith.constant 0 : index
    %c0_1 = arith.constant 0 : index
    %0 = vector.load %arg1[%c0, %c0_0, %c0_1] : memref<1x16x384xbf16, #tpu.memory_space<vmem>>, vector<1x16x384xbf16>
    %1 = vector.shape_cast %0 : vector<1x16x384xbf16> to vector<16x384xbf16>
    %c0_2 = arith.constant 0 : index
    %c0_3 = arith.constant 0 : index
    %2 = vector.load %arg2[%c0_2, %c0_3] : memref<384x32xbf16, #tpu.memory_space<vmem>>, vector<384x32xbf16>
    %cst = arith.constant dense<0.000000e+00> : vector<16x32xf32>
    %3 = tpu.matmul %1, %2, %cst {dimension_numbers = #tpu.dot_dimension_numbers<[1], [0], [0], [1], [0, 0, 1, 1], [], []>} : vector<16x384xbf16>, vector<384x32xbf16>, vector<16x32xf32> -> vector<16x32xf32>
    %c0_4 = arith.constant 0 : index
    %c0_5 = arith.constant 0 : index
    %4 = vector.load %arg3[%c0_4, %c0_5] : memref<1x32xf32, #tpu.memory_space<vmem>>, vector<1x32xf32>
    %5 = vector.broadcast %4 : vector<1x32xf32> to vector<16x32xf32>
    %6 = arith.addf %3, %5 : vector<16x32xf32>
    %cst_6 = arith.constant dense<0.000000e+00> : vector<32xf32>
    %7 = vector.multi_reduction <add>, %6, %cst_6 [0] : vector<16x32xf32> to vector<32xf32>
    %8 = vector.shape_cast %7 : vector<32xf32> to vector<1x32xf32>
    %cst_7 = arith.constant 1.600000e+01 : f32
    %9 = vector.broadcast %cst_7 : f32 to vector<1x32xf32>
    %10 = arith.divf %8, %9 : vector<1x32xf32>
    %11 = vector.broadcast %10 : vector<1x32xf32> to vector<16x32xf32>
    %12 = arith.subf %6, %11 : vector<16x32xf32>
    %13 = arith.mulf %12, %12 : vector<16x32xf32>
    %cst_8 = arith.constant dense<0.000000e+00> : vector<32xf32>
    %14 = vector.multi_reduction <add>, %13, %cst_8 [0] : vector<16x32xf32> to vector<32xf32>
    %15 = vector.shape_cast %14 : vector<32xf32> to vector<1x32xf32>
    %cst_9 = arith.constant 1.600000e+01 : f32
    %16 = vector.broadcast %cst_9 : f32 to vector<1x32xf32>
    %17 = arith.divf %15, %16 : vector<1x32xf32>
    %18 = vector.broadcast %10 : vector<1x32xf32> to vector<16x32xf32>
    %19 = arith.subf %6, %18 : vector<16x32xf32>
    %cst_10 = arith.constant 9.99999974E-6 : f32
    %20 = vector.broadcast %cst_10 : f32 to vector<1x32xf32>
    %21 = arith.addf %17, %20 : vector<1x32xf32>
    %22 = math.rsqrt %21 : vector<1x32xf32>
    %23 = vector.broadcast %22 : vector<1x32xf32> to vector<16x32xf32>
    %24 = arith.mulf %19, %23 : vector<16x32xf32>
    %cst_11 = arith.constant 0.000000e+00 : f32
    %25 = vector.broadcast %cst_11 : f32 to vector<16x32xf32>
    %26 = arith.maximumf %24, %25 : vector<16x32xf32>
    %27 = arith.truncf %26 : vector<16x32xf32> to vector<16x32xbf16>
    %c0_12 = arith.constant 0 : index
    %c0_13 = arith.constant 0 : index
    %c0_14 = arith.constant 0 : index
    %28 = vector.load %arg4[%c0_12, %c0_13, %c0_14] : memref<1x16x32xbf16, #tpu.memory_space<vmem>>, vector<1x16x32xbf16>
    %29 = vector.shape_cast %28 : vector<1x16x32xbf16> to vector<16x32xbf16>
    %30 = vector.shape_cast %27 : vector<16x32xbf16> to vector<1x16x32xbf16>
    tpu.vector_store %arg4[%c0_12, %c0_13, %c0_14], %30 {strides = array<i32>} : memref<1x16x32xbf16, #tpu.memory_space<vmem>>, vector<1x16x32xbf16>,
    return
  }
  func.func @transform_0(%arg0: i32) -> (i32, i32, i32) {
    %c0_i32 = arith.constant 0 : i32
    %c0_i32_0 = arith.constant 0 : i32
    %c0_i32_1 = arith.constant 0 : i32
    return %arg0, %c0_i32, %c0_i32_0 : i32, i32, i32
  }
  func.func @transform_1(%arg0: i32) -> (i32, i32) {
    %c0_i32 = arith.constant 0 : i32
    %c0_i32_0 = arith.constant 0 : i32
    %c0_i32_1 = arith.constant 0 : i32
    return %c0_i32, %c0_i32_0 : i32, i32
  }
  func.func @transform_2(%arg0: i32) -> (i32, i32) {
    %c0_i32 = arith.constant 0 : i32
    %c0_i32_0 = arith.constant 0 : i32
    %c0_i32_1 = arith.constant 0 : i32
    return %c0_i32, %c0_i32_0 : i32, i32
  }
  func.func @transform_3(%arg0: i32) -> (i32, i32, i32) {
    %c0_i32 = arith.constant 0 : i32
    %c0_i32_0 = arith.constant 0 : i32
    %c0_i32_1 = arith.constant 0 : i32
    return %arg0, %c0_i32, %c0_i32_0 : i32, i32, i32
  }
}

module attributes {stable_mosaic.version = 11 : i64} {
  func.func @_conv_res_kernel(%arg0: i32, %arg1: memref<1x16x384xbf16, #tpu.memory_space<vmem>>, %arg2: memref<384x32xbf16, #tpu.memory_space<vmem>>, %arg3: memref<1x32xf32, #tpu.memory_space<vmem>>, %arg4: memref<1x16x32xbf16, #tpu.memory_space<vmem>>, %arg5: memref<1x16x32xbf16, #tpu.memory_space<vmem>>) attributes {dimension_semantics = [#tpu.dimension_semantics<parallel>], iteration_bounds = array<i64: 2>, scalar_prefetch = 0 : i64, scratch_operands = 0 : i64, tpu.core_type = #tpu.core_type<tc>, window_params = [{transform_indices = @transform_0, window_bounds = array<i64: 1, 16, 384>}, {pipeline_mode = #tpu.pipeline_mode<synchronous>, transform_indices = @transform_1, window_bounds = array<i64: 384, 32>}, {pipeline_mode = #tpu.pipeline_mode<synchronous>, transform_indices = @transform_2, window_bounds = array<i64: 1, 32>}, {transform_indices = @transform_3, window_bounds = array<i64: 1, 16, 32>}, {transform_indices = @transform_4, window_bounds = array<i64: 1, 16, 32>}]} {
    %c0 = arith.constant 0 : index
    %c0_0 = arith.constant 0 : index
    %c0_1 = arith.constant 0 : index
    %0 = vector.load %arg1[%c0, %c0_0, %c0_1] : memref<1x16x384xbf16, #tpu.memory_space<vmem>>, vector<1x16x384xbf16>
    %1 = vector.shape_cast %0 : vector<1x16x384xbf16> to vector<16x384xbf16>
    %c0_2 = arith.constant 0 : index
    %c0_3 = arith.constant 0 : index
    %2 = vector.load %arg2[%c0_2, %c0_3] : memref<384x32xbf16, #tpu.memory_space<vmem>>, vector<384x32xbf16>
    %cst = arith.constant dense<0.000000e+00> : vector<16x32xf32>
    %3 = tpu.matmul %1, %2, %cst {dimension_numbers = #tpu.dot_dimension_numbers<[1], [0], [0], [1], [0, 0, 1, 1], [], []>} : vector<16x384xbf16>, vector<384x32xbf16>, vector<16x32xf32> -> vector<16x32xf32>
    %c0_4 = arith.constant 0 : index
    %c0_5 = arith.constant 0 : index
    %4 = vector.load %arg3[%c0_4, %c0_5] : memref<1x32xf32, #tpu.memory_space<vmem>>, vector<1x32xf32>
    %5 = vector.broadcast %4 : vector<1x32xf32> to vector<16x32xf32>
    %6 = arith.addf %3, %5 : vector<16x32xf32>
    %cst_6 = arith.constant dense<0.000000e+00> : vector<32xf32>
    %7 = vector.multi_reduction <add>, %6, %cst_6 [0] : vector<16x32xf32> to vector<32xf32>
    %8 = vector.shape_cast %7 : vector<32xf32> to vector<1x32xf32>
    %cst_7 = arith.constant 1.600000e+01 : f32
    %9 = vector.broadcast %cst_7 : f32 to vector<1x32xf32>
    %10 = arith.divf %8, %9 : vector<1x32xf32>
    %11 = vector.broadcast %10 : vector<1x32xf32> to vector<16x32xf32>
    %12 = arith.subf %6, %11 : vector<16x32xf32>
    %13 = arith.mulf %12, %12 : vector<16x32xf32>
    %cst_8 = arith.constant dense<0.000000e+00> : vector<32xf32>
    %14 = vector.multi_reduction <add>, %13, %cst_8 [0] : vector<16x32xf32> to vector<32xf32>
    %15 = vector.shape_cast %14 : vector<32xf32> to vector<1x32xf32>
    %cst_9 = arith.constant 1.600000e+01 : f32
    %16 = vector.broadcast %cst_9 : f32 to vector<1x32xf32>
    %17 = arith.divf %15, %16 : vector<1x32xf32>
    %18 = vector.broadcast %10 : vector<1x32xf32> to vector<16x32xf32>
    %19 = arith.subf %6, %18 : vector<16x32xf32>
    %cst_10 = arith.constant 9.99999974E-6 : f32
    %20 = vector.broadcast %cst_10 : f32 to vector<1x32xf32>
    %21 = arith.addf %17, %20 : vector<1x32xf32>
    %22 = math.rsqrt %21 : vector<1x32xf32>
    %23 = vector.broadcast %22 : vector<1x32xf32> to vector<16x32xf32>
    %24 = arith.mulf %19, %23 : vector<16x32xf32>
    %c0_11 = arith.constant 0 : index
    %c0_12 = arith.constant 0 : index
    %c0_13 = arith.constant 0 : index
    %25 = vector.load %arg4[%c0_11, %c0_12, %c0_13] : memref<1x16x32xbf16, #tpu.memory_space<vmem>>, vector<1x16x32xbf16>
    %26 = vector.shape_cast %25 : vector<1x16x32xbf16> to vector<16x32xbf16>
    %27 = arith.extf %26 : vector<16x32xbf16> to vector<16x32xf32>
    %28 = arith.addf %24, %27 : vector<16x32xf32>
    %29 = arith.truncf %28 : vector<16x32xf32> to vector<16x32xbf16>
    %c0_14 = arith.constant 0 : index
    %c0_15 = arith.constant 0 : index
    %c0_16 = arith.constant 0 : index
    %30 = vector.load %arg5[%c0_14, %c0_15, %c0_16] : memref<1x16x32xbf16, #tpu.memory_space<vmem>>, vector<1x16x32xbf16>
    %31 = vector.shape_cast %30 : vector<1x16x32xbf16> to vector<16x32xbf16>
    %32 = vector.shape_cast %29 : vector<16x32xbf16> to vector<1x16x32xbf16>
    tpu.vector_store %arg5[%c0_14, %c0_15, %c0_16], %32 {strides = array<i32>} : memref<1x16x32xbf16, #tpu.memory_space<vmem>>, vector<1x16x32xbf16>,
    return
  }
  func.func @transform_0(%arg0: i32) -> (i32, i32, i32) {
    %c0_i32 = arith.constant 0 : i32
    %c0_i32_0 = arith.constant 0 : i32
    %c0_i32_1 = arith.constant 0 : i32
    return %arg0, %c0_i32, %c0_i32_0 : i32, i32, i32
  }
  func.func @transform_1(%arg0: i32) -> (i32, i32) {
    %c0_i32 = arith.constant 0 : i32
    %c0_i32_0 = arith.constant 0 : i32
    %c0_i32_1 = arith.constant 0 : i32
    return %c0_i32, %c0_i32_0 : i32, i32
  }
  func.func @transform_2(%arg0: i32) -> (i32, i32) {
    %c0_i32 = arith.constant 0 : i32
    %c0_i32_0 = arith.constant 0 : i32
    %c0_i32_1 = arith.constant 0 : i32
    return %c0_i32, %c0_i32_0 : i32, i32
  }
  func.func @transform_3(%arg0: i32) -> (i32, i32, i32) {
    %c0_i32 = arith.constant 0 : i32
    %c0_i32_0 = arith.constant 0 : i32
    %c0_i32_1 = arith.constant 0 : i32
    return %arg0, %c0_i32, %c0_i32_0 : i32, i32, i32
  }
  func.func @transform_4(%arg0: i32) -> (i32, i32, i32) {
    %c0_i32 = arith.constant 0 : i32
    %c0_i32_0 = arith.constant 0 : i32
    %c0_i32_1 = arith.constant 0 : i32
    return %arg0, %c0_i32, %c0_i32_0 : i32, i32, i32
  }
}

module attributes {stable_mosaic.version = 11 : i64} {
  func.func @_se_kernel(%arg0: i32, %arg1: memref<1x16x32xbf16, #tpu.memory_space<vmem>>, %arg2: memref<2x32xf32, #tpu.memory_space<vmem>>, %arg3: memref<2x1xf32, #tpu.memory_space<vmem>>, %arg4: memref<2x32xf32, #tpu.memory_space<vmem>>, %arg5: memref<1x32xf32, #tpu.memory_space<vmem>>, %arg6: memref<1x16x32xbf16, #tpu.memory_space<vmem>>) attributes {dimension_semantics = [#tpu.dimension_semantics<parallel>], iteration_bounds = array<i64: 2>, scalar_prefetch = 0 : i64, scratch_operands = 0 : i64, tpu.core_type = #tpu.core_type<tc>, window_params = [{transform_indices = @transform_0, window_bounds = array<i64: 1, 16, 32>}, {pipeline_mode = #tpu.pipeline_mode<synchronous>, transform_indices = @transform_1, window_bounds = array<i64: 2, 32>}, {pipeline_mode = #tpu.pipeline_mode<synchronous>, transform_indices = @transform_2, window_bounds = array<i64: 2, 1>}, {pipeline_mode = #tpu.pipeline_mode<synchronous>, transform_indices = @transform_3, window_bounds = array<i64: 2, 32>}, {pipeline_mode = #tpu.pipeline_mode<synchronous>, transform_indices = @transform_4, window_bounds = array<i64: 1, 32>}, {transform_indices = @transform_5, window_bounds = array<i64: 1, 16, 32>}]} {
    %c0 = arith.constant 0 : index
    %c0_0 = arith.constant 0 : index
    %c0_1 = arith.constant 0 : index
    %0 = vector.load %arg1[%c0, %c0_0, %c0_1] : memref<1x16x32xbf16, #tpu.memory_space<vmem>>, vector<1x16x32xbf16>
    %1 = vector.shape_cast %0 : vector<1x16x32xbf16> to vector<16x32xbf16>
    %2 = arith.extf %1 : vector<16x32xbf16> to vector<16x32xf32>
    %cst = arith.constant dense<0.000000e+00> : vector<32xf32>
    %3 = vector.multi_reduction <add>, %2, %cst [0] : vector<16x32xf32> to vector<32xf32>
    %4 = vector.shape_cast %3 : vector<32xf32> to vector<1x32xf32>
    %cst_2 = arith.constant 1.600000e+01 : f32
    %5 = vector.broadcast %cst_2 : f32 to vector<1x32xf32>
    %6 = arith.divf %4, %5 : vector<1x32xf32>
    %c0_3 = arith.constant 0 : index
    %c0_4 = arith.constant 0 : index
    %7 = vector.load %arg2[%c0_3, %c0_4] : memref<2x32xf32, #tpu.memory_space<vmem>>, vector<2x32xf32>
    %8 = vector.broadcast %6 : vector<1x32xf32> to vector<2x32xf32>
    %9 = arith.mulf %8, %7 : vector<2x32xf32>
    %cst_5 = arith.constant dense<0.000000e+00> : vector<2xf32>
    %10 = vector.multi_reduction <add>, %9, %cst_5 [1] : vector<2x32xf32> to vector<2xf32>
    %11 = vector.shape_cast %10 : vector<2xf32> to vector<2x1xf32>
    %c0_6 = arith.constant 0 : index
    %c0_7 = arith.constant 0 : index
    %12 = vector.load %arg3[%c0_6, %c0_7] : memref<2x1xf32, #tpu.memory_space<vmem>>, vector<2x1xf32>
    %13 = arith.addf %11, %12 : vector<2x1xf32>
    %cst_8 = arith.constant 0.000000e+00 : f32
    %14 = vector.broadcast %cst_8 : f32 to vector<2x1xf32>
    %15 = arith.maximumf %13, %14 : vector<2x1xf32>
    %c0_9 = arith.constant 0 : index
    %c0_10 = arith.constant 0 : index
    %16 = vector.load %arg4[%c0_9, %c0_10] : memref<2x32xf32, #tpu.memory_space<vmem>>, vector<2x32xf32>
    %17 = vector.broadcast %15 : vector<2x1xf32> to vector<2x32xf32>
    %18 = arith.mulf %17, %16 : vector<2x32xf32>
    %cst_11 = arith.constant dense<0.000000e+00> : vector<32xf32>
    %19 = vector.multi_reduction <add>, %18, %cst_11 [0] : vector<2x32xf32> to vector<32xf32>
    %20 = vector.shape_cast %19 : vector<32xf32> to vector<1x32xf32>
    %c0_12 = arith.constant 0 : index
    %c0_13 = arith.constant 0 : index
    %21 = vector.load %arg5[%c0_12, %c0_13] : memref<1x32xf32, #tpu.memory_space<vmem>>, vector<1x32xf32>
    %22 = arith.addf %20, %21 : vector<1x32xf32>
    %23 = arith.negf %22 : vector<1x32xf32>
    %24 = math.exp %23 : vector<1x32xf32>
    %cst_14 = arith.constant 1.000000e+00 : f32
    %25 = vector.broadcast %cst_14 : f32 to vector<1x32xf32>
    %26 = arith.addf %25, %24 : vector<1x32xf32>
    %27 = arith.divf %25, %26 : vector<1x32xf32>
    %28 = vector.broadcast %27 : vector<1x32xf32> to vector<16x32xf32>
    %29 = arith.mulf %2, %28 : vector<16x32xf32>
    %30 = arith.truncf %29 : vector<16x32xf32> to vector<16x32xbf16>
    %c0_15 = arith.constant 0 : index
    %c0_16 = arith.constant 0 : index
    %c0_17 = arith.constant 0 : index
    %31 = vector.load %arg6[%c0_15, %c0_16, %c0_17] : memref<1x16x32xbf16, #tpu.memory_space<vmem>>, vector<1x16x32xbf16>
    %32 = vector.shape_cast %31 : vector<1x16x32xbf16> to vector<16x32xbf16>
    %33 = vector.shape_cast %30 : vector<16x32xbf16> to vector<1x16x32xbf16>
    tpu.vector_store %arg6[%c0_15, %c0_16, %c0_17], %33 {strides = array<i32>} : memref<1x16x32xbf16, #tpu.memory_space<vmem>>, vector<1x16x32xbf16>,
    return
  }
  func.func @transform_0(%arg0: i32) -> (i32, i32, i32) {
    %c0_i32 = arith.constant 0 : i32
    %c0_i32_0 = arith.constant 0 : i32
    %c0_i32_1 = arith.constant 0 : i32
    return %arg0, %c0_i32, %c0_i32_0 : i32, i32, i32
  }
  func.func @transform_1(%arg0: i32) -> (i32, i32) {
    %c0_i32 = arith.constant 0 : i32
    %c0_i32_0 = arith.constant 0 : i32
    %c0_i32_1 = arith.constant 0 : i32
    return %c0_i32, %c0_i32_0 : i32, i32
  }
  func.func @transform_2(%arg0: i32) -> (i32, i32) {
    %c0_i32 = arith.constant 0 : i32
    %c0_i32_0 = arith.constant 0 : i32
    %c0_i32_1 = arith.constant 0 : i32
    return %c0_i32, %c0_i32_0 : i32, i32
  }
  func.func @transform_3(%arg0: i32) -> (i32, i32) {
    %c0_i32 = arith.constant 0 : i32
    %c0_i32_0 = arith.constant 0 : i32
    %c0_i32_1 = arith.constant 0 : i32
    return %c0_i32, %c0_i32_0 : i32, i32
  }
  func.func @transform_4(%arg0: i32) -> (i32, i32) {
    %c0_i32 = arith.constant 0 : i32
    %c0_i32_0 = arith.constant 0 : i32
    %c0_i32_1 = arith.constant 0 : i32
    return %c0_i32, %c0_i32_0 : i32, i32
  }
  func.func @transform_5(%arg0: i32) -> (i32, i32, i32) {
    %c0_i32 = arith.constant 0 : i32
    %c0_i32_0 = arith.constant 0 : i32
    %c0_i32_1 = arith.constant 0 : i32
    return %arg0, %c0_i32, %c0_i32_0 : i32, i32, i32
  }
}

module attributes {stable_mosaic.version = 11 : i64} {
  func.func @_conv_kernel(%arg0: i32, %arg1: memref<1x16x128xbf16, #tpu.memory_space<vmem>>, %arg2: memref<128x64xbf16, #tpu.memory_space<vmem>>, %arg3: memref<1x64xf32, #tpu.memory_space<vmem>>, %arg4: memref<1x16x64xbf16, #tpu.memory_space<vmem>>) attributes {dimension_semantics = [#tpu.dimension_semantics<parallel>], iteration_bounds = array<i64: 2>, scalar_prefetch = 0 : i64, scratch_operands = 0 : i64, tpu.core_type = #tpu.core_type<tc>, window_params = [{transform_indices = @transform_0, window_bounds = array<i64: 1, 16, 128>}, {pipeline_mode = #tpu.pipeline_mode<synchronous>, transform_indices = @transform_1, window_bounds = array<i64: 128, 64>}, {pipeline_mode = #tpu.pipeline_mode<synchronous>, transform_indices = @transform_2, window_bounds = array<i64: 1, 64>}, {transform_indices = @transform_3, window_bounds = array<i64: 1, 16, 64>}]} {
    %c0 = arith.constant 0 : index
    %c0_0 = arith.constant 0 : index
    %c0_1 = arith.constant 0 : index
    %0 = vector.load %arg1[%c0, %c0_0, %c0_1] : memref<1x16x128xbf16, #tpu.memory_space<vmem>>, vector<1x16x128xbf16>
    %1 = vector.shape_cast %0 : vector<1x16x128xbf16> to vector<16x128xbf16>
    %c0_2 = arith.constant 0 : index
    %c0_3 = arith.constant 0 : index
    %2 = vector.load %arg2[%c0_2, %c0_3] : memref<128x64xbf16, #tpu.memory_space<vmem>>, vector<128x64xbf16>
    %cst = arith.constant dense<0.000000e+00> : vector<16x64xf32>
    %3 = tpu.matmul %1, %2, %cst {dimension_numbers = #tpu.dot_dimension_numbers<[1], [0], [0], [1], [0, 0, 1, 1], [], []>} : vector<16x128xbf16>, vector<128x64xbf16>, vector<16x64xf32> -> vector<16x64xf32>
    %c0_4 = arith.constant 0 : index
    %c0_5 = arith.constant 0 : index
    %4 = vector.load %arg3[%c0_4, %c0_5] : memref<1x64xf32, #tpu.memory_space<vmem>>, vector<1x64xf32>
    %5 = vector.broadcast %4 : vector<1x64xf32> to vector<16x64xf32>
    %6 = arith.addf %3, %5 : vector<16x64xf32>
    %cst_6 = arith.constant dense<0.000000e+00> : vector<64xf32>
    %7 = vector.multi_reduction <add>, %6, %cst_6 [0] : vector<16x64xf32> to vector<64xf32>
    %8 = vector.shape_cast %7 : vector<64xf32> to vector<1x64xf32>
    %cst_7 = arith.constant 1.600000e+01 : f32
    %9 = vector.broadcast %cst_7 : f32 to vector<1x64xf32>
    %10 = arith.divf %8, %9 : vector<1x64xf32>
    %11 = vector.extract_strided_slice %10 {offsets = [0, 0], sizes = [1, 16], strides = [1, 1]} : vector<1x64xf32> to vector<1x16xf32>
    %cst_8 = arith.constant 0.000000e+00 : f32
    %12 = vector.broadcast %cst_8 : f32 to vector<1x16xf32>
    %13 = arith.addf %12, %11 : vector<1x16xf32>
    %14 = vector.extract_strided_slice %10 {offsets = [0, 16], sizes = [1, 16], strides = [1, 1]} : vector<1x64xf32> to vector<1x16xf32>
    %15 = arith.addf %13, %14 : vector<1x16xf32>
    %16 = vector.extract_strided_slice %10 {offsets = [0, 32], sizes = [1, 16], strides = [1, 1]} : vector<1x64xf32> to vector<1x16xf32>
    %17 = arith.addf %15, %16 : vector<1x16xf32>
    %18 = vector.extract_strided_slice %10 {offsets = [0, 48], sizes = [1, 16], strides = [1, 1]} : vector<1x64xf32> to vector<1x16xf32>
    %19 = arith.addf %17, %18 : vector<1x16xf32>
    %cst_9 = arith.constant 4.000000e+00 : f32
    %20 = vector.broadcast %cst_9 : f32 to vector<1x16xf32>
    %21 = arith.divf %19, %20 : vector<1x16xf32>
    %22 = tpu.concatenate %21, %21, %21, %21 in 1 : vector<1x16xf32>, vector<1x16xf32>, vector<1x16xf32>, vector<1x16xf32> -> vector<1x64xf32>
    %23 = vector.broadcast %22 : vector<1x64xf32> to vector<16x64xf32>
    %24 = arith.subf %6, %23 : vector<16x64xf32>
    %25 = arith.mulf %24, %24 : vector<16x64xf32>
    %cst_10 = arith.constant dense<0.000000e+00> : vector<64xf32>
    %26 = vector.multi_reduction <add>, %25, %cst_10 [0] : vector<16x64xf32> to vector<64xf32>
    %27 = vector.shape_cast %26 : vector<64xf32> to vector<1x64xf32>
    %cst_11 = arith.constant 1.600000e+01 : f32
    %28 = vector.broadcast %cst_11 : f32 to vector<1x64xf32>
    %29 = arith.divf %27, %28 : vector<1x64xf32>
    %30 = vector.extract_strided_slice %29 {offsets = [0, 0], sizes = [1, 16], strides = [1, 1]} : vector<1x64xf32> to vector<1x16xf32>
    %cst_12 = arith.constant 0.000000e+00 : f32
    %31 = vector.broadcast %cst_12 : f32 to vector<1x16xf32>
    %32 = arith.addf %31, %30 : vector<1x16xf32>
    %33 = vector.extract_strided_slice %29 {offsets = [0, 16], sizes = [1, 16], strides = [1, 1]} : vector<1x64xf32> to vector<1x16xf32>
    %34 = arith.addf %32, %33 : vector<1x16xf32>
    %35 = vector.extract_strided_slice %29 {offsets = [0, 32], sizes = [1, 16], strides = [1, 1]} : vector<1x64xf32> to vector<1x16xf32>
    %36 = arith.addf %34, %35 : vector<1x16xf32>
    %37 = vector.extract_strided_slice %29 {offsets = [0, 48], sizes = [1, 16], strides = [1, 1]} : vector<1x64xf32> to vector<1x16xf32>
    %38 = arith.addf %36, %37 : vector<1x16xf32>
    %cst_13 = arith.constant 4.000000e+00 : f32
    %39 = vector.broadcast %cst_13 : f32 to vector<1x16xf32>
    %40 = arith.divf %38, %39 : vector<1x16xf32>
    %cst_14 = arith.constant 9.99999974E-6 : f32
    %41 = vector.broadcast %cst_14 : f32 to vector<1x16xf32>
    %42 = arith.addf %40, %41 : vector<1x16xf32>
    %43 = math.rsqrt %42 : vector<1x16xf32>
    %44 = tpu.concatenate %43, %43, %43, %43 in 1 : vector<1x16xf32>, vector<1x16xf32>, vector<1x16xf32>, vector<1x16xf32> -> vector<1x64xf32>
    %45 = vector.broadcast %44 : vector<1x64xf32> to vector<16x64xf32>
    %46 = arith.mulf %24, %45 : vector<16x64xf32>
    %cst_15 = arith.constant 0.000000e+00 : f32
    %47 = vector.broadcast %cst_15 : f32 to vector<16x64xf32>
    %48 = arith.maximumf %46, %47 : vector<16x64xf32>
    %49 = arith.truncf %48 : vector<16x64xf32> to vector<16x64xbf16>
    %c0_16 = arith.constant 0 : index
    %c0_17 = arith.constant 0 : index
    %c0_18 = arith.constant 0 : index
    %50 = vector.load %arg4[%c0_16, %c0_17, %c0_18] : memref<1x16x64xbf16, #tpu.memory_space<vmem>>, vector<1x16x64xbf16>
    %51 = vector.shape_cast %50 : vector<1x16x64xbf16> to vector<16x64xbf16>
    %52 = vector.shape_cast %49 : vector<16x64xbf16> to vector<1x16x64xbf16>
    tpu.vector_store %arg4[%c0_16, %c0_17, %c0_18], %52 {strides = array<i32>} : memref<1x16x64xbf16, #tpu.memory_space<vmem>>, vector<1x16x64xbf16>,
    return
  }
  func.func @transform_0(%arg0: i32) -> (i32, i32, i32) {
    %c0_i32 = arith.constant 0 : i32
    %c0_i32_0 = arith.constant 0 : i32
    %c0_i32_1 = arith.constant 0 : i32
    return %arg0, %c0_i32, %c0_i32_0 : i32, i32, i32
  }
  func.func @transform_1(%arg0: i32) -> (i32, i32) {
    %c0_i32 = arith.constant 0 : i32
    %c0_i32_0 = arith.constant 0 : i32
    %c0_i32_1 = arith.constant 0 : i32
    return %c0_i32, %c0_i32_0 : i32, i32
  }
  func.func @transform_2(%arg0: i32) -> (i32, i32) {
    %c0_i32 = arith.constant 0 : i32
    %c0_i32_0 = arith.constant 0 : i32
    %c0_i32_1 = arith.constant 0 : i32
    return %c0_i32, %c0_i32_0 : i32, i32
  }
  func.func @transform_3(%arg0: i32) -> (i32, i32, i32) {
    %c0_i32 = arith.constant 0 : i32
    %c0_i32_0 = arith.constant 0 : i32
    %c0_i32_1 = arith.constant 0 : i32
    return %arg0, %c0_i32, %c0_i32_0 : i32, i32, i32
  }
}

module attributes {stable_mosaic.version = 11 : i64} {
  func.func @_conv_kernel(%arg0: i32, %arg1: memref<1x64x128xbf16, #tpu.memory_space<vmem>>, %arg2: memref<128x32xbf16, #tpu.memory_space<vmem>>, %arg3: memref<1x32xf32, #tpu.memory_space<vmem>>, %arg4: memref<1x64x32xbf16, #tpu.memory_space<vmem>>) attributes {dimension_semantics = [#tpu.dimension_semantics<parallel>], iteration_bounds = array<i64: 2>, scalar_prefetch = 0 : i64, scratch_operands = 0 : i64, tpu.core_type = #tpu.core_type<tc>, window_params = [{transform_indices = @transform_0, window_bounds = array<i64: 1, 64, 128>}, {pipeline_mode = #tpu.pipeline_mode<synchronous>, transform_indices = @transform_1, window_bounds = array<i64: 128, 32>}, {pipeline_mode = #tpu.pipeline_mode<synchronous>, transform_indices = @transform_2, window_bounds = array<i64: 1, 32>}, {transform_indices = @transform_3, window_bounds = array<i64: 1, 64, 32>}]} {
    %c0 = arith.constant 0 : index
    %c0_0 = arith.constant 0 : index
    %c0_1 = arith.constant 0 : index
    %0 = vector.load %arg1[%c0, %c0_0, %c0_1] : memref<1x64x128xbf16, #tpu.memory_space<vmem>>, vector<1x64x128xbf16>
    %1 = vector.shape_cast %0 : vector<1x64x128xbf16> to vector<64x128xbf16>
    %c0_2 = arith.constant 0 : index
    %c0_3 = arith.constant 0 : index
    %2 = vector.load %arg2[%c0_2, %c0_3] : memref<128x32xbf16, #tpu.memory_space<vmem>>, vector<128x32xbf16>
    %cst = arith.constant dense<0.000000e+00> : vector<64x32xf32>
    %3 = tpu.matmul %1, %2, %cst {dimension_numbers = #tpu.dot_dimension_numbers<[1], [0], [0], [1], [0, 0, 1, 1], [], []>} : vector<64x128xbf16>, vector<128x32xbf16>, vector<64x32xf32> -> vector<64x32xf32>
    %c0_4 = arith.constant 0 : index
    %c0_5 = arith.constant 0 : index
    %4 = vector.load %arg3[%c0_4, %c0_5] : memref<1x32xf32, #tpu.memory_space<vmem>>, vector<1x32xf32>
    %5 = vector.broadcast %4 : vector<1x32xf32> to vector<64x32xf32>
    %6 = arith.addf %3, %5 : vector<64x32xf32>
    %cst_6 = arith.constant dense<0.000000e+00> : vector<32xf32>
    %7 = vector.multi_reduction <add>, %6, %cst_6 [0] : vector<64x32xf32> to vector<32xf32>
    %8 = vector.shape_cast %7 : vector<32xf32> to vector<1x32xf32>
    %cst_7 = arith.constant 6.400000e+01 : f32
    %9 = vector.broadcast %cst_7 : f32 to vector<1x32xf32>
    %10 = arith.divf %8, %9 : vector<1x32xf32>
    %11 = vector.extract_strided_slice %10 {offsets = [0, 0], sizes = [1, 8], strides = [1, 1]} : vector<1x32xf32> to vector<1x8xf32>
    %cst_8 = arith.constant 0.000000e+00 : f32
    %12 = vector.broadcast %cst_8 : f32 to vector<1x8xf32>
    %13 = arith.addf %12, %11 : vector<1x8xf32>
    %14 = vector.extract_strided_slice %10 {offsets = [0, 8], sizes = [1, 8], strides = [1, 1]} : vector<1x32xf32> to vector<1x8xf32>
    %15 = arith.addf %13, %14 : vector<1x8xf32>
    %16 = vector.extract_strided_slice %10 {offsets = [0, 16], sizes = [1, 8], strides = [1, 1]} : vector<1x32xf32> to vector<1x8xf32>
    %17 = arith.addf %15, %16 : vector<1x8xf32>
    %18 = vector.extract_strided_slice %10 {offsets = [0, 24], sizes = [1, 8], strides = [1, 1]} : vector<1x32xf32> to vector<1x8xf32>
    %19 = arith.addf %17, %18 : vector<1x8xf32>
    %cst_9 = arith.constant 4.000000e+00 : f32
    %20 = vector.broadcast %cst_9 : f32 to vector<1x8xf32>
    %21 = arith.divf %19, %20 : vector<1x8xf32>
    %22 = tpu.concatenate %21, %21, %21, %21 in 1 : vector<1x8xf32>, vector<1x8xf32>, vector<1x8xf32>, vector<1x8xf32> -> vector<1x32xf32>
    %23 = vector.broadcast %22 : vector<1x32xf32> to vector<64x32xf32>
    %24 = arith.subf %6, %23 : vector<64x32xf32>
    %25 = arith.mulf %24, %24 : vector<64x32xf32>
    %cst_10 = arith.constant dense<0.000000e+00> : vector<32xf32>
    %26 = vector.multi_reduction <add>, %25, %cst_10 [0] : vector<64x32xf32> to vector<32xf32>
    %27 = vector.shape_cast %26 : vector<32xf32> to vector<1x32xf32>
    %cst_11 = arith.constant 6.400000e+01 : f32
    %28 = vector.broadcast %cst_11 : f32 to vector<1x32xf32>
    %29 = arith.divf %27, %28 : vector<1x32xf32>
    %30 = vector.extract_strided_slice %29 {offsets = [0, 0], sizes = [1, 8], strides = [1, 1]} : vector<1x32xf32> to vector<1x8xf32>
    %cst_12 = arith.constant 0.000000e+00 : f32
    %31 = vector.broadcast %cst_12 : f32 to vector<1x8xf32>
    %32 = arith.addf %31, %30 : vector<1x8xf32>
    %33 = vector.extract_strided_slice %29 {offsets = [0, 8], sizes = [1, 8], strides = [1, 1]} : vector<1x32xf32> to vector<1x8xf32>
    %34 = arith.addf %32, %33 : vector<1x8xf32>
    %35 = vector.extract_strided_slice %29 {offsets = [0, 16], sizes = [1, 8], strides = [1, 1]} : vector<1x32xf32> to vector<1x8xf32>
    %36 = arith.addf %34, %35 : vector<1x8xf32>
    %37 = vector.extract_strided_slice %29 {offsets = [0, 24], sizes = [1, 8], strides = [1, 1]} : vector<1x32xf32> to vector<1x8xf32>
    %38 = arith.addf %36, %37 : vector<1x8xf32>
    %cst_13 = arith.constant 4.000000e+00 : f32
    %39 = vector.broadcast %cst_13 : f32 to vector<1x8xf32>
    %40 = arith.divf %38, %39 : vector<1x8xf32>
    %cst_14 = arith.constant 9.99999974E-6 : f32
    %41 = vector.broadcast %cst_14 : f32 to vector<1x8xf32>
    %42 = arith.addf %40, %41 : vector<1x8xf32>
    %43 = math.rsqrt %42 : vector<1x8xf32>
    %44 = tpu.concatenate %43, %43, %43, %43 in 1 : vector<1x8xf32>, vector<1x8xf32>, vector<1x8xf32>, vector<1x8xf32> -> vector<1x32xf32>
    %45 = vector.broadcast %44 : vector<1x32xf32> to vector<64x32xf32>
    %46 = arith.mulf %24, %45 : vector<64x32xf32>
    %cst_15 = arith.constant 0.000000e+00 : f32
    %47 = vector.broadcast %cst_15 : f32 to vector<64x32xf32>
    %48 = arith.maximumf %46, %47 : vector<64x32xf32>
    %49 = arith.truncf %48 : vector<64x32xf32> to vector<64x32xbf16>
    %c0_16 = arith.constant 0 : index
    %c0_17 = arith.constant 0 : index
    %c0_18 = arith.constant 0 : index
    %50 = vector.load %arg4[%c0_16, %c0_17, %c0_18] : memref<1x64x32xbf16, #tpu.memory_space<vmem>>, vector<1x64x32xbf16>
    %51 = vector.shape_cast %50 : vector<1x64x32xbf16> to vector<64x32xbf16>
    %52 = vector.shape_cast %49 : vector<64x32xbf16> to vector<1x64x32xbf16>
    tpu.vector_store %arg4[%c0_16, %c0_17, %c0_18], %52 {strides = array<i32>} : memref<1x64x32xbf16, #tpu.memory_space<vmem>>, vector<1x64x32xbf16>,
    return
  }
  func.func @transform_0(%arg0: i32) -> (i32, i32, i32) {
    %c0_i32 = arith.constant 0 : i32
    %c0_i32_0 = arith.constant 0 : i32
    %c0_i32_1 = arith.constant 0 : i32
    return %arg0, %c0_i32, %c0_i32_0 : i32, i32, i32
  }
  func.func @transform_1(%arg0: i32) -> (i32, i32) {
    %c0_i32 = arith.constant 0 : i32
    %c0_i32_0 = arith.constant 0 : i32
    %c0_i32_1 = arith.constant 0 : i32
    return %c0_i32, %c0_i32_0 : i32, i32
  }
  func.func @transform_2(%arg0: i32) -> (i32, i32) {
    %c0_i32 = arith.constant 0 : i32
    %c0_i32_0 = arith.constant 0 : i32
    %c0_i32_1 = arith.constant 0 : i32
    return %c0_i32, %c0_i32_0 : i32, i32
  }
  func.func @transform_3(%arg0: i32) -> (i32, i32, i32) {
    %c0_i32 = arith.constant 0 : i32
    %c0_i32_0 = arith.constant 0 : i32
    %c0_i32_1 = arith.constant 0 : i32
    return %arg0, %c0_i32, %c0_i32_0 : i32, i32, i32
  }
}

module attributes {stable_mosaic.version = 11 : i64} {
  func.func @_conv_kernel(%arg0: i32, %arg1: memref<1x256x512xbf16, #tpu.memory_space<vmem>>, %arg2: memref<512x3xbf16, #tpu.memory_space<vmem>>, %arg3: memref<1x3xf32, #tpu.memory_space<vmem>>, %arg4: memref<1x256x3xf32, #tpu.memory_space<vmem>>) attributes {dimension_semantics = [#tpu.dimension_semantics<parallel>], iteration_bounds = array<i64: 2>, scalar_prefetch = 0 : i64, scratch_operands = 0 : i64, tpu.core_type = #tpu.core_type<tc>, window_params = [{transform_indices = @transform_0, window_bounds = array<i64: 1, 256, 512>}, {pipeline_mode = #tpu.pipeline_mode<synchronous>, transform_indices = @transform_1, window_bounds = array<i64: 512, 3>}, {pipeline_mode = #tpu.pipeline_mode<synchronous>, transform_indices = @transform_2, window_bounds = array<i64: 1, 3>}, {transform_indices = @transform_3, window_bounds = array<i64: 1, 256, 3>}]} {
    %c0 = arith.constant 0 : index
    %c0_0 = arith.constant 0 : index
    %c0_1 = arith.constant 0 : index
    %0 = vector.load %arg1[%c0, %c0_0, %c0_1] : memref<1x256x512xbf16, #tpu.memory_space<vmem>>, vector<1x256x512xbf16>
    %1 = vector.shape_cast %0 : vector<1x256x512xbf16> to vector<256x512xbf16>
    %c0_2 = arith.constant 0 : index
    %c0_3 = arith.constant 0 : index
    %2 = vector.load %arg2[%c0_2, %c0_3] : memref<512x3xbf16, #tpu.memory_space<vmem>>, vector<512x3xbf16>
    %cst = arith.constant dense<0.000000e+00> : vector<256x3xf32>
    %3 = tpu.matmul %1, %2, %cst {dimension_numbers = #tpu.dot_dimension_numbers<[1], [0], [0], [1], [0, 0, 1, 1], [], []>} : vector<256x512xbf16>, vector<512x3xbf16>, vector<256x3xf32> -> vector<256x3xf32>
    %c0_4 = arith.constant 0 : index
    %c0_5 = arith.constant 0 : index
    %4 = vector.load %arg3[%c0_4, %c0_5] : memref<1x3xf32, #tpu.memory_space<vmem>>, vector<1x3xf32>
    %5 = vector.broadcast %4 : vector<1x3xf32> to vector<256x3xf32>
    %6 = arith.addf %3, %5 : vector<256x3xf32>
    %7 = math.tanh %6 : vector<256x3xf32>
    %c0_6 = arith.constant 0 : index
    %c0_7 = arith.constant 0 : index
    %c0_8 = arith.constant 0 : index
    %8 = vector.load %arg4[%c0_6, %c0_7, %c0_8] : memref<1x256x3xf32, #tpu.memory_space<vmem>>, vector<1x256x3xf32>
    %9 = vector.shape_cast %8 : vector<1x256x3xf32> to vector<256x3xf32>
    %10 = vector.shape_cast %7 : vector<256x3xf32> to vector<1x256x3xf32>
    tpu.vector_store %arg4[%c0_6, %c0_7, %c0_8], %10 {strides = array<i32>} : memref<1x256x3xf32, #tpu.memory_space<vmem>>, vector<1x256x3xf32>,
    return
  }
  func.func @transform_0(%arg0: i32) -> (i32, i32, i32) {
    %c0_i32 = arith.constant 0 : i32
    %c0_i32_0 = arith.constant 0 : i32
    %c0_i32_1 = arith.constant 0 : i32
    return %arg0, %c0_i32, %c0_i32_0 : i32, i32, i32
  }
  func.func @transform_1(%arg0: i32) -> (i32, i32) {
    %c0_i32 = arith.constant 0 : i32
    %c0_i32_0 = arith.constant 0 : i32
    %c0_i32_1 = arith.constant 0 : i32
    return %c0_i32, %c0_i32_0 : i32, i32
  }
  func.func @transform_2(%arg0: i32) -> (i32, i32) {
    %c0_i32 = arith.constant 0 : i32
    %c0_i32_0 = arith.constant 0 : i32
    %c0_i32_1 = arith.constant 0 : i32
    return %c0_i32, %c0_i32_0 : i32, i32
  }
  func.func @transform_3(%arg0: i32) -> (i32, i32, i32) {
    %c0_i32 = arith.constant 0 : i32
    %c0_i32_0 = arith.constant 0 : i32
    %c0_i32_1 = arith.constant 0 : i32
    return %arg0, %c0_i32, %c0_i32_0 : i32, i32, i32
  }
}

</mosaic_0001>

<bundles_post_ra>
// kernel: generator_forward.11
= control target key start
LH: loop header
LB: loop body
LE: loop exit
PB: predicated region body
PF: predicated region fallthrough
CT: control target
= control target key end

     0   :  { %s1392_s12 = smov 0   ;;  %s2100_s0 = inlined_call_operand.vmem [shape: bf16[2,256,256], index: 0, kind: input, shape index: {}]   ;;  %s2101_s1 = inlined_call_operand.vmem [shape: bf16[256,8], index: 1, kind: input, shape index: {}]   ;;  %s2102_s2 = inlined_call_operand.vmem [shape: f32[1,8], index: 2, kind: input, shape index: {}]   ;;  %s2103_s3 = inlined_call_operand.vmem [shape: bf16[2,256,8], index: 3, kind: output, shape index: {}]  }
   0x1 LB: > { %s1080_s13 = sadd.s32 4294967295, %s1369_s12   ;;  %p1084_p0 = scmp.ge.s32.totalorder %s1369_s12, 1  ;;  %s1369_s12 = sphi %s1392_s12, %s13_s12  }
   0x2   : > { %p137_p1 = scmp.lt.s32.totalorder %s1369_s12, 3 }
   0x4   : > { %p138_p2 = pnand %p1084_p0, %p137_p1 }
   0x5   : > { %p161_p3 = scmp.lt.s32.totalorder (!%p138_p2), %s1080_s13, 1 }
   0x6   : > { %141 = sbr.rel (%p138_p2) target bundleno = 481 (0x1e1), region = 32 }
   0xb   : > { %v1324_v0 = vld [vmem:[%s2101_s1 + $0x38] sm:$0xff]  ;;  %v1323_v2 = vld [vmem:[%s2101_s1 + $0x30] sm:$0xff]  ;;  %v1322_v4 = vld [vmem:[%s2101_s1 + $0x28] sm:$0xff]  ;;  %s2105_s13 = smov (!%p161_p3, %s1080_s13), 1  ;;  %vm673_vm0 = vcmask 64512   ;;  %vm992_vm5 = vcmask 60416  }
   0xc   : > { %v1332_v1 = vld [vmem:[%s2101_s1 + $0x78] sm:$0xff]  ;;  %495 = vmatpush.bf16.msra.mxu0 %v1324_v0  ;;  %v1331_v3 = vld [vmem:[%s2101_s1 + $0x70] sm:$0xff]  ;;  %1333 = vmatpush.bf16.msra.mxu2 %v1324_v0  ;;  %v1330_v5 = vld [vmem:[%s2101_s1 + $0x68] sm:$0xff]  ;;  %s1283_s11 = sshll.u32 %s2105_s13, 8  ;;  %s1284_s27 = sshll.u32 %s2105_s13, 7 }
   0xd   : > { %584 = vmatpush.bf16.msra.mxu1 %v1332_v1  ;;  %1341 = vmatpush.bf16.msra.mxu3 %v1332_v1  ;;  %v1321_v6 = vld [vmem:[%s2101_s1 + $0x20] sm:$0xff]  ;;  %v1320_v8 = vld [vmem:[%s2101_s1 + $0x18] sm:$0xff]  ;;  %v1319_v10 = vld [vmem:[%s2101_s1 + $0x10] sm:$0xff]  ;;  %s1452_s20 = scalar_lea.vmem %s2100_s0, %s1283_s11  ;;  %s1985_s30 = scalar_lea.vmem %s2103_s3, %s1284_s27 }
   0xe   : > { %v1329_v7 = vld [vmem:[%s2101_s1 + $0x60] sm:$0xff]  ;;  %v1328_v9 = vld [vmem:[%s2101_s1 + $0x58] sm:$0xff]  ;;  %v1327_v11 = vld [vmem:[%s2101_s1 + $0x50] sm:$0xff] }
   0xf   : > { %v1318_v12 = vld [vmem:[%s2101_s1 + $0x8] sm:$0xff]  ;;  %v1317_v14 = vld [vmem:[%s2101_s1] sm:$0xff]  ;;  %v1099_v28 = vld [vmem:[%s1452_s20 + $0x10] sm:$0xf] }
  0x10   : > { %496 = vmatpush.bf16.msra.mxu0 %v1323_v2  ;;  %1334 = vmatpush.bf16.msra.mxu2 %v1323_v2  ;;  %v1326_v13 = vld [vmem:[%s2101_s1 + $0x48] sm:$0xff]  ;;  %v1325_v15 = vld [vmem:[%s2101_s1 + $0x40] sm:$0xff]  ;;  %v1288_v29 = vld [vmem:[%s1452_s20 + $0x14] sm:$0xf0] }
  0x11   : > { %585 = vmatpush.bf16.msra.mxu1 %v1331_v3  ;;  %1342 = vmatpush.bf16.msra.mxu3 %v1331_v3  ;;  %v1091_v16 = vld [vmem:[%s1452_s20] sm:$0xf]  ;;  %v1286_v17 = vld [vmem:[%s1452_s20 + $0x4] sm:$0xf0]  ;;  %v1285_v18 = vld [vmem:[%s1452_s20 + $0x4] sm:$0xf]  ;;  %v1100_v36 = vor.u32 %v1288_v29, %v1099_v28 }
  0x12   : > { %v1093_v19 = vld [vmem:[%s1452_s20 + $0x8] sm:$0xf0]  ;;  %v1155_v20 = vld [vmem:[%s1452_s20 + $0x80] sm:$0xf]  ;;  %v1302_v21 = vld [vmem:[%s1452_s20 + $0x84] sm:$0xf0]  ;;  %v1092_v24 = vor.u32 %v1286_v17, %v1091_v16 }
  0x13   : > { %v1301_v22 = vld [vmem:[%s1452_s20 + $0x84] sm:$0xf]  ;;  %v1157_v23 = vld [vmem:[%s1452_s20 + $0x88] sm:$0xf0]  ;;  %v1096_v25 = vor.u32 %v1285_v18, %v1093_v19  ;;  %v1156_v26 = vor.u32 %v1302_v21, %v1155_v20  ;;  %v1287_v30 = vld [vmem:[%s1452_s20 + $0x14] sm:$0xf] }
  0x14   : > { %497 = vmatpush.bf16.msra.mxu0 %v1322_v4  ;;  %1335 = vmatpush.bf16.msra.mxu2 %v1322_v4  ;;  %v1160_v27 = vor.u32 %v1301_v22, %v1157_v23  ;;  %v1101_v31 = vld [vmem:[%s1452_s20 + $0x18] sm:$0xf0]  ;;  %v1163_v32 = vld [vmem:[%s1452_s20 + $0x90] sm:$0xf]  ;;  %v1304_v33 = vld [vmem:[%s1452_s20 + $0x94] sm:$0xf0] }
  0x15   : > { %586 = vmatpush.bf16.msra.mxu1 %v1330_v5  ;;  %1343 = vmatpush.bf16.msra.mxu3 %v1330_v5  ;;  %v1303_v34 = vld [vmem:[%s1452_s20 + $0x94] sm:$0xf]  ;;  %v1165_v35 = vld [vmem:[%s1452_s20 + $0x98] sm:$0xf0]  ;;  %v1104_v37 = vor.u32 %v1287_v30, %v1101_v31  ;;  %v1164_v38 = vor.u32 %v1304_v33, %v1163_v32  ;;  %v1107_v40 = vld [vmem:[%s1452_s20 + $0x20] sm:$0xf] }
  0x16   : > { %v1168_v39 = vor.u32 %v1303_v34, %v1165_v35  ;;  %v1290_v41 = vld [vmem:[%s1452_s20 + $0x24] sm:$0xf0]  ;;  %v1289_v42 = vld [vmem:[%s1452_s20 + $0x24] sm:$0xf]  ;;  %v1109_v43 = vld [vmem:[%s1452_s20 + $0x28] sm:$0xf0] }
  0x17   : > { %v1171_v44 = vld [vmem:[%s1452_s20 + $0xa0] sm:$0xf]  ;;  %v1306_v45 = vld [vmem:[%s1452_s20 + $0xa4] sm:$0xf0]  ;;  %v1305_v46 = vld [vmem:[%s1452_s20 + $0xa4] sm:$0xf]  ;;  %v1108_v48 = vor.u32 %v1290_v41, %v1107_v40  ;;  %v1112_v49 = vor.u32 %v1289_v42, %v1109_v43 }
  0x18   : > { %498 = vmatpush.bf16.msra.mxu0 %v1321_v6  ;;  %1336 = vmatpush.bf16.msra.mxu2 %v1321_v6  ;;  %v1173_v47 = vld [vmem:[%s1452_s20 + $0xa8] sm:$0xf0]  ;;  %v1172_v50 = vor.u32 %v1306_v45, %v1171_v44  ;;  %v1115_v52 = vld [vmem:[%s1452_s20 + $0x30] sm:$0xf]  ;;  %v1292_v53 = vld [vmem:[%s1452_s20 + $0x34] sm:$0xf0] }
  0x19   : > { %587 = vmatpush.bf16.msra.mxu1 %v1329_v7  ;;  %1344 = vmatpush.bf16.msra.mxu3 %v1329_v7  ;;  %v1176_v51 = vor.u32 %v1305_v46, %v1173_v47  ;;  %v1291_v54 = vld [vmem:[%s1452_s20 + $0x34] sm:$0xf]  ;;  %v1117_v55 = vld [vmem:[%s1452_s20 + $0x38] sm:$0xf0]  ;;  %v1179_v56 = vld [vmem:[%s1452_s20 + $0xb0] sm:$0xf]  ;;  %v1116_v60 = vor.u32 %v1292_v53, %v1115_v52 }
  0x1a   : > { %v1308_v57 = vld [vmem:[%s1452_s20 + $0xb4] sm:$0xf0]  ;;  %v1307_v58 = vld [vmem:[%s1452_s20 + $0xb4] sm:$0xf]  ;;  %v1181_v59 = vld [vmem:[%s1452_s20 + $0xb8] sm:$0xf0]  ;;  %v1120_v61 = vor.u32 %v1291_v54, %v1117_v55 }
  0x1b   : > { %v1180_v62 = vor.u32 %v1308_v57, %v1179_v56  ;;  %v1184_v63 = vor.u32 %v1307_v58, %v1181_v59  ;;  %v1123_v0 = vld [vmem:[%s1452_s20 + $0x40] sm:$0xf]  ;;  %v1294_v1 = vld [vmem:[%s1452_s20 + $0x44] sm:$0xf0]  ;;  %v1293_v2 = vld [vmem:[%s1452_s20 + $0x44] sm:$0xf] }
  0x1c   : > { %499 = vmatpush.bf16.msra.mxu0 %v1320_v8  ;;  %1337 = vmatpush.bf16.msra.mxu2 %v1320_v8  ;;  %v1125_v3 = vld [vmem:[%s1452_s20 + $0x48] sm:$0xf0]  ;;  %v1187_v4 = vld [vmem:[%s1452_s20 + $0xc0] sm:$0xf]  ;;  %v1310_v5 = vld [vmem:[%s1452_s20 + $0xc4] sm:$0xf0]  ;;  %v1124_v8 = vor.u32 %v1294_v1, %v1123_v0 }
  0x1d   : > { %588 = vmatpush.bf16.msra.mxu1 %v1328_v9  ;;  %1345 = vmatpush.bf16.msra.mxu3 %v1328_v9  ;;  %v1309_v6 = vld [vmem:[%s1452_s20 + $0xc4] sm:$0xf]  ;;  %v1189_v7 = vld [vmem:[%s1452_s20 + $0xc8] sm:$0xf0]  ;;  %v1128_v9 = vor.u32 %v1293_v2, %v1125_v3  ;;  %v1195_v16 = vld [vmem:[%s1452_s20 + $0xd0] sm:$0xf] }
  0x1e   : > { %v1312_v17 = vld [vmem:[%s1452_s20 + $0xd4] sm:$0xf0]  ;;  %v1311_v18 = vld [vmem:[%s1452_s20 + $0xd4] sm:$0xf]  ;;  %v1197_v19 = vld [vmem:[%s1452_s20 + $0xd8] sm:$0xf0] }
  0x1f   : > { %v1196_v22 = vor.u32 %v1312_v17, %v1195_v16  ;;  %v1200_v23 = vor.u32 %v1311_v18, %v1197_v19  ;;  %v1203_v28 = vld [vmem:[%s1452_s20 + $0xe0] sm:$0xf]  ;;  %v1314_v29 = vld [vmem:[%s1452_s20 + $0xe4] sm:$0xf0]  ;;  %v1313_v30 = vld [vmem:[%s1452_s20 + $0xe4] sm:$0xf] }
  0x20   : > { %500 = vmatpush.bf16.msra.mxu0 %v1319_v10  ;;  %1338 = vmatpush.bf16.msra.mxu2 %v1319_v10  ;;  %v1188_v10 = vor.u32 %v1310_v5, %v1187_v4  ;;  %v1205_v31 = vld [vmem:[%s1452_s20 + $0xe8] sm:$0xf0]  ;;  %v1204_v34 = vor.u32 %v1314_v29, %v1203_v28  ;;  %v1211_v40 = vld [vmem:[%s1452_s20 + $0xf0] sm:$0xf]  ;;  %v1316_v41 = vld [vmem:[%s1452_s20 + $0xf4] sm:$0xf0] }
  0x21   : > { %589 = vmatpush.bf16.msra.mxu1 %v1327_v11  ;;  %1346 = vmatpush.bf16.msra.mxu3 %v1327_v11  ;;  %v1192_v11 = vor.u32 %v1309_v6, %v1189_v7  ;;  %v1208_v35 = vor.u32 %v1313_v30, %v1205_v31  ;;  %v1315_v42 = vld [vmem:[%s1452_s20 + $0xf4] sm:$0xf]  ;;  %v1213_v43 = vld [vmem:[%s1452_s20 + $0xf8] sm:$0xf0]  ;;  %v1212_v46 = vor.u32 %v1316_v41, %v1211_v40 }
  0x22   : > { %v1216_v47 = vor.u32 %v1315_v42, %v1213_v43 }
  0x24   : > { %501 = vmatpush.bf16.msra.mxu0 %v1318_v12  ;;  %1339 = vmatpush.bf16.msra.mxu2 %v1318_v12  ;;  %v1131_v12 = vld [vmem:[%s1452_s20 + $0x50] sm:$0xf] }
  0x25   : > { %590 = vmatpush.bf16.msra.mxu1 %v1326_v13  ;;  %1347 = vmatpush.bf16.msra.mxu3 %v1326_v13  ;;  %v1296_v13 = vld [vmem:[%s1452_s20 + $0x54] sm:$0xf0] }
  0x26   : > { %v1132_v20 = vor.u32 %v1296_v13, %v1131_v12 }
  0x28   : > { %502 = vmatpush.bf16.msra.mxu0 %v1317_v14  ;;  %1340 = vmatpush.bf16.msra.mxu2 %v1317_v14  ;;  %v1295_v14 = vld [vmem:[%s1452_s20 + $0x54] sm:$0xf] }
  0x29   : > { %591 = vmatpush.bf16.msra.mxu1 %v1325_v15  ;;  %1348 = vmatpush.bf16.msra.mxu3 %v1325_v15  ;;  %v1133_v15 = vld [vmem:[%s1452_s20 + $0x58] sm:$0xf0] }
  0x2a   : > { %v1136_v21 = vor.u32 %v1295_v14, %v1133_v15 }
  0x2b   : > { %503 = vmatmul.bf16.vlgmr.msra.gmra.mxu0 %v1092_v24  ;;  %543 = vmatmul.bf16.vlgmr.msra.gmra.mxu2 %v1156_v26  ;;  %v1139_v24 = vld [vmem:[%s1452_s20 + $0x60] sm:$0xf]  ;;  %v1297_v26 = vld [vmem:[%s1452_s20 + $0x64] sm:$0xf] }
  0x2c   : > { %592 = vmatmul.bf16.vlgmr.msra.gmra.mxu1 %v1096_v25  ;;  %632 = vmatmul.bf16.vlgmr.msra.gmra.mxu3 %v1160_v27  ;;  %v1298_v25 = vld [vmem:[%s1452_s20 + $0x64] sm:$0xf0]  ;;  %v1141_v27 = vld [vmem:[%s1452_s20 + $0x68] sm:$0xf0] }
  0x2d   : > { %v1140_v32 = vor.u32 %v1298_v25, %v1139_v24  ;;  %v1144_v33 = vor.u32 %v1297_v26, %v1141_v27 }
  0x3b   : > { %508 = vmatmul.bf16.gmra.mxu0 %v1100_v36  ;;  %548 = vmatmul.bf16.gmra.mxu2 %v1164_v38  ;;  %v1147_v36 = vld [vmem:[%s1452_s20 + $0x70] sm:$0xf]  ;;  %v1299_v38 = vld [vmem:[%s1452_s20 + $0x74] sm:$0xf] }
  0x3c   : > { %597 = vmatmul.bf16.gmra.mxu1 %v1104_v37  ;;  %637 = vmatmul.bf16.gmra.mxu3 %v1168_v39  ;;  %v1300_v37 = vld [vmem:[%s1452_s20 + $0x74] sm:$0xf0]  ;;  %v1149_v39 = vld [vmem:[%s1452_s20 + $0x78] sm:$0xf0] }
  0x3d   : > { %v1148_v44 = vor.u32 %v1300_v37, %v1147_v36  ;;  %v1152_v45 = vor.u32 %v1299_v38, %v1149_v39 }
  0x4b   : > { %513 = vmatmul.bf16.gmra.mxu0 %v1108_v48  ;;  %553 = vmatmul.bf16.gmra.mxu2 %v1172_v50  ;;  %v1527_v48 = vld [vmem:[%s2102_s2] ss:$0 sm:$0xff] }
  0x4c   : > { %602 = vmatmul.bf16.gmra.mxu1 %v1112_v49  ;;  %642 = vmatmul.bf16.gmra.mxu3 %v1176_v51 }
  0x5b   : > { %518 = vmatmul.bf16.gmra.mxu0 %v1116_v60  ;;  %558 = vmatmul.bf16.gmra.mxu2 %v1180_v62 }
  0x5c   : > { %607 = vmatmul.bf16.gmra.mxu1 %v1120_v61  ;;  %647 = vmatmul.bf16.gmra.mxu3 %v1184_v63 }
  0x6b   : > { %523 = vmatmul.bf16.gmra.mxu0 %v1124_v8  ;;  %563 = vmatmul.bf16.gmra.mxu2 %v1188_v10 }
  0x6c   : > { %612 = vmatmul.bf16.gmra.mxu1 %v1128_v9  ;;  %652 = vmatmul.bf16.gmra.mxu3 %v1192_v11 }
  0x7b   : > { %528 = vmatmul.bf16.gmra.mxu0 %v1132_v20  ;;  %568 = vmatmul.bf16.gmra.mxu2 %v1196_v22 }
  0x7c   : > { %617 = vmatmul.bf16.gmra.mxu1 %v1136_v21  ;;  %657 = vmatmul.bf16.gmra.mxu3 %v1200_v23 }
  0x8b   : > { %533 = vmatmul.bf16.gmra.mxu0 %v1140_v32  ;;  %573 = vmatmul.bf16.gmra.mxu2 %v1204_v34 }
  0x8c   : > { %622 = vmatmul.bf16.gmra.mxu1 %v1144_v33  ;;  %662 = vmatmul.bf16.gmra.mxu3 %v1208_v35 }
  0x9b   : > { %538 = vmatmul.bf16.gmra.mxu0 %v1148_v44  ;;  %578 = vmatmul.bf16.gmra.mxu2 %v1212_v46 }
  0x9c   : > { %627 = vmatmul.bf16.gmra.mxu1 %v1152_v45  ;;  %667 = vmatmul.bf16.gmra.mxu3 %v1216_v47 }
  0xa8   : > { %v504_v49 = vpop.f32.mrf.mxu0 }
  0xa9   : > { %v593_v50 = vpop.f32.mrf.mxu1  ;;  %v505_v51 = vadd.f32 %v1527_v48, %v504_v49 }
  0xab   : > { %v1530_v52 = vadd.f32 %v593_v50, %v505_v51 }
  0xae   : > { %v544_v53 = vpop.f32.mrf.mxu2 }
  0xaf   : > { %v633_v54 = vpop.f32.mrf.mxu3  ;;  %v545_v57 = vadd.f32 %v1527_v48, %v544_v53 }
  0xb0   : > { %v506_v55 = vpop.f32.mrf.mxu0 }
  0xb1   : > { %v595_v56 = vpop.f32.mrf.mxu1  ;;  %v507_v58 = vadd.f32 %v1527_v48, %v506_v55  ;;  %v1534_v59 = vadd.f32 %v633_v54, %v545_v57 }
  0xb3   : > { %v1536_v60 = vadd.f32 %v595_v56, %v507_v58  ;;  %v674_v56 = vsel %vm673_vm0, %v1530_v52, 0.0 }
  0xb5   : > { %v675_v50 = vsel %vm673_vm0, %v1536_v60, 0.0 }
  0xb6   : > { %v546_v61 = vpop.f32.mrf.mxu2 }
  0xb7   : > { %v635_v62 = vpop.f32.mrf.mxu3  ;;  %v547_v1 = vadd.f32 %v1527_v48, %v546_v61  ;;  %v676_v61 = vadd.f32 %v675_v50, %v674_v56 }
  0xb8   : > { %v509_v63 = vpop.f32.mrf.mxu0 }
  0xb9   : > { %v598_v0 = vpop.f32.mrf.mxu1  ;;  %v510_v2 = vadd.f32 %v1527_v48, %v509_v63  ;;  %v1540_v3 = vadd.f32 %v635_v62, %v547_v1 }
  0xbb   : > { %v1542_v4 = vadd.f32 %v598_v0, %v510_v2 }
  0xbd   : > { %v677_v57 = vsel %vm673_vm0, %v1542_v4, 0.0 }
  0xbe   : > { %v549_v5 = vpop.f32.mrf.mxu2  ;;  %v678_v1 = vadd.f32 %v677_v57, %v676_v61 }
  0xbf   : > { %v638_v6 = vpop.f32.mrf.mxu3  ;;  %v550_v9 = vadd.f32 %v1527_v48, %v549_v5 }
  0xc0   : > { %v511_v7 = vpop.f32.mrf.mxu0 }
  0xc1   : > { %v600_v8 = vpop.f32.mrf.mxu1  ;;  %v512_v10 = vadd.f32 %v1527_v48, %v511_v7  ;;  %v1546_v11 = vadd.f32 %v638_v6, %v550_v9 }
  0xc3   : > { %v1548_v12 = vadd.f32 %v600_v8, %v512_v10 }
  0xc5   : > { %v679_v62 = vsel %vm673_vm0, %v1548_v12, 0.0 }
  0xc6   : > { %v551_v13 = vpop.f32.mrf.mxu2  ;;  %v680_v8 = vadd.f32 %v679_v62, %v678_v1 }
  0xc7   : > { %v640_v14 = vpop.f32.mrf.mxu3  ;;  %v552_v17 = vadd.f32 %v1527_v48, %v551_v13 }
  0xc8   : > { %v514_v15 = vpop.f32.mrf.mxu0 }
  0xc9   : > { %v603_v16 = vpop.f32.mrf.mxu1  ;;  %v515_v18 = vadd.f32 %v1527_v48, %v514_v15  ;;  %v1552_v19 = vadd.f32 %v640_v14, %v552_v17 }
  0xcb   : > { %v1554_v20 = vadd.f32 %v603_v16, %v515_v18 }
  0xcd   : > { %v681_v5 = vsel %vm673_vm0, %v1554_v20, 0.0 }
  0xce   : > { %v554_v21 = vpop.f32.mrf.mxu2  ;;  %v682_v14 = vadd.f32 %v681_v5, %v680_v8 }
  0xcf   : > { %v643_v22 = vpop.f32.mrf.mxu3  ;;  %v555_v25 = vadd.f32 %v1527_v48, %v554_v21 }
  0xd0   : > { %v516_v23 = vpop.f32.mrf.mxu0 }
  0xd1   : > { %v605_v24 = vpop.f32.mrf.mxu1  ;;  %v1557_v26 = vadd.f32 %v643_v22, %v555_v25  ;;  %v517_v51 = vadd.f32 %v1527_v48, %v516_v23 }
  0xd3   : > { %v1591_v63 = vadd.f32 %v605_v24, %v517_v51 }
  0xd5   : > { %v683_v9 = vsel %vm673_vm0, %v1591_v63, 0.0 }
  0xd6   : > { %v1559_v27 = vpop.f32.mrf.mxu2  ;;  %v684_v22 = vadd.f32 %v683_v9, %v682_v14 }
  0xd7   : > { %v1561_v30 = vpop.f32.mrf.mxu3 }
  0xd8   : > { %v519_v28 = vpop.f32.mrf.mxu0 }
  0xd9   : > { %v608_v29 = vpop.f32.mrf.mxu1  ;;  %v520_v58 = vadd.f32 %v1527_v48, %v519_v28 }
  0xdb   : > { %v1598_v6 = vadd.f32 %v608_v29, %v520_v58 }
  0xdd   : > { %v685_v17 = vsel %vm673_vm0, %v1598_v6, 0.0 }
  0xde   : > { %v1563_v31 = vpop.f32.mrf.mxu2  ;;  %v686_v29 = vadd.f32 %v685_v17, %v684_v22 }
  0xdf   : > { %v1565_v34 = vpop.f32.mrf.mxu3 }
  0xe0   : > { %v521_v32 = vpop.f32.mrf.mxu0 }
  0xe1   : > { %v610_v33 = vpop.f32.mrf.mxu1  ;;  %v522_v0 = vadd.f32 %v1527_v48, %v521_v32 }
  0xe3   : > { %v1603_v10 = vadd.f32 %v610_v33, %v522_v0 }
  0xe5   : > { %v687_v24 = vsel %vm673_vm0, %v1603_v10, 0.0 }
  0xe6   : > { %v1567_v37 = vpop.f32.mrf.mxu2 }
  0xe7   : > { %v1569_v38 = vpop.f32.mrf.mxu3 }
  0xe8   : > { %v524_v35 = vpop.f32.mrf.mxu0 }
  0xe9   : > { %v613_v36 = vpop.f32.mrf.mxu1  ;;  %v525_v7 = vadd.f32 %v1527_v48, %v524_v35 }
  0xeb   : > { %v1608_v18 = vadd.f32 %v613_v36, %v525_v7  ;;  %v688_v36 = vadd.f32 %v687_v24, %v686_v29 }
  0xed   : > { %v689_v32 = vsel %vm673_vm0, %v1608_v18, 0.0 }
  0xee   : > { %v1571_v41 = vpop.f32.mrf.mxu2  ;;  %v690_v51 = vadd.f32 %v689_v32, %v688_v36  ;;  %v705_v32 = vsel %vm673_vm0, %v1534_v59, 0.0  ;;  %v707_v36 = vsel %vm673_vm0, %v1540_v3, 0.0 }
  0xef   : > { %v1573_v42 = vpop.f32.mrf.mxu3 }
  0xf0   : > { %v526_v39 = vpop.f32.mrf.mxu0 }
  0xf1   : > { %v615_v40 = vpop.f32.mrf.mxu1  ;;  %v527_v13 = vadd.f32 %v1527_v48, %v526_v39 }
  0xf3   : > { %v1615_v25 = vadd.f32 %v615_v40, %v527_v13 }
  0xf6   : > { %v1575_v45 = vpop.f32.mrf.mxu2 }
  0xf7   : > { %v1577_v49 = vpop.f32.mrf.mxu3 }
  0xf8   : > { %v529_v43 = vpop.f32.mrf.mxu0 }
  0xf9   : > { %v618_v44 = vpop.f32.mrf.mxu1  ;;  %v530_v21 = vadd.f32 %v1527_v48, %v529_v43  ;;  %v691_v43 = vsel %vm673_vm0, %v1615_v25, 0.0 }
  0xfa   : > { %v692_v58 = vadd.f32 %v691_v43, %v690_v51  ;;  %v557_v43 = vadd.f32 %v1527_v48, %v1559_v27  ;;  %v713_v27 = vsel %vm673_vm0, %v1557_v26, 0.0 }
  0xfb   : > { %v1620_v33 = vadd.f32 %v618_v44, %v530_v21 }
  0xfd   : > { %v693_v57 = vsel %vm673_vm0, %v1620_v33, 0.0 }
  0xfe   : > { %v1582_v53 = vpop.f32.mrf.mxu2 }
  0xff   : > { %v1594_v2 = vpop.f32.mrf.mxu3 }
 0x100   : > { %v531_v46 = vpop.f32.mrf.mxu0 }
 0x101   : > { %v620_v47 = vpop.f32.mrf.mxu1  ;;  %v532_v28 = vadd.f32 %v1527_v48, %v531_v46 }
 0x103   : > { %v1627_v50 = vadd.f32 %v620_v47, %v532_v28  ;;  %v694_v47 = vadd.f32 %v693_v57, %v692_v58  ;;  %v1665_v58 = vadd.f32 %v1561_v30, %v557_v43 }
 0x105   : > { %v695_v61 = vsel %vm673_vm0, %v1627_v50, 0.0 }
 0x106   : > { %v1611_v23 = vpop.f32.mrf.mxu2  ;;  %v696_v7 = vadd.f32 %v695_v61, %v694_v47  ;;  %v562_v61 = vadd.f32 %v1527_v48, %v1567_v37  ;;  %v567_v37 = vadd.f32 %v1527_v48, %v1575_v45 }
 0x107   : > { %v1623_v39 = vpop.f32.mrf.mxu3  ;;  %v572_v45 = vadd.f32 %v1527_v48, %v1611_v23 }
 0x108   : > { %v534_v54 = vpop.f32.mrf.mxu0  ;;  %v1679_v30 = vadd.f32 %v1569_v38, %v562_v61  ;;  %v1693_v38 = vadd.f32 %v1577_v49, %v567_v37 }
 0x109   : > { %v623_v55 = vpop.f32.mrf.mxu1  ;;  %v535_v35 = vadd.f32 %v1527_v48, %v534_v54 }
 0x10b   : > { %v1632_v44 = vadd.f32 %v623_v55, %v535_v35 }
 0x10d   : > { %v697_v1 = vsel %vm673_vm0, %v1632_v44, 0.0 }
 0x10e   : > { %v574_v0 = vpop.f32.mrf.mxu2  ;;  %v698_v8 = vadd.f32 %v697_v1, %v696_v7 }
 0x10f   : > { %v663_v13 = vpop.f32.mrf.mxu3 }
 0x110   : > { %v536_v15 = vpop.f32.mrf.mxu0 }
 0x111   : > { %v625_v16 = vpop.f32.mrf.mxu1  ;;  %v537_v40 = vadd.f32 %v1527_v48, %v536_v15 }
 0x113   : > { %v1637_v62 = vadd.f32 %v625_v16, %v537_v40 }
 0x115   : > { %v699_v55 = vsel %vm673_vm0, %v1637_v62, 0.0 }
 0x116   : > { %v700_v16 = vadd.f32 %v699_v55, %v698_v8  ;;  %v576_v29 = vpop.f32.mrf.mxu2  ;;  %v715_v8 = vsel %vm673_vm0, %v1665_v58, 0.0 }
 0x117   : > { %v665_v51 = vpop.f32.mrf.mxu3  ;;  %v577_v49 = vadd.f32 %v1527_v48, %v576_v29  ;;  %v1371_v29 = vmov 256.0  }
 0x118   : > { %v539_v46 = vpop.f32.mrf.mxu0  ;;  %1359 = vrcp.f32 %v1371_v29 }
 0x119   : > { %v628_v56 = vpop.f32.mrf.mxu1  ;;  %v540_v54 = vadd.f32 %v1527_v48, %v539_v46  ;;  %v709_v46 = vsel %vm673_vm0, %v1546_v11, 0.0 }
 0x11b   : > { %v1641_v5 = vadd.f32 %v628_v56, %v540_v54  ;;  %v560_v56 = vadd.f32 %v1527_v48, %v1563_v31  ;;  %v711_v54 = vsel %vm673_vm0, %v1552_v19, 0.0  ;;  %v565_v31 = vadd.f32 %v1527_v48, %v1571_v41 }
 0x11c   : > { %v570_v41 = vadd.f32 %v1527_v48, %v1582_v53  ;;  %v575_v53 = vadd.f32 %v1527_v48, %v574_v0 }
 0x11d   : > { %v701_v14 = vsel %vm673_vm0, %v1641_v5, 0.0  ;;  %v1672_v1 = vadd.f32 %v1565_v34, %v560_v56  ;;  %v1686_v34 = vadd.f32 %v1573_v42, %v565_v31  ;;  %v1716_v56 = vadd.f32 %v665_v51, %v577_v49 }
 0x11e   : > { %v702_v22 = vadd.f32 %v701_v14, %v700_v16  ;;  %v579_v55 = vpop.f32.mrf.mxu2  ;;  %v1700_v42 = vadd.f32 %v1594_v2, %v570_v41 }
 0x11f   : > { %v717_v14 = vsel %vm673_vm0, %v1672_v1, 0.0  ;;  %v668_v16 = vpop.f32.mrf.mxu3  ;;  %v580_v2 = vadd.f32 %v1527_v48, %v579_v55 }
 0x120   : > { %v541_v9 = vpop.f32.mrf.mxu0  ;;  %v725_v43 = vsel %vm673_vm0, %v1700_v42, 0.0 }
 0x121   : > { %v542_v15 = vadd.f32 %v1527_v48, %v541_v9  ;;  %v630_v17 = vpop.f32.mrf.mxu1 }
 0x123   : > { %v1648_v21 = vadd.f32 %v630_v17, %v542_v15  ;;  %v719_v17 = vsel %vm673_vm0, %v1679_v30, 0.0 }
 0x125   : > { %v703_v24 = vsel %vm673_vm0, %v1648_v21, 0.0 }
 0x126   : > { %v704_v28 = vadd.f32 %v703_v24, %v702_v22  ;;  %v721_v24 = vsel %vm673_vm0, %v1686_v34, 0.0  ;;  %v581_v23 = vpop.f32.mrf.mxu2 }
 0x128   : > { %v706_v35 = vadd.f32 %v705_v32, %v704_v28  ;;  %v723_v32 = vsel %vm673_vm0, %v1693_v38, 0.0 }
 0x12a   : > { %v708_v40 = vadd.f32 %v707_v36, %v706_v35  ;;  %v1706_v35 = vadd.f32 %v1623_v39, %v572_v45  ;;  %v582_v39 = vadd.f32 %v1527_v48, %v581_v23  ;;  %v1360_v48 = vpop.eup %1359 }
 0x12b   : > { %vm748_vm1 = vweird.f32 %v1360_v48 }
 0x12c   : > { %v710_v57 = vadd.f32 %v709_v46, %v708_v40  ;;  %v1711_v40 = vadd.f32 %v663_v13, %v575_v53  ;;  %v727_v0 = vsel %vm673_vm0, %v1706_v35, 0.0 }
 0x12e   : > { %v712_v47 = vadd.f32 %v711_v54, %v710_v57  ;;  %v670_v54 = vpop.f32.mrf.mxu3  ;;  %v729_v61 = vsel %vm673_vm0, %v1711_v40, 0.0 }
 0x12f   : > { %v1725_v31 = vadd.f32 %v670_v54, %v582_v39 }
 0x130   : > { %v714_v7 = vadd.f32 %v713_v27, %v712_v47  ;;  %v1721_v47 = vadd.f32 %v668_v16, %v580_v2  ;;  %v731_v27 = vsel %vm673_vm0, %v1716_v56, 0.0 }
 0x132   : > { %v716_v9 = vadd.f32 %v715_v8, %v714_v7  ;;  %v733_v51 = vsel %vm673_vm0, %v1721_v47, 0.0  ;;  %v735_v8 = vsel %vm673_vm0, %v1725_v31, 0.0 }
 0x134   : > { %v718_v15 = vadd.f32 %v717_v14, %v716_v9  ;;  %v744_v9 = vmul.f32 256.0, %v1360_v48 }
 0x136   : > { %v720_v22 = vadd.f32 %v719_v17, %v718_v15  ;;  %v745_v15 = vsub.f32 1.0, %v744_v9 }
 0x138   : > { %v722_v28 = vadd.f32 %v721_v24, %v720_v22  ;;  %v746_v45 = vmul.f32 %v1360_v48, %v745_v15 }
 0x13a   : > { %v724_v36 = vadd.f32 %v723_v32, %v722_v28  ;;  %v747_v24 = vadd.f32 %v1360_v48, %v746_v45 }
 0x13c   : > { %v726_v46 = vadd.f32 %v725_v43, %v724_v36  ;;  %v1731_v28 = vsel %vm748_vm1, %v1360_v48, %v747_v24 }
 0x13e   : > { %v728_v57 = vadd.f32 %v727_v0, %v726_v46 }
 0x140   : > { %v730_v13 = vadd.f32 %v729_v61, %v728_v57 }
 0x142   : > { %v732_v7 = vadd.f32 %v731_v27, %v730_v13 }
 0x144   : > { %v734_v55 = vadd.f32 %v733_v51, %v732_v7 }
 0x146   : > { %v736_v37 = vadd.f32 %v735_v8, %v734_v55 }
 0x148   : > { %v737_v14 = vrot.slane %v736_v37, 4 }
 0x14a   : > { %v738_v41 = vadd.f32 %v737_v14, %v736_v37 }
 0x14c   : > { %v739_v16 = vrot.slane %v738_v41, 2 }
 0x14e   : > { %v740_v17 = vadd.f32 %v739_v16, %v738_v41 }
 0x150   : > { %v741_v22 = vrot.slane %v740_v17, 1 }
 0x152   : > { %v742_v53 = vadd.f32 %v741_v22, %v740_v17 }
 0x154   : > { %v1734_v32 = vmul.f32 %v1731_v28, %v742_v53 }
 0x156   : > { %v1738_v49 = vsub.f32 %v1530_v52, %v1734_v32  ;;  %v1742_v36 = vsub.f32 %v1536_v60, %v1734_v32  ;;  %v1746_v23 = vsub.f32 %v1542_v4, %v1734_v32  ;;  %v1750_v43 = vsub.f32 %v1548_v12, %v1734_v32 }
 0x157   : > { %v1758_v52 = vsub.f32 %v1554_v20, %v1734_v32  ;;  %v1764_v4 = vsub.f32 %v1591_v63, %v1734_v32  ;;  %v1772_v54 = vsub.f32 %v1598_v6, %v1734_v32  ;;  %v1779_v63 = vsub.f32 %v1603_v10, %v1734_v32 }
 0x158   : > { %v783_v2 = vmul.f32 %v1738_v49, %v1738_v49  ;;  %v784_v46 = vmul.f32 %v1742_v36, %v1742_v36  ;;  %v785_v60 = vmul.f32 %v1746_v23, %v1746_v23  ;;  %v786_v12 = vmul.f32 %v1750_v43, %v1750_v43 }
 0x159   : > { %v787_v20 = vmul.f32 %v1758_v52, %v1758_v52  ;;  %v788_v13 = vmul.f32 %v1764_v4, %v1764_v4  ;;  %v1786_v6 = vsub.f32 %v1608_v18, %v1734_v32  ;;  %v789_v51 = vmul.f32 %v1772_v54, %v1772_v54 }
 0x15a   : > { %v815_v0 = vsel %vm673_vm0, %v783_v2, 0.0  ;;  %v816_v39 = vsel %vm673_vm0, %v784_v46, 0.0  ;;  %v818_v29 = vsel %vm673_vm0, %v785_v60, 0.0  ;;  %v820_v27 = vsel %vm673_vm0, %v786_v12, 0.0 }
 0x15b   : > { %v817_v57 = vadd.f32 %v816_v39, %v815_v0  ;;  %v822_v48 = vsel %vm673_vm0, %v787_v20, 0.0  ;;  %v1793_v10 = vsub.f32 %v1615_v25, %v1734_v32  ;;  %v790_v8 = vmul.f32 %v1779_v63, %v1779_v63 }
 0x15c   : > { %v824_v37 = vsel %vm673_vm0, %v788_v13, 0.0  ;;  %v1800_v18 = vsub.f32 %v1620_v33, %v1734_v32  ;;  %v791_v14 = vmul.f32 %v1786_v6, %v1786_v6  ;;  %v826_v41 = vsel %vm673_vm0, %v789_v51, 0.0 }
 0x15d   : > { %v819_v61 = vadd.f32 %v818_v29, %v817_v57  ;;  %v1807_v25 = vsub.f32 %v1627_v50, %v1734_v32  ;;  %v792_v16 = vmul.f32 %v1793_v10, %v1793_v10  ;;  %v828_v17 = vsel %vm673_vm0, %v790_v8, 0.0 }
 0x15e   : > { %v1814_v33 = vsub.f32 %v1632_v44, %v1734_v32  ;;  %v793_v22 = vmul.f32 %v1800_v18, %v1800_v18  ;;  %v830_v24 = vsel %vm673_vm0, %v791_v14, 0.0  ;;  %v1821_v50 = vsub.f32 %v1637_v62, %v1734_v32 }
 0x15f   : > { %v821_v7 = vadd.f32 %v820_v27, %v819_v61  ;;  %v794_v2 = vmul.f32 %v1807_v25, %v1807_v25  ;;  %v832_v46 = vsel %vm673_vm0, %v792_v16, 0.0  ;;  %v1828_v44 = vsub.f32 %v1641_v5, %v1734_v32 }
 0x160   : > { %v795_v12 = vmul.f32 %v1814_v33, %v1814_v33  ;;  %v834_v0 = vsel %vm673_vm0, %v793_v22, 0.0  ;;  %v1835_v62 = vsub.f32 %v1648_v21, %v1734_v32  ;;  %v796_v57 = vmul.f32 %v1821_v50, %v1821_v50 }
 0x161   : > { %v823_v55 = vadd.f32 %v822_v48, %v821_v7  ;;  %v836_v20 = vsel %vm673_vm0, %v794_v2, 0.0  ;;  %v1842_v5 = vsub.f32 %v1534_v59, %v1734_v32  ;;  %v797_v61 = vmul.f32 %v1828_v44, %v1828_v44 }
 0x162   : > { %v838_v13 = vsel %vm673_vm0, %v795_v12, 0.0  ;;  %v1849_v21 = vsub.f32 %v1540_v3, %v1734_v32  ;;  %v798_v7 = vmul.f32 %v1835_v62, %v1835_v62  ;;  %v840_v51 = vsel %vm673_vm0, %v796_v57, 0.0 }
 0x163   : > { %v825_v9 = vadd.f32 %v824_v37, %v823_v55  ;;  %v1856_v59 = vsub.f32 %v1546_v11, %v1734_v32  ;;  %v799_v55 = vmul.f32 %v1842_v5, %v1842_v5  ;;  %v842_v8 = vsel %vm673_vm0, %v797_v61, 0.0 }
 0x164   : > { %v1863_v3 = vsub.f32 %v1552_v19, %v1734_v32  ;;  %v844_v14 = vsel %vm673_vm0, %v798_v7, 0.0  ;;  %v1870_v11 = vsub.f32 %v1557_v26, %v1734_v32  ;;  %v1877_v19 = vsub.f32 %v1665_v58, %v1734_v32 }
 0x165   : > { %v827_v15 = vadd.f32 %v826_v41, %v825_v9  ;;  %v800_v9 = vmul.f32 %v1849_v21, %v1849_v21  ;;  %v846_v16 = vsel %vm673_vm0, %v799_v55, 0.0  ;;  %v1884_v26 = vsub.f32 %v1672_v1, %v1734_v32 }
 0x166   : > { %v1891_v58 = vsub.f32 %v1679_v30, %v1734_v32  ;;  %v1898_v1 = vsub.f32 %v1686_v34, %v1734_v32  ;;  %v1905_v30 = vsub.f32 %v1693_v38, %v1734_v32  ;;  %v1912_v34 = vsub.f32 %v1700_v42, %v1734_v32 }
 0x167   : > { %v829_v45 = vadd.f32 %v828_v17, %v827_v15  ;;  %v801_v15 = vmul.f32 %v1856_v59, %v1856_v59  ;;  %v848_v22 = vsel %vm673_vm0, %v800_v9, 0.0  ;;  %v1919_v38 = vsub.f32 %v1706_v35, %v1734_v32 }
 0x168   : > { %v1926_v42 = vsub.f32 %v1711_v40, %v1734_v32  ;;  %v1933_v35 = vsub.f32 %v1716_v56, %v1734_v32  ;;  %v1940_v40 = vsub.f32 %v1721_v47, %v1734_v32  ;;  %v1947_v56 = vsub.f32 %v1725_v31, %v1734_v32 }
 0x169   : > { %v831_v53 = vadd.f32 %v830_v24, %v829_v45  ;;  %v802_v45 = vmul.f32 %v1863_v3, %v1863_v3  ;;  %v850_v2 = vsel %vm673_vm0, %v801_v15, 0.0 }
 0x16a   : > { %v813_v47 = vmul.f32 %v1940_v40, %v1940_v40 }
 0x16b   : > { %v833_v60 = vadd.f32 %v832_v46, %v831_v53  ;;  %v803_v53 = vmul.f32 %v1870_v11, %v1870_v11  ;;  %v852_v12 = vsel %vm673_vm0, %v802_v45, 0.0 }
 0x16c   : > { %v874_v31 = vsel %vm673_vm0, %v813_v47, 0.0 }
 0x16d   : > { %v835_v39 = vadd.f32 %v834_v0, %v833_v60  ;;  %v804_v60 = vmul.f32 %v1877_v19, %v1877_v19  ;;  %v854_v57 = vsel %vm673_vm0, %v803_v53, 0.0 }
 0x16f   : > { %v837_v29 = vadd.f32 %v836_v20, %v835_v39  ;;  %v805_v39 = vmul.f32 %v1884_v26, %v1884_v26  ;;  %v856_v61 = vsel %vm673_vm0, %v804_v60, 0.0 }
 0x171   : > { %v839_v27 = vadd.f32 %v838_v13, %v837_v29  ;;  %v806_v29 = vmul.f32 %v1891_v58, %v1891_v58  ;;  %v858_v7 = vsel %vm673_vm0, %v805_v39, 0.0 }
 0x173   : > { %v841_v48 = vadd.f32 %v840_v51, %v839_v27  ;;  %v807_v27 = vmul.f32 %v1898_v1, %v1898_v1  ;;  %v860_v55 = vsel %vm673_vm0, %v806_v29, 0.0 }
 0x175   : > { %v843_v37 = vadd.f32 %v842_v8, %v841_v48  ;;  %v808_v48 = vmul.f32 %v1905_v30, %v1905_v30  ;;  %v862_v9 = vsel %vm673_vm0, %v807_v27, 0.0 }
 0x177   : > { %v845_v41 = vadd.f32 %v844_v14, %v843_v37  ;;  %v809_v37 = vmul.f32 %v1912_v34, %v1912_v34  ;;  %v864_v15 = vsel %vm673_vm0, %v808_v48, 0.0 }
 0x179   : > { %v847_v17 = vadd.f32 %v846_v16, %v845_v41  ;;  %v810_v41 = vmul.f32 %v1919_v38, %v1919_v38  ;;  %v866_v45 = vsel %vm673_vm0, %v809_v37, 0.0 }
 0x17b   : > { %v849_v24 = vadd.f32 %v848_v22, %v847_v17  ;;  %v811_v17 = vmul.f32 %v1926_v42, %v1926_v42  ;;  %v868_v53 = vsel %vm673_vm0, %v810_v41, 0.0 }
 0x17d   : > { %v851_v46 = vadd.f32 %v850_v2, %v849_v24  ;;  %v812_v24 = vmul.f32 %v1933_v35, %v1933_v35 }
 0x17f   : > { %v853_v0 = vadd.f32 %v852_v12, %v851_v46  ;;  %v870_v46 = vsel %vm673_vm0, %v811_v17, 0.0  ;;  %v814_v12 = vmul.f32 %v1947_v56, %v1947_v56 }
 0x181   : > { %v855_v20 = vadd.f32 %v854_v57, %v853_v0  ;;  %v872_v0 = vsel %vm673_vm0, %v812_v24, 0.0  ;;  %v876_v57 = vsel %vm673_vm0, %v814_v12, 0.0 }
 0x183   : > { %v857_v13 = vadd.f32 %v856_v61, %v855_v20 }
 0x185   : > { %v859_v51 = vadd.f32 %v858_v7, %v857_v13 }
 0x187   : > { %v861_v8 = vadd.f32 %v860_v55, %v859_v51 }
 0x189   : > { %v863_v14 = vadd.f32 %v862_v9, %v861_v8 }
 0x18b   : > { %v865_v16 = vadd.f32 %v864_v15, %v863_v14 }
 0x18d   : > { %v867_v22 = vadd.f32 %v866_v45, %v865_v16 }
 0x18f   : > { %v869_v2 = vadd.f32 %v868_v53, %v867_v22 }
 0x191   : > { %v871_v60 = vadd.f32 %v870_v46, %v869_v2 }
 0x193   : > { %v873_v39 = vadd.f32 %v872_v0, %v871_v60 }
 0x195   : > { %v875_v32 = vadd.f32 %v874_v31, %v873_v39 }
 0x197   : > { %v877_v20 = vadd.f32 %v876_v57, %v875_v32 }
 0x199   : > { %v878_v29 = vrot.slane %v877_v20, 4 }
 0x19b   : > { %v879_v61 = vadd.f32 %v878_v29, %v877_v20 }
 0x19d   : > { %v880_v13 = vrot.slane %v879_v61, 2 }
 0x19f   : > { %v881_v27 = vadd.f32 %v880_v13, %v879_v61 }
 0x1a1   : > { %v882_v7 = vrot.slane %v881_v27, 1 }
 0x1a3   : > { %v883_v51 = vadd.f32 %v882_v7, %v881_v27 }
 0x1a5   : > { %v884_v48 = vmul.f32 %v883_v51, %v1731_v28 }
 0x1a7   : > { %v885_v55 = vadd.f32 1e-05, %v884_v48 }
 0x1a9   : > { %1361 = vrsqrt.f32 %v885_v55  ;;  %vm892_vm3 = vweird.f32 %v885_v55 }
 0x1af   : > { %v1362_v8 = vpop.eup %1361 }
 0x1b0   : > { %v887_v37 = vmul.f32 %v1362_v8, %v885_v55  ;;  %vm893_vm2 = vweird.f32 %v1362_v8 }
 0x1b1   : > { %vm894_vm4 = vmor %vm892_vm3, %vm893_vm2 }
 0x1b2   : > { %v888_v9 = vmul.f32 %v1362_v8, %v887_v37 }
 0x1b4   : > { %v889_v14 = vmul.f32 0.5, %v888_v9 }
 0x1b6   : > { %v890_v41 = vsub.f32 1.5, %v889_v14 }
 0x1b8   : > { %v891_v15 = vmul.f32 %v1362_v8, %v890_v41 }
 0x1ba   : > { %v1961_v16 = vsel %vm894_vm4, %v1362_v8, %v891_v15 }
 0x1bb   : > { %v896_v17 = vmul.f32 %v1961_v16, %v1738_v49  ;;  %v897_v28 = vmul.f32 %v1961_v16, %v1742_v36  ;;  %v898_v45 = vmul.f32 %v1961_v16, %v1746_v23  ;;  %v899_v22 = vmul.f32 %v1961_v16, %v1750_v43 }
 0x1bc   : > { %v900_v24 = vmul.f32 %v1961_v16, %v1758_v52  ;;  %v901_v53 = vmul.f32 %v1961_v16, %v1764_v4  ;;  %v902_v2 = vmul.f32 %v1961_v16, %v1772_v54  ;;  %v903_v36 = vmul.f32 %v1961_v16, %v1779_v63 }
 0x1bd   : > { %v928_v49 = vmax.f32 %v896_v17, 0.0  ;;  %v929_v47 = vmax.f32 %v897_v28, 0.0  ;;  %v930_v46 = vmax.f32 %v898_v45, 0.0  ;;  %v931_v23 = vmax.f32 %v899_v22, 0.0 }
 0x1be   : > { %v904_v43 = vmul.f32 %v1961_v16, %v1786_v6  ;;  %v932_v60 = vmax.f32 %v900_v24, 0.0  ;;  %v905_v52 = vmul.f32 %v1961_v16, %v1793_v10  ;;  %v906_v4 = vmul.f32 %v1961_v16, %v1800_v18 }
 0x1bf   : > { %v933_v54 = vmax.f32 %v901_v53, 0.0  ;;  %v934_v63 = vmax.f32 %v902_v2, 0.0  ;;  %v960_v12 = vpack.c.bf16 %v928_v49, %v928_v49  ;;  %v961_v0 = vpack.c.bf16 %v929_v47, %v929_v47 }
 0x1c0   : > { %v962_v6 = vpack.c.bf16 %v930_v46, %v930_v46  ;;  %v907_v39 = vmul.f32 %v1961_v16, %v1807_v25  ;;  %v935_v31 = vmax.f32 %v903_v36, 0.0  ;;  %v963_v32 = vpack.c.bf16 %v931_v23, %v931_v23 }
 0x1c1   : > { %v908_v10 = vmul.f32 %v1961_v16, %v1814_v33  ;;  %v936_v57 = vmax.f32 %v904_v43, 0.0  ;;  %v964_v20 = vpack.c.bf16 %v932_v60, %v932_v60  ;;  %993 = vst.msk [vmem:[%s1985_s30] sm:$0xf] %vm992_vm5, %v960_v12  ;;  %v909_v18 = vmul.f32 %v1961_v16, %v1821_v50 }
 0x1c2   : > { %v937_v29 = vmax.f32 %v905_v52, 0.0  ;;  %v965_v61 = vpack.c.bf16 %v933_v54, %v933_v54  ;;  %994 = vst.msk [vmem:[%s1985_s30 + $0x4] sm:$0xf] %vm992_vm5, %v961_v0  ;;  %v910_v25 = vmul.f32 %v1961_v16, %v1828_v44  ;;  %v938_v13 = vmax.f32 %v906_v4, 0.0 }
 0x1c3   : > { %v966_v27 = vpack.c.bf16 %v934_v63, %v934_v63  ;;  %995 = vst.msk [vmem:[%s1985_s30 + $0x8] sm:$0xf] %vm992_vm5, %v962_v6  ;;  %v911_v33 = vmul.f32 %v1961_v16, %v1835_v62  ;;  %v939_v7 = vmax.f32 %v907_v39, 0.0  ;;  %v967_v51 = vpack.c.bf16 %v935_v31, %v935_v31 }
 0x1c4   : > { %996 = vst.msk [vmem:[%s1985_s30 + $0xc] sm:$0xf] %vm992_vm5, %v963_v32  ;;  %v912_v50 = vmul.f32 %v1961_v16, %v1842_v5  ;;  %v940_v48 = vmax.f32 %v908_v10, 0.0  ;;  %v968_v55 = vpack.c.bf16 %v936_v57, %v936_v57  ;;  %v913_v44 = vmul.f32 %v1961_v16, %v1849_v21 }
 0x1c5   : > { %997 = vst.msk [vmem:[%s1985_s30 + $0x10] sm:$0xf] %vm992_vm5, %v964_v20  ;;  %v941_v8 = vmax.f32 %v909_v18, 0.0  ;;  %v969_v37 = vpack.c.bf16 %v937_v29, %v937_v29  ;;  %v914_v62 = vmul.f32 %v1961_v16, %v1856_v59  ;;  %v942_v9 = vmax.f32 %v910_v25, 0.0 }
 0x1c6   : > { %998 = vst.msk [vmem:[%s1985_s30 + $0x14] sm:$0xf] %vm992_vm5, %v965_v61  ;;  %v970_v14 = vpack.c.bf16 %v938_v13, %v938_v13  ;;  %v915_v5 = vmul.f32 %v1961_v16, %v1863_v3  ;;  %v943_v41 = vmax.f32 %v911_v33, 0.0  ;;  %v971_v15 = vpack.c.bf16 %v939_v7, %v939_v7 }
 0x1c7   : > { %999 = vst.msk [vmem:[%s1985_s30 + $0x18] sm:$0xf] %vm992_vm5, %v966_v27  ;;  %v916_v21 = vmul.f32 %v1961_v16, %v1870_v11  ;;  %v944_v17 = vmax.f32 %v912_v50, 0.0  ;;  %v972_v28 = vpack.c.bf16 %v940_v48, %v940_v48  ;;  %v917_v59 = vmul.f32 %v1961_v16, %v1877_v19 }
 0x1c8   : > { %1000 = vst.msk [vmem:[%s1985_s30 + $0x1c] sm:$0xf] %vm992_vm5, %v967_v51  ;;  %v945_v45 = vmax.f32 %v913_v44, 0.0  ;;  %v973_v22 = vpack.c.bf16 %v941_v8, %v941_v8  ;;  %v918_v3 = vmul.f32 %v1961_v16, %v1884_v26  ;;  %v946_v24 = vmax.f32 %v914_v62, 0.0 }
 0x1c9   : > { %1001 = vst.msk [vmem:[%s1985_s30 + $0x20] sm:$0xf] %vm992_vm5, %v968_v55  ;;  %v974_v53 = vpack.c.bf16 %v942_v9, %v942_v9  ;;  %v919_v11 = vmul.f32 %v1961_v16, %v1891_v58  ;;  %v947_v2 = vmax.f32 %v915_v5, 0.0  ;;  %v975_v49 = vpack.c.bf16 %v943_v41, %v943_v41 }
 0x1ca   : > { %1002 = vst.msk [vmem:[%s1985_s30 + $0x24] sm:$0xf] %vm992_vm5, %v969_v37  ;;  %v920_v19 = vmul.f32 %v1961_v16, %v1898_v1  ;;  %v948_v47 = vmax.f32 %v916_v21, 0.0  ;;  %v976_v46 = vpack.c.bf16 %v944_v17, %v944_v17  ;;  %v921_v26 = vmul.f32 %v1961_v16, %v1905_v30 }
 0x1cb   : > { %1003 = vst.msk [vmem:[%s1985_s30 + $0x28] sm:$0xf] %vm992_vm5, %v970_v14  ;;  %v949_v36 = vmax.f32 %v917_v59, 0.0  ;;  %v977_v23 = vpack.c.bf16 %v945_v45, %v945_v45  ;;  %v922_v58 = vmul.f32 %v1961_v16, %v1912_v34  ;;  %v950_v43 = vmax.f32 %v918_v3, 0.0 }
 0x1cc   : > { %1004 = vst.msk [vmem:[%s1985_s30 + $0x2c] sm:$0xf] %vm992_vm5, %v971_v15  ;;  %v978_v60 = vpack.c.bf16 %v946_v24, %v946_v24  ;;  %v923_v1 = vmul.f32 %v1961_v16, %v1919_v38  ;;  %v951_v52 = vmax.f32 %v919_v11, 0.0  ;;  %v979_v4 = vpack.c.bf16 %v947_v2, %v947_v2 }
 0x1cd   : > { %1005 = vst.msk [vmem:[%s1985_s30 + $0x30] sm:$0xf] %vm992_vm5, %v972_v28  ;;  %v924_v30 = vmul.f32 %v1961_v16, %v1926_v42  ;;  %v952_v54 = vmax.f32 %v920_v19, 0.0  ;;  %v980_v63 = vpack.c.bf16 %v948_v47, %v948_v47  ;;  %v925_v34 = vmul.f32 %v1961_v16, %v1933_v35 }
 0x1ce   : > { %1006 = vst.msk [vmem:[%s1985_s30 + $0x34] sm:$0xf] %vm992_vm5, %v973_v22  ;;  %v953_v12 = vmax.f32 %v921_v26, 0.0  ;;  %v981_v0 = vpack.c.bf16 %v949_v36, %v949_v36  ;;  %v926_v38 = vmul.f32 %v1961_v16, %v1940_v40  ;;  %v954_v6 = vmax.f32 %v922_v58, 0.0 }
 0x1cf   : > { %1007 = vst.msk [vmem:[%s1985_s30 + $0x38] sm:$0xf] %vm992_vm5, %v974_v53  ;;  %v982_v39 = vpack.c.bf16 %v950_v43, %v950_v43  ;;  %v927_v42 = vmul.f32 %v1961_v16, %v1947_v56  ;;  %v955_v31 = vmax.f32 %v923_v1, 0.0  ;;  %v983_v35 = vpack.c.bf16 %v951_v52, %v951_v52 }
 0x1d0   : > { %1008 = vst.msk [vmem:[%s1985_s30 + $0x3c] sm:$0xf] %vm992_vm5, %v975_v49  ;;  %v956_v32 = vmax.f32 %v924_v30, 0.0  ;;  %v984_v10 = vpack.c.bf16 %v952_v54, %v952_v54  ;;  %v957_v40 = vmax.f32 %v925_v34, 0.0  ;;  %v985_v57 = vpack.c.bf16 %v953_v12, %v953_v12 }
 0x1d1   : > { %1009 = vst.msk [vmem:[%s1985_s30 + $0x40] sm:$0xf] %vm992_vm5, %v976_v46  ;;  %v958_v20 = vmax.f32 %v926_v38, 0.0  ;;  %v986_v56 = vpack.c.bf16 %v954_v6, %v954_v6  ;;  %v959_v16 = vmax.f32 %v927_v42, 0.0  ;;  %v987_v18 = vpack.c.bf16 %v955_v31, %v955_v31 }
 0x1d2   : > { %1010 = vst.msk [vmem:[%s1985_s30 + $0x44] sm:$0xf] %vm992_vm5, %v977_v23  ;;  %v988_v29 = vpack.c.bf16 %v956_v32, %v956_v32  ;;  %v989_v61 = vpack.c.bf16 %v957_v40, %v957_v40 }
 0x1d3   : > { %1011 = vst.msk [vmem:[%s1985_s30 + $0x48] sm:$0xf] %vm992_vm5, %v978_v60  ;;  %v990_v25 = vpack.c.bf16 %v958_v20, %v958_v20  ;;  %v991_v13 = vpack.c.bf16 %v959_v16, %v959_v16 }
 0x1d4   : > { %1012 = vst.msk [vmem:[%s1985_s30 + $0x4c] sm:$0xf] %vm992_vm5, %v979_v4 }
 0x1d5   : > { %1013 = vst.msk [vmem:[%s1985_s30 + $0x50] sm:$0xf] %vm992_vm5, %v980_v63 }
 0x1d6   : > { %1014 = vst.msk [vmem:[%s1985_s30 + $0x54] sm:$0xf] %vm992_vm5, %v981_v0 }
 0x1d7   : > { %1015 = vst.msk [vmem:[%s1985_s30 + $0x58] sm:$0xf] %vm992_vm5, %v982_v39 }
 0x1d8   : > { %1016 = vst.msk [vmem:[%s1985_s30 + $0x5c] sm:$0xf] %vm992_vm5, %v983_v35 }
 0x1d9   : > { %1017 = vst.msk [vmem:[%s1985_s30 + $0x60] sm:$0xf] %vm992_vm5, %v984_v10 }
 0x1da   : > { %1018 = vst.msk [vmem:[%s1985_s30 + $0x64] sm:$0xf] %vm992_vm5, %v985_v57 }
 0x1db   : > { %1019 = vst.msk [vmem:[%s1985_s30 + $0x68] sm:$0xf] %vm992_vm5, %v986_v56 }
 0x1dc   : > { %1020 = vst.msk [vmem:[%s1985_s30 + $0x6c] sm:$0xf] %vm992_vm5, %v987_v18 }
 0x1dd   : > { %1021 = vst.msk [vmem:[%s1985_s30 + $0x70] sm:$0xf] %vm992_vm5, %v988_v29 }
 0x1de   : > { %1022 = vst.msk [vmem:[%s1985_s30 + $0x74] sm:$0xf] %vm992_vm5, %v989_v61 }
 0x1df   : > { %1023 = vst.msk [vmem:[%s1985_s30 + $0x78] sm:$0xf] %vm992_vm5, %v990_v25 }
 0x1e0   : > { %1024 = vst.msk [vmem:[%s1985_s30 + $0x7c] sm:$0xf] %vm992_vm5, %v991_v13 }
 0x1e1 PF: > { %s13_s12 = sadd.s32 1, %s1369_s12  }
 0x1e2   : > { %p10_p4 = scmp.ge.s32.totalorder %s13_s12, 4  }
 0x1e4   :  { %12 = sbr.rel (!%p10_p4) target bundleno = 1 (0x1), region = 62 }

// kernel: generator_forward.12
= control target key start
LH: loop header
LB: loop body
LE: loop exit
PB: predicated region body
PF: predicated region fallthrough
CT: control target
= control target key end

     0   :  { %s607_s12 = smov 0   ;;  %s686_s0 = inlined_call_operand.vmem [shape: bf16[2,64,128], index: 0, kind: input, shape index: {}]   ;;  %s687_s1 = inlined_call_operand.vmem [shape: bf16[128,16], index: 1, kind: input, shape index: {}]   ;;  %s688_s2 = inlined_call_operand.vmem [shape: f32[1,16], index: 2, kind: input, shape index: {}]   ;;  %s689_s3 = inlined_call_operand.vmem [shape: bf16[2,64,16], index: 3, kind: output, shape index: {}]  }
   0x1 LB: > { %s467_s13 = sadd.s32 4294967295, %s584_s12   ;;  %p471_p0 = scmp.ge.s32.totalorder %s584_s12, 1  ;;  %s584_s12 = sphi %s607_s12, %s13_s12  }
   0x2   : > { %p137_p1 = scmp.lt.s32.totalorder %s584_s12, 3 }
   0x4   : > { %p138_p2 = pnand %p471_p0, %p137_p1 }
   0x5   : > { %p161_p3 = scmp.lt.s32.totalorder (!%p138_p2), %s467_s13, 1 }
   0x6   : > { %141 = sbr.rel (%p138_p2) target bundleno = 275 (0x113), region = 32 }
   0xb   : > { %v539_v0 = vld [vmem:[%s687_s1 + $0x38] sm:$0xff]  ;;  %v538_v1 = vld [vmem:[%s687_s1 + $0x30] sm:$0xff]  ;;  %v537_v2 = vld [vmem:[%s687_s1 + $0x28] sm:$0xff]  ;;  %s691_s13 = smov (!%p161_p3, %s467_s13), 1  ;;  %vm300_vm0 = vcmask 130048   ;;  %v586_v22 = vmov 64.0  }
   0xc   : > { %271 = vmatpush.bf16.msra.mxu0 %v539_v0  ;;  %540 = vmatpush.bf16.msra.mxu1 %v539_v0  ;;  %v536_v3 = vld [vmem:[%s687_s1 + $0x20] sm:$0xff]  ;;  %v535_v4 = vld [vmem:[%s687_s1 + $0x18] sm:$0xff]  ;;  %v534_v5 = vld [vmem:[%s687_s1 + $0x10] sm:$0xff]  ;;  %s526_s28 = sshll.u32 %s691_s13, 5  ;;  %574 = vrcp.f32 %v586_v22  ;;  %vm403_vm5 = vcmask 125952  }
   0xd   : > { %541 = vmatpush.bf16.msra.mxu2 %v539_v0  ;;  %542 = vmatpush.bf16.msra.mxu3 %v539_v0  ;;  %v533_v6 = vld [vmem:[%s687_s1 + $0x8] sm:$0xff]  ;;  %v532_v7 = vld [vmem:[%s687_s1] sm:$0xff]  ;;  %s165_s6 = scalar_lea.vmem %s686_s0, %s526_s28  ;;  %s170_s11 = scalar_lea.vmem %s689_s3, %s526_s28 }
   0xe   : > { %v528_v8 = vld [vmem:[%s165_s6] sm:$0xff]  ;;  %v529_v9 = vld [vmem:[%s165_s6 + $0x8] sm:$0xff]  ;;  %v530_v10 = vld [vmem:[%s165_s6 + $0x10] sm:$0xff] }
   0xf   : > { %v531_v11 = vld [vmem:[%s165_s6 + $0x18] sm:$0xff]  ;;  %v573_v14 = vld [vmem:[%s688_s2] ss:$0 sm:$0xff] }
  0x10   : > { %272 = vmatpush.bf16.msra.mxu0 %v538_v1  ;;  %543 = vmatpush.bf16.msra.mxu1 %v538_v1 }
  0x11   : > { %544 = vmatpush.bf16.msra.mxu2 %v538_v1  ;;  %545 = vmatpush.bf16.msra.mxu3 %v538_v1 }
  0x12   : > { %v575_v32 = vpop.eup %574 }
  0x13   : > { %v323_v41 = vmul.f32 64.0, %v575_v32  ;;  %vm327_vm1 = vweird.f32 %v575_v32 }
  0x14   : > { %273 = vmatpush.bf16.msra.mxu0 %v537_v2  ;;  %546 = vmatpush.bf16.msra.mxu1 %v537_v2 }
  0x15   : > { %547 = vmatpush.bf16.msra.mxu2 %v537_v2  ;;  %548 = vmatpush.bf16.msra.mxu3 %v537_v2  ;;  %v324_v46 = vsub.f32 1.0, %v323_v41 }
  0x17   : > { %v325_v49 = vmul.f32 %v575_v32, %v324_v46 }
  0x18   : > { %274 = vmatpush.bf16.msra.mxu0 %v536_v3  ;;  %549 = vmatpush.bf16.msra.mxu1 %v536_v3 }
  0x19   : > { %550 = vmatpush.bf16.msra.mxu2 %v536_v3  ;;  %551 = vmatpush.bf16.msra.mxu3 %v536_v3  ;;  %v326_v52 = vadd.f32 %v575_v32, %v325_v49 }
  0x1b   : > { %v328_v55 = vsel %vm327_vm1, %v575_v32, %v326_v52 }
  0x1c   : > { %275 = vmatpush.bf16.msra.mxu0 %v535_v4  ;;  %552 = vmatpush.bf16.msra.mxu1 %v535_v4 }
  0x1d   : > { %553 = vmatpush.bf16.msra.mxu2 %v535_v4  ;;  %554 = vmatpush.bf16.msra.mxu3 %v535_v4 }
  0x20   : > { %276 = vmatpush.bf16.msra.mxu0 %v534_v5  ;;  %555 = vmatpush.bf16.msra.mxu1 %v534_v5 }
  0x21   : > { %556 = vmatpush.bf16.msra.mxu2 %v534_v5  ;;  %557 = vmatpush.bf16.msra.mxu3 %v534_v5 }
  0x24   : > { %277 = vmatpush.bf16.msra.mxu0 %v533_v6  ;;  %558 = vmatpush.bf16.msra.mxu1 %v533_v6 }
  0x25   : > { %559 = vmatpush.bf16.msra.mxu2 %v533_v6  ;;  %560 = vmatpush.bf16.msra.mxu3 %v533_v6 }
  0x28   : > { %278 = vmatpush.bf16.msra.mxu0 %v532_v7  ;;  %561 = vmatpush.bf16.msra.mxu1 %v532_v7 }
  0x29   : > { %562 = vmatpush.bf16.msra.mxu2 %v532_v7  ;;  %563 = vmatpush.bf16.msra.mxu3 %v532_v7 }
  0x2b   : > { %279 = vmatmul.bf16.vlgmr.msra.gmra.mxu0 %v528_v8  ;;  %284 = vmatmul.bf16.vlgmr.msra.gmra.mxu1 %v529_v9 }
  0x2c   : > { %289 = vmatmul.bf16.vlgmr.msra.gmra.mxu2 %v530_v10  ;;  %294 = vmatmul.bf16.vlgmr.msra.gmra.mxu3 %v531_v11 }
  0xa8   : > { %v280_v12 = vpop.f32.mrf.mxu0  ;;  %v285_v13 = vpop.f32.mrf.mxu1 }
  0xa9   : > { %v281_v15 = vadd.f32 %v573_v14, %v280_v12  ;;  %v286_v20 = vadd.f32 %v573_v14, %v285_v13 }
  0xab   : > { %v301_v23 = vsel %vm300_vm0, %v281_v15, 0.0  ;;  %v304_v27 = vsel %vm300_vm0, %v286_v20, 0.0 }
  0xaf   : > { %v290_v16 = vpop.f32.mrf.mxu2  ;;  %v295_v17 = vpop.f32.mrf.mxu3 }
  0xb0   : > { %v282_v18 = vpop.f32.mrf.mxu0  ;;  %v287_v19 = vpop.f32.mrf.mxu1  ;;  %v291_v28 = vadd.f32 %v573_v14, %v290_v16  ;;  %v296_v37 = vadd.f32 %v573_v14, %v295_v17 }
  0xb1   : > { %v283_v21 = vadd.f32 %v573_v14, %v282_v18  ;;  %v288_v25 = vadd.f32 %v573_v14, %v287_v19 }
  0xb2   : > { %v308_v36 = vsel %vm300_vm0, %v291_v28, 0.0  ;;  %v312_v43 = vsel %vm300_vm0, %v296_v37, 0.0 }
  0xb3   : > { %v302_v24 = vsel %vm300_vm0, %v283_v21, 0.0  ;;  %v306_v30 = vsel %vm300_vm0, %v288_v25, 0.0 }
  0xb4   : > { %v303_v26 = vadd.f32 %v302_v24, %v301_v23 }
  0xb6   : > { %v305_v29 = vadd.f32 %v304_v27, %v303_v26 }
  0xb7   : > { %v292_v31 = vpop.f32.mrf.mxu2  ;;  %v297_v35 = vpop.f32.mrf.mxu3 }
  0xb8   : > { %v307_v33 = vadd.f32 %v306_v30, %v305_v29  ;;  %v293_v34 = vadd.f32 %v573_v14, %v292_v31  ;;  %v298_v40 = vadd.f32 %v573_v14, %v297_v35 }
  0xba   : > { %v309_v38 = vadd.f32 %v308_v36, %v307_v33  ;;  %v310_v39 = vsel %vm300_vm0, %v293_v34, 0.0  ;;  %v314_v45 = vsel %vm300_vm0, %v298_v40, 0.0 }
  0xbc   : > { %v311_v42 = vadd.f32 %v310_v39, %v309_v38 }
  0xbe   : > { %v313_v44 = vadd.f32 %v312_v43, %v311_v42 }
  0xc0   : > { %v315_v47 = vadd.f32 %v314_v45, %v313_v44 }
  0xc2   : > { %v316_v48 = vrot.slane %v315_v47, 4 }
  0xc4   : > { %v317_v50 = vadd.f32 %v316_v48, %v315_v47 }
  0xc6   : > { %v318_v51 = vrot.slane %v317_v50, 2 }
  0xc8   : > { %v319_v53 = vadd.f32 %v318_v51, %v317_v50 }
  0xca   : > { %v320_v54 = vrot.slane %v319_v53, 1 }
  0xcc   : > { %v321_v56 = vadd.f32 %v320_v54, %v319_v53 }
  0xce   : > { %v329_v57 = vmul.f32 %v328_v55, %v321_v56 }
  0xd0   : > { %v330_v58 = vsub.f32 %v281_v15, %v329_v57  ;;  %v331_v59 = vsub.f32 %v283_v21, %v329_v57  ;;  %v332_v60 = vsub.f32 %v286_v20, %v329_v57  ;;  %v333_v61 = vsub.f32 %v288_v25, %v329_v57 }
  0xd1   : > { %v334_v62 = vsub.f32 %v291_v28, %v329_v57  ;;  %v335_v2 = vsub.f32 %v293_v34, %v329_v57  ;;  %v336_v7 = vsub.f32 %v296_v37, %v329_v57  ;;  %v337_v11 = vsub.f32 %v298_v40, %v329_v57 }
  0xd2   : > { %v338_v63 = vmul.f32 %v330_v58, %v330_v58  ;;  %v339_v0 = vmul.f32 %v331_v59, %v331_v59  ;;  %v340_v1 = vmul.f32 %v332_v60, %v332_v60  ;;  %v341_v3 = vmul.f32 %v333_v61, %v333_v61 }
  0xd3   : > { %v342_v8 = vmul.f32 %v334_v62, %v334_v62  ;;  %v343_v12 = vmul.f32 %v335_v2, %v335_v2  ;;  %v344_v15 = vmul.f32 %v336_v7, %v336_v7  ;;  %v345_v18 = vmul.f32 %v337_v11, %v337_v11 }
  0xd4   : > { %v346_v4 = vsel %vm300_vm0, %v338_v63, 0.0  ;;  %v347_v5 = vsel %vm300_vm0, %v339_v0, 0.0  ;;  %v349_v9 = vsel %vm300_vm0, %v340_v1, 0.0  ;;  %v351_v13 = vsel %vm300_vm0, %v341_v3, 0.0 }
  0xd5   : > { %v348_v6 = vadd.f32 %v347_v5, %v346_v4  ;;  %v353_v16 = vsel %vm300_vm0, %v342_v8, 0.0  ;;  %v355_v19 = vsel %vm300_vm0, %v343_v12, 0.0  ;;  %v357_v21 = vsel %vm300_vm0, %v344_v15, 0.0 }
  0xd6   : > { %v359_v23 = vsel %vm300_vm0, %v345_v18, 0.0 }
  0xd7   : > { %v350_v10 = vadd.f32 %v349_v9, %v348_v6 }
  0xd9   : > { %v352_v14 = vadd.f32 %v351_v13, %v350_v10 }
  0xdb   : > { %v354_v17 = vadd.f32 %v353_v16, %v352_v14 }
  0xdd   : > { %v356_v20 = vadd.f32 %v355_v19, %v354_v17 }
  0xdf   : > { %v358_v22 = vadd.f32 %v357_v21, %v356_v20 }
  0xe1   : > { %v360_v24 = vadd.f32 %v359_v23, %v358_v22 }
  0xe3   : > { %v361_v25 = vrot.slane %v360_v24, 4 }
  0xe5   : > { %v362_v26 = vadd.f32 %v361_v25, %v360_v24 }
  0xe7   : > { %v363_v27 = vrot.slane %v362_v26, 2 }
  0xe9   : > { %v364_v28 = vadd.f32 %v363_v27, %v362_v26 }
  0xeb   : > { %v365_v29 = vrot.slane %v364_v28, 1 }
  0xed   : > { %v366_v30 = vadd.f32 %v365_v29, %v364_v28 }
  0xef   : > { %v367_v31 = vmul.f32 %v366_v30, %v328_v55 }
  0xf1   : > { %v368_v32 = vadd.f32 1e-05, %v367_v31 }
  0xf3   : > { %576 = vrsqrt.f32 %v368_v32  ;;  %vm375_vm3 = vweird.f32 %v368_v32 }
  0xf9   : > { %v577_v33 = vpop.eup %576 }
  0xfa   : > { %v370_v34 = vmul.f32 %v577_v33, %v368_v32  ;;  %vm376_vm2 = vweird.f32 %v577_v33 }
  0xfb   : > { %vm377_vm4 = vmor %vm375_vm3, %vm376_vm2 }
  0xfc   : > { %v371_v35 = vmul.f32 %v577_v33, %v370_v34 }
  0xfe   : > { %v372_v36 = vmul.f32 0.5, %v371_v35 }
 0x100   : > { %v373_v37 = vsub.f32 1.5, %v372_v36 }
 0x102   : > { %v374_v38 = vmul.f32 %v577_v33, %v373_v37 }
 0x104   : > { %v378_v39 = vsel %vm377_vm4, %v577_v33, %v374_v38 }
 0x105   : > { %v379_v40 = vmul.f32 %v378_v39, %v330_v58  ;;  %v380_v41 = vmul.f32 %v378_v39, %v331_v59  ;;  %v381_v42 = vmul.f32 %v378_v39, %v332_v60  ;;  %v382_v43 = vmul.f32 %v378_v39, %v333_v61 }
 0x106   : > { %v383_v44 = vmul.f32 %v378_v39, %v334_v62  ;;  %v384_v45 = vmul.f32 %v378_v39, %v335_v2  ;;  %v385_v46 = vmul.f32 %v378_v39, %v336_v7  ;;  %v386_v47 = vmul.f32 %v378_v39, %v337_v11 }
 0x107   : > { %v387_v48 = vmax.f32 %v379_v40, 0.0  ;;  %v388_v49 = vmax.f32 %v380_v41, 0.0  ;;  %v389_v50 = vmax.f32 %v381_v42, 0.0  ;;  %v390_v51 = vmax.f32 %v382_v43, 0.0 }
 0x108   : > { %v391_v52 = vmax.f32 %v383_v44, 0.0  ;;  %v392_v53 = vmax.f32 %v384_v45, 0.0  ;;  %v393_v54 = vmax.f32 %v385_v46, 0.0  ;;  %v394_v58 = vmax.f32 %v386_v47, 0.0 }
 0x109   : > { %v395_v55 = vpack.c.bf16 %v387_v48, %v387_v48  ;;  %v396_v56 = vpack.c.bf16 %v388_v49, %v388_v49  ;;  %v397_v57 = vpack.c.bf16 %v389_v50, %v389_v50  ;;  %v398_v59 = vpack.c.bf16 %v390_v51, %v390_v51 }
 0x10a   : > { %v399_v60 = vpack.c.bf16 %v391_v52, %v391_v52  ;;  %v400_v61 = vpack.c.bf16 %v392_v53, %v392_v53  ;;  %v401_v62 = vpack.c.bf16 %v393_v54, %v393_v54  ;;  %v402_v63 = vpack.c.bf16 %v394_v58, %v394_v58 }
 0x10b   : > { %404 = vst.msk [vmem:[%s170_s11] sm:$0xf] %vm403_vm5, %v395_v55 }
 0x10c   : > { %405 = vst.msk [vmem:[%s170_s11 + $0x4] sm:$0xf] %vm403_vm5, %v396_v56 }
 0x10d   : > { %406 = vst.msk [vmem:[%s170_s11 + $0x8] sm:$0xf] %vm403_vm5, %v397_v57 }
 0x10e   : > { %407 = vst.msk [vmem:[%s170_s11 + $0xc] sm:$0xf] %vm403_vm5, %v398_v59 }
 0x10f   : > { %408 = vst.msk [vmem:[%s170_s11 + $0x10] sm:$0xf] %vm403_vm5, %v399_v60 }
 0x110   : > { %409 = vst.msk [vmem:[%s170_s11 + $0x14] sm:$0xf] %vm403_vm5, %v400_v61 }
 0x111   : > { %410 = vst.msk [vmem:[%s170_s11 + $0x18] sm:$0xf] %vm403_vm5, %v401_v62 }
 0x112   : > { %411 = vst.msk [vmem:[%s170_s11 + $0x1c] sm:$0xf] %vm403_vm5, %v402_v63 }
 0x113 PF: > { %s13_s12 = sadd.s32 1, %s584_s12  }
 0x114   : > { %p10_p4 = scmp.ge.s32.totalorder %s13_s12, 4  }
 0x116   :  { %12 = sbr.rel (!%p10_p4) target bundleno = 1 (0x1), region = 62 }

// kernel: generator_forward.13
= control target key start
LH: loop header
LB: loop body
LE: loop exit
PB: predicated region body
PF: predicated region fallthrough
CT: control target
= control target key end

     0   :  { %s596_s12 = smov 0   ;;  %s672_s0 = inlined_call_operand.vmem [shape: bf16[2,16,256], index: 0, kind: input, shape index: {}]   ;;  %s673_s1 = inlined_call_operand.vmem [shape: bf16[256,32], index: 1, kind: input, shape index: {}]   ;;  %s674_s2 = inlined_call_operand.vmem [shape: f32[1,32], index: 2, kind: input, shape index: {}]   ;;  %s675_s3 = inlined_call_operand.vmem [shape: bf16[2,16,32], index: 3, kind: output, shape index: {}]  }
   0x1 LB: > { %s450_s13 = sadd.s32 4294967295, %s573_s12   ;;  %p454_p0 = scmp.ge.s32.totalorder %s573_s12, 1  ;;  %s573_s12 = sphi %s596_s12, %s13_s12  }
   0x2   : > { %p137_p1 = scmp.lt.s32.totalorder %s573_s12, 3 }
   0x4   : > { %p138_p2 = pnand %p454_p0, %p137_p1 }
   0x5   : > { %p161_p3 = scmp.lt.s32.totalorder (!%p138_p2), %s450_s13, 1 }
   0x6   : > { %141 = sbr.rel (%p138_p2) target bundleno = 247 (0xf7), region = 32 }
   0xb   : > { %v544_v0 = vld [vmem:[%s673_s1 + $0x38] sm:$0xff]  ;;  %v543_v2 = vld [vmem:[%s673_s1 + $0x30] sm:$0xff]  ;;  %v542_v4 = vld [vmem:[%s673_s1 + $0x28] sm:$0xff]  ;;  %s677_s13 = smov (!%p161_p3, %s450_s13), 1  ;;  %v575_v24 = vmov 16.0   ;;  %vm343_vm0 = vcmask 261120  }
   0xc   : > { %v552_v1 = vld [vmem:[%s673_s1 + $0x78] sm:$0xff]  ;;  %315 = vmatpush.bf16.msra.mxu0 %v544_v0  ;;  %v551_v3 = vld [vmem:[%s673_s1 + $0x70] sm:$0xff]  ;;  %v550_v5 = vld [vmem:[%s673_s1 + $0x68] sm:$0xff]  ;;  %s533_s11 = sshll.u32 %s677_s13, 4  ;;  %563 = vrcp.f32 %v575_v24  ;;  %s534_s27 = sshll.u32 %s677_s13, 3  ;;  %vm392_vm5 = vcmask 257024  }
   0xd   : > { %329 = vmatpush.bf16.msra.mxu1 %v552_v1  ;;  %v541_v6 = vld [vmem:[%s673_s1 + $0x20] sm:$0xff]  ;;  %v540_v8 = vld [vmem:[%s673_s1 + $0x18] sm:$0xff]  ;;  %v539_v10 = vld [vmem:[%s673_s1 + $0x10] sm:$0xff]  ;;  %s165_s20 = scalar_lea.vmem %s672_s0, %s533_s11  ;;  %s170_s30 = scalar_lea.vmem %s675_s3, %s534_s27 }
   0xe   : > { %v549_v7 = vld [vmem:[%s673_s1 + $0x60] sm:$0xff]  ;;  %v548_v9 = vld [vmem:[%s673_s1 + $0x58] sm:$0xff]  ;;  %v547_v11 = vld [vmem:[%s673_s1 + $0x50] sm:$0xff] }
   0xf   : > { %v538_v12 = vld [vmem:[%s673_s1 + $0x8] sm:$0xff]  ;;  %v537_v14 = vld [vmem:[%s673_s1] sm:$0xff] }
  0x10   : > { %316 = vmatpush.bf16.msra.mxu0 %v543_v2  ;;  %v546_v13 = vld [vmem:[%s673_s1 + $0x48] sm:$0xff]  ;;  %v545_v15 = vld [vmem:[%s673_s1 + $0x40] sm:$0xff] }
  0x11   : > { %330 = vmatpush.bf16.msra.mxu1 %v551_v3  ;;  %v461_v16 = vld [vmem:[%s165_s20] sm:$0xf]  ;;  %v536_v17 = vld [vmem:[%s165_s20 + $0x4] sm:$0xf0]  ;;  %v535_v18 = vld [vmem:[%s165_s20 + $0x4] sm:$0xf] }
  0x12   : > { %v463_v19 = vld [vmem:[%s165_s20 + $0x8] sm:$0xf0]  ;;  %v462_v20 = vor.u32 %v536_v17, %v461_v16  ;;  %v562_v25 = vld [vmem:[%s674_s2] ss:$0 sm:$0xff]  ;;  %v564_v27 = vpop.eup %563 }
  0x13   : > { %v466_v21 = vor.u32 %v535_v18, %v463_v19  ;;  %v354_v31 = vmul.f32 16.0, %v564_v27  ;;  %vm358_vm1 = vweird.f32 %v564_v27 }
  0x14   : > { %317 = vmatpush.bf16.msra.mxu0 %v542_v4 }
  0x15   : > { %331 = vmatpush.bf16.msra.mxu1 %v550_v5  ;;  %v355_v36 = vsub.f32 1.0, %v354_v31 }
  0x17   : > { %v356_v39 = vmul.f32 %v564_v27, %v355_v36 }
  0x18   : > { %318 = vmatpush.bf16.msra.mxu0 %v541_v6 }
  0x19   : > { %332 = vmatpush.bf16.msra.mxu1 %v549_v7  ;;  %v357_v42 = vadd.f32 %v564_v27, %v356_v39 }
  0x1b   : > { %v359_v45 = vsel %vm358_vm1, %v564_v27, %v357_v42 }
  0x1c   : > { %319 = vmatpush.bf16.msra.mxu0 %v540_v8 }
  0x1d   : > { %333 = vmatpush.bf16.msra.mxu1 %v548_v9 }
  0x20   : > { %320 = vmatpush.bf16.msra.mxu0 %v539_v10 }
  0x21   : > { %334 = vmatpush.bf16.msra.mxu1 %v547_v11 }
  0x24   : > { %321 = vmatpush.bf16.msra.mxu0 %v538_v12 }
  0x25   : > { %335 = vmatpush.bf16.msra.mxu1 %v546_v13 }
  0x28   : > { %322 = vmatpush.bf16.msra.mxu0 %v537_v14 }
  0x29   : > { %336 = vmatpush.bf16.msra.mxu1 %v545_v15 }
  0x2b   : > { %323 = vmatmul.bf16.vlgmr.msra.gmra.mxu0 %v462_v20 }
  0x2c   : > { %337 = vmatmul.bf16.vlgmr.msra.gmra.mxu1 %v466_v21 }
  0xa8   : > { %v324_v22 = vpop.f32.mrf.mxu0 }
  0xa9   : > { %v338_v23 = vpop.f32.mrf.mxu1  ;;  %v325_v26 = vadd.f32 %v562_v25, %v324_v22 }
  0xab   : > { %v339_v29 = vadd.f32 %v338_v23, %v325_v26 }
  0xad   : > { %v344_v34 = vsel %vm343_vm0, %v339_v29, 0.0 }
  0xb0   : > { %v326_v28 = vpop.f32.mrf.mxu0 }
  0xb1   : > { %v327_v30 = vadd.f32 %v562_v25, %v326_v28  ;;  %v340_v32 = vpop.f32.mrf.mxu1 }
  0xb3   : > { %v341_v33 = vadd.f32 %v340_v32, %v327_v30 }
  0xb5   : > { %v345_v35 = vsel %vm343_vm0, %v341_v33, 0.0 }
  0xb6   : > { %v346_v37 = vadd.f32 %v345_v35, %v344_v34 }
  0xb8   : > { %v347_v38 = vrot.slane %v346_v37, 4 }
  0xba   : > { %v348_v40 = vadd.f32 %v347_v38, %v346_v37 }
  0xbc   : > { %v349_v41 = vrot.slane %v348_v40, 2 }
  0xbe   : > { %v350_v43 = vadd.f32 %v349_v41, %v348_v40 }
  0xc0   : > { %v351_v44 = vrot.slane %v350_v43, 1 }
  0xc2   : > { %v352_v46 = vadd.f32 %v351_v44, %v350_v43 }
  0xc4   : > { %v360_v47 = vmul.f32 %v359_v45, %v352_v46 }
  0xc6   : > { %v361_v48 = vsub.f32 %v339_v29, %v360_v47  ;;  %v362_v49 = vsub.f32 %v341_v33, %v360_v47 }
  0xc8   : > { %v363_v50 = vmul.f32 %v361_v48, %v361_v48  ;;  %v364_v51 = vmul.f32 %v362_v49, %v362_v49 }
  0xca   : > { %v365_v52 = vsel %vm343_vm0, %v363_v50, 0.0  ;;  %v366_v53 = vsel %vm343_vm0, %v364_v51, 0.0 }
  0xcb   : > { %v367_v54 = vadd.f32 %v366_v53, %v365_v52 }
  0xcd   : > { %v368_v55 = vrot.slane %v367_v54, 4 }
  0xcf   : > { %v369_v56 = vadd.f32 %v368_v55, %v367_v54 }
  0xd1   : > { %v370_v57 = vrot.slane %v369_v56, 2 }
  0xd3   : > { %v371_v58 = vadd.f32 %v370_v57, %v369_v56 }
  0xd5   : > { %v372_v59 = vrot.slane %v371_v58, 1 }
  0xd7   : > { %v373_v60 = vadd.f32 %v372_v59, %v371_v58 }
  0xd9   : > { %v374_v61 = vmul.f32 %v373_v60, %v359_v45 }
  0xdb   : > { %v375_v62 = vadd.f32 1e-05, %v374_v61 }
  0xdd   : > { %565 = vrsqrt.f32 %v375_v62  ;;  %vm382_vm3 = vweird.f32 %v375_v62 }
  0xe3   : > { %v566_v63 = vpop.eup %565 }
  0xe4   : > { %v377_v0 = vmul.f32 %v566_v63, %v375_v62  ;;  %vm383_vm2 = vweird.f32 %v566_v63 }
  0xe5   : > { %vm384_vm4 = vmor %vm382_vm3, %vm383_vm2 }
  0xe6   : > { %v378_v1 = vmul.f32 %v566_v63, %v377_v0 }
  0xe8   : > { %v379_v2 = vmul.f32 0.5, %v378_v1 }
  0xea   : > { %v380_v3 = vsub.f32 1.5, %v379_v2 }
  0xec   : > { %v381_v4 = vmul.f32 %v566_v63, %v380_v3 }
  0xee   : > { %v385_v5 = vsel %vm384_vm4, %v566_v63, %v381_v4 }
  0xef   : > { %v386_v6 = vmul.f32 %v385_v5, %v361_v48  ;;  %v387_v7 = vmul.f32 %v385_v5, %v362_v49 }
  0xf1   : > { %v388_v8 = vmax.f32 %v386_v6, 0.0  ;;  %v389_v9 = vmax.f32 %v387_v7, 0.0 }
  0xf3   : > { %v390_v10 = vpack.c.bf16 %v388_v8, %v388_v8  ;;  %v391_v11 = vpack.c.bf16 %v389_v9, %v389_v9 }
  0xf5   : > { %393 = vst.msk [vmem:[%s170_s30] sm:$0xf] %vm392_vm5, %v390_v10 }
  0xf6   : > { %394 = vst.msk [vmem:[%s170_s30 + $0x4] sm:$0xf] %vm392_vm5, %v391_v11 }
  0xf7 PF: > { %s13_s12 = sadd.s32 1, %s573_s12  }
  0xf8   : > { %p10_p4 = scmp.ge.s32.totalorder %s13_s12, 4  }
  0xfa   :  { %12 = sbr.rel (!%p10_p4) target bundleno = 1 (0x1), region = 62 }

// kernel: generator_forward.14
= control target key start
LH: loop header
LB: loop body
LE: loop exit
PB: predicated region body
PF: predicated region fallthrough
CT: control target
= control target key end

     0   :  { %s726_s12 = smov 0   ;;  %s830_s0 = inlined_call_operand.vmem [shape: bf16[2,16,384], index: 0, kind: input, shape index: {}]   ;;  %s831_s1 = inlined_call_operand.vmem [shape: bf16[384,32], index: 1, kind: input, shape index: {}]   ;;  %s832_s2 = inlined_call_operand.vmem [shape: f32[1,32], index: 2, kind: input, shape index: {}]   ;;  %s833_s3 = inlined_call_operand.vmem [shape: bf16[2,16,32], index: 3, kind: output, shape index: {}]  }
   0x1 LB: > { %s536_s13 = sadd.s32 4294967295, %s703_s12   ;;  %p540_p0 = scmp.ge.s32.totalorder %s703_s12, 1  ;;  %s703_s12 = sphi %s726_s12, %s13_s12  }
   0x2   : > { %p137_p1 = scmp.lt.s32.totalorder %s703_s12, 3 }
   0x4   : > { %p138_p2 = pnand %p540_p0, %p137_p1 }
   0x5   : > { %p161_p3 = scmp.lt.s32.totalorder (!%p138_p2), %s536_s13, 1 }
   0x6   : > { %141 = sbr.rel (%p138_p2) target bundleno = 253 (0xfd), region = 32 }
   0xb   : > { %v665_v0 = vld [vmem:[%s831_s1 + $0x38] sm:$0xff]  ;;  %v664_v3 = vld [vmem:[%s831_s1 + $0x30] sm:$0xff]  ;;  %v663_v6 = vld [vmem:[%s831_s1 + $0x28] sm:$0xff]  ;;  %s835_s13 = smov (!%p161_p3, %s536_s13), 1  ;;  %v705_v36 = vmov 16.0   ;;  %vm429_vm0 = vcmask 261120  }
   0xc   : > { %v673_v1 = vld [vmem:[%s831_s1 + $0x78] sm:$0xff]  ;;  %387 = vmatpush.bf16.msra.mxu0 %v665_v0  ;;  %v672_v4 = vld [vmem:[%s831_s1 + $0x70] sm:$0xff]  ;;  %v671_v7 = vld [vmem:[%s831_s1 + $0x68] sm:$0xff]  ;;  %s682_s23 = smul.u32 24, %s835_s13  ;;  %693 = vrcp.f32 %v705_v36  ;;  %s654_s18 = sshll.u32 %s835_s13, 3  ;;  %vm478_vm5 = vcmask 257024  }
   0xd   : > { %v681_v2 = vld [vmem:[%s831_s1 + $0xb8] sm:$0xff]  ;;  %401 = vmatpush.bf16.msra.mxu1 %v673_v1  ;;  %v680_v5 = vld [vmem:[%s831_s1 + $0xb0] sm:$0xff]  ;;  %v679_v8 = vld [vmem:[%s831_s1 + $0xa8] sm:$0xff]  ;;  %s170_s21 = scalar_lea.vmem %s833_s3, %s654_s18 }
   0xe   : > { %415 = vmatpush.bf16.msra.mxu2 %v681_v2  ;;  %v662_v9 = vld [vmem:[%s831_s1 + $0x20] sm:$0xff]  ;;  %v661_v12 = vld [vmem:[%s831_s1 + $0x18] sm:$0xff]  ;;  %v660_v15 = vld [vmem:[%s831_s1 + $0x10] sm:$0xff]  ;;  %s165_s5 = scalar_lea.vmem %s830_s0, %s682_s23 }
   0xf   : > { %v670_v10 = vld [vmem:[%s831_s1 + $0x60] sm:$0xff]  ;;  %v669_v13 = vld [vmem:[%s831_s1 + $0x58] sm:$0xff]  ;;  %v668_v16 = vld [vmem:[%s831_s1 + $0x50] sm:$0xff] }
  0x10   : > { %388 = vmatpush.bf16.msra.mxu0 %v664_v3  ;;  %v678_v11 = vld [vmem:[%s831_s1 + $0xa0] sm:$0xff]  ;;  %v677_v14 = vld [vmem:[%s831_s1 + $0x98] sm:$0xff]  ;;  %v676_v17 = vld [vmem:[%s831_s1 + $0x90] sm:$0xff] }
  0x11   : > { %402 = vmatpush.bf16.msra.mxu1 %v672_v4  ;;  %v659_v18 = vld [vmem:[%s831_s1 + $0x8] sm:$0xff]  ;;  %v658_v21 = vld [vmem:[%s831_s1] sm:$0xff]  ;;  %v548_v26 = vld [vmem:[%s165_s5 + $0xc] sm:$0xf0] }
  0x12   : > { %416 = vmatpush.bf16.msra.mxu2 %v680_v5  ;;  %v667_v19 = vld [vmem:[%s831_s1 + $0x48] sm:$0xff]  ;;  %v666_v22 = vld [vmem:[%s831_s1 + $0x40] sm:$0xff]  ;;  %v657_v29 = vld [vmem:[%s165_s5 + $0x10] sm:$0xf0]  ;;  %v694_v42 = vpop.eup %693 }
  0x13   : > { %v675_v20 = vld [vmem:[%s831_s1 + $0x88] sm:$0xff]  ;;  %v546_v23 = vld [vmem:[%s165_s5] sm:$0xf]  ;;  %v655_v25 = vld [vmem:[%s165_s5 + $0x4] sm:$0xf]  ;;  %v440_v46 = vmul.f32 16.0, %v694_v42  ;;  %vm444_vm1 = vweird.f32 %v694_v42 }
  0x14   : > { %389 = vmatpush.bf16.msra.mxu0 %v663_v6  ;;  %v656_v24 = vld [vmem:[%s165_s5 + $0x8] sm:$0xf0]  ;;  %v674_v27 = vld [vmem:[%s831_s1 + $0x80] sm:$0xff]  ;;  %v554_v28 = vld [vmem:[%s165_s5 + $0x8] sm:$0xf]  ;;  %v551_v31 = vor.u32 %v655_v25, %v548_v26 }
  0x15   : > { %403 = vmatpush.bf16.msra.mxu1 %v671_v7  ;;  %v547_v30 = vor.u32 %v656_v24, %v546_v23  ;;  %v555_v32 = vor.u32 %v657_v29, %v554_v28  ;;  %v692_v34 = vld [vmem:[%s832_s2] ss:$0 sm:$0xff]  ;;  %v441_v51 = vsub.f32 1.0, %v440_v46 }
  0x16   : > { %417 = vmatpush.bf16.msra.mxu2 %v679_v8 }
  0x17   : > { %v442_v54 = vmul.f32 %v694_v42, %v441_v51 }
  0x18   : > { %390 = vmatpush.bf16.msra.mxu0 %v662_v9 }
  0x19   : > { %404 = vmatpush.bf16.msra.mxu1 %v670_v10  ;;  %v443_v57 = vadd.f32 %v694_v42, %v442_v54 }
  0x1a   : > { %418 = vmatpush.bf16.msra.mxu2 %v678_v11 }
  0x1b   : > { %v445_v60 = vsel %vm444_vm1, %v694_v42, %v443_v57 }
  0x1c   : > { %391 = vmatpush.bf16.msra.mxu0 %v661_v12 }
  0x1d   : > { %405 = vmatpush.bf16.msra.mxu1 %v669_v13 }
  0x1e   : > { %419 = vmatpush.bf16.msra.mxu2 %v677_v14 }
  0x20   : > { %392 = vmatpush.bf16.msra.mxu0 %v660_v15 }
  0x21   : > { %406 = vmatpush.bf16.msra.mxu1 %v668_v16 }
  0x22   : > { %420 = vmatpush.bf16.msra.mxu2 %v676_v17 }
  0x24   : > { %393 = vmatpush.bf16.msra.mxu0 %v659_v18 }
  0x25   : > { %407 = vmatpush.bf16.msra.mxu1 %v667_v19 }
  0x26   : > { %421 = vmatpush.bf16.msra.mxu2 %v675_v20 }
  0x28   : > { %394 = vmatpush.bf16.msra.mxu0 %v658_v21 }
  0x29   : > { %408 = vmatpush.bf16.msra.mxu1 %v666_v22 }
  0x2a   : > { %422 = vmatpush.bf16.msra.mxu2 %v674_v27 }
  0x2b   : > { %395 = vmatmul.bf16.vlgmr.msra.gmra.mxu0 %v547_v30 }
  0x2c   : > { %409 = vmatmul.bf16.vlgmr.msra.gmra.mxu1 %v551_v31 }
  0x2d   : > { %423 = vmatmul.bf16.vlgmr.msra.gmra.mxu2 %v555_v32 }
  0xa8   : > { %v396_v33 = vpop.f32.mrf.mxu0 }
  0xa9   : > { %v410_v35 = vpop.f32.mrf.mxu1  ;;  %v397_v37 = vadd.f32 %v692_v34, %v396_v33 }
  0xab   : > { %v411_v40 = vadd.f32 %v410_v35, %v397_v37 }
  0xb0   : > { %v424_v38 = vpop.f32.mrf.mxu2  ;;  %v398_v39 = vpop.f32.mrf.mxu0 }
  0xb1   : > { %v399_v41 = vadd.f32 %v692_v34, %v398_v39  ;;  %v412_v43 = vpop.f32.mrf.mxu1  ;;  %v425_v44 = vadd.f32 %v424_v38, %v411_v40 }
  0xb3   : > { %v413_v45 = vadd.f32 %v412_v43, %v399_v41  ;;  %v430_v49 = vsel %vm429_vm0, %v425_v44, 0.0 }
  0xb8   : > { %v426_v47 = vpop.f32.mrf.mxu2 }
  0xb9   : > { %v427_v48 = vadd.f32 %v426_v47, %v413_v45 }
  0xbb   : > { %v431_v50 = vsel %vm429_vm0, %v427_v48, 0.0 }
  0xbc   : > { %v432_v52 = vadd.f32 %v431_v50, %v430_v49 }
  0xbe   : > { %v433_v53 = vrot.slane %v432_v52, 4 }
  0xc0   : > { %v434_v55 = vadd.f32 %v433_v53, %v432_v52 }
  0xc2   : > { %v435_v56 = vrot.slane %v434_v55, 2 }
  0xc4   : > { %v436_v58 = vadd.f32 %v435_v56, %v434_v55 }
  0xc6   : > { %v437_v59 = vrot.slane %v436_v58, 1 }
  0xc8   : > { %v438_v61 = vadd.f32 %v437_v59, %v436_v58 }
  0xca   : > { %v446_v62 = vmul.f32 %v445_v60, %v438_v61 }
  0xcc   : > { %v447_v63 = vsub.f32 %v425_v44, %v446_v62  ;;  %v448_v0 = vsub.f32 %v427_v48, %v446_v62 }
  0xce   : > { %v449_v1 = vmul.f32 %v447_v63, %v447_v63  ;;  %v450_v2 = vmul.f32 %v448_v0, %v448_v0 }
  0xd0   : > { %v451_v3 = vsel %vm429_vm0, %v449_v1, 0.0  ;;  %v452_v4 = vsel %vm429_vm0, %v450_v2, 0.0 }
  0xd1   : > { %v453_v5 = vadd.f32 %v452_v4, %v451_v3 }
  0xd3   : > { %v454_v6 = vrot.slane %v453_v5, 4 }
  0xd5   : > { %v455_v7 = vadd.f32 %v454_v6, %v453_v5 }
  0xd7   : > { %v456_v8 = vrot.slane %v455_v7, 2 }
  0xd9   : > { %v457_v9 = vadd.f32 %v456_v8, %v455_v7 }
  0xdb   : > { %v458_v10 = vrot.slane %v457_v9, 1 }
  0xdd   : > { %v459_v11 = vadd.f32 %v458_v10, %v457_v9 }
  0xdf   : > { %v460_v12 = vmul.f32 %v459_v11, %v445_v60 }
  0xe1   : > { %v461_v13 = vadd.f32 1e-05, %v460_v12 }
  0xe3   : > { %695 = vrsqrt.f32 %v461_v13  ;;  %vm468_vm3 = vweird.f32 %v461_v13 }
  0xe9   : > { %v696_v14 = vpop.eup %695 }
  0xea   : > { %v463_v15 = vmul.f32 %v696_v14, %v461_v13  ;;  %vm469_vm2 = vweird.f32 %v696_v14 }
  0xeb   : > { %vm470_vm4 = vmor %vm468_vm3, %vm469_vm2 }
  0xec   : > { %v464_v16 = vmul.f32 %v696_v14, %v463_v15 }
  0xee   : > { %v465_v17 = vmul.f32 0.5, %v464_v16 }
  0xf0   : > { %v466_v18 = vsub.f32 1.5, %v465_v17 }
  0xf2   : > { %v467_v19 = vmul.f32 %v696_v14, %v466_v18 }
  0xf4   : > { %v471_v20 = vsel %vm470_vm4, %v696_v14, %v467_v19 }
  0xf5   : > { %v472_v21 = vmul.f32 %v471_v20, %v447_v63  ;;  %v473_v22 = vmul.f32 %v471_v20, %v448_v0 }
  0xf7   : > { %v474_v23 = vmax.f32 %v472_v21, 0.0  ;;  %v475_v24 = vmax.f32 %v473_v22, 0.0 }
  0xf9   : > { %v476_v25 = vpack.c.bf16 %v474_v23, %v474_v23  ;;  %v477_v26 = vpack.c.bf16 %v475_v24, %v475_v24 }
  0xfb   : > { %479 = vst.msk [vmem:[%s170_s21] sm:$0xf] %vm478_vm5, %v476_v25 }
  0xfc   : > { %480 = vst.msk [vmem:[%s170_s21 + $0x4] sm:$0xf] %vm478_vm5, %v477_v26 }
  0xfd PF: > { %s13_s12 = sadd.s32 1, %s703_s12  }
  0xfe   : > { %p10_p4 = scmp.ge.s32.totalorder %s13_s12, 4  }
 0x100   :  { %12 = sbr.rel (!%p10_p4) target bundleno = 1 (0x1), region = 62 }

// kernel: generator_forward.15
= control target key start
LH: loop header
LB: loop body
LE: loop exit
PB: predicated region body
PF: predicated region fallthrough
CT: control target
= control target key end

     0   :  { %s801_s15 = smov 0   ;;  %s908_s0 = inlined_call_operand.vmem [shape: bf16[2,16,384], index: 0, kind: input, shape index: {}]   ;;  %s909_s1 = inlined_call_operand.vmem [shape: bf16[384,32], index: 1, kind: input, shape index: {}]   ;;  %s910_s2 = inlined_call_operand.vmem [shape: f32[1,32], index: 2, kind: input, shape index: {}]   ;;  %s911_s3 = inlined_call_operand.vmem [shape: bf16[2,16,32], index: 3, kind: input, shape index: {}]   ;;  %s912_s4 = inlined_call_operand.vmem [shape: bf16[2,16,32], index: 4, kind: output, shape index: {}]  }
   0x1 LB: > { %s599_s16 = sadd.s32 4294967295, %s773_s15   ;;  %p603_p0 = scmp.ge.s32.totalorder %s773_s15, 1  ;;  %s773_s15 = sphi %s801_s15, %s14_s15  }
   0x2   : > { %p172_p1 = scmp.lt.s32.totalorder %s773_s15, 3 }
   0x4   : > { %p173_p2 = pnand %p603_p0, %p172_p1 }
   0x5   : > { %p203_p3 = scmp.lt.s32.totalorder (!%p173_p2), %s599_s16, 1 }
   0x6   : > { %176 = sbr.rel (%p173_p2) target bundleno = 253 (0xfd), region = 36 }
   0xb   : > { %v731_v0 = vld [vmem:[%s909_s1 + $0x38] sm:$0xff]  ;;  %v730_v3 = vld [vmem:[%s909_s1 + $0x30] sm:$0xff]  ;;  %v729_v6 = vld [vmem:[%s909_s1 + $0x28] sm:$0xff]  ;;  %s914_s16 = smov (!%p203_p3, %s599_s16), 1  ;;  %v775_v36 = vmov 16.0   ;;  %vm476_vm0 = vcmask 261120  }
   0xc   : > { %v739_v1 = vld [vmem:[%s909_s1 + $0x78] sm:$0xff]  ;;  %434 = vmatpush.bf16.msra.mxu0 %v731_v0  ;;  %v738_v4 = vld [vmem:[%s909_s1 + $0x70] sm:$0xff]  ;;  %v737_v7 = vld [vmem:[%s909_s1 + $0x68] sm:$0xff]  ;;  %s752_s27 = smul.u32 24, %s914_s16  ;;  %763 = vrcp.f32 %v775_v36  ;;  %s719_s23 = sshll.u32 %s914_s16, 3  ;;  %vm529_vm5 = vcmask 257024  }
   0xd   : > { %v747_v2 = vld [vmem:[%s909_s1 + $0xb8] sm:$0xff]  ;;  %448 = vmatpush.bf16.msra.mxu1 %v739_v1  ;;  %v746_v5 = vld [vmem:[%s909_s1 + $0xb0] sm:$0xff]  ;;  %v745_v8 = vld [vmem:[%s909_s1 + $0xa8] sm:$0xff]  ;;  %s212_s26 = scalar_lea.vmem %s911_s3, %s719_s23  ;;  %s217_s28 = scalar_lea.vmem %s912_s4, %s719_s23 }
   0xe   : > { %462 = vmatpush.bf16.msra.mxu2 %v747_v2  ;;  %v728_v9 = vld [vmem:[%s909_s1 + $0x20] sm:$0xff]  ;;  %v727_v12 = vld [vmem:[%s909_s1 + $0x18] sm:$0xff]  ;;  %v726_v15 = vld [vmem:[%s909_s1 + $0x10] sm:$0xff]  ;;  %s207_s10 = scalar_lea.vmem %s908_s0, %s752_s27 }
   0xf   : > { %v736_v10 = vld [vmem:[%s909_s1 + $0x60] sm:$0xff]  ;;  %v735_v13 = vld [vmem:[%s909_s1 + $0x58] sm:$0xff]  ;;  %v734_v16 = vld [vmem:[%s909_s1 + $0x50] sm:$0xff] }
  0x10   : > { %435 = vmatpush.bf16.msra.mxu0 %v730_v3  ;;  %v744_v11 = vld [vmem:[%s909_s1 + $0xa0] sm:$0xff]  ;;  %v743_v14 = vld [vmem:[%s909_s1 + $0x98] sm:$0xff]  ;;  %v742_v17 = vld [vmem:[%s909_s1 + $0x90] sm:$0xff] }
  0x11   : > { %449 = vmatpush.bf16.msra.mxu1 %v738_v4  ;;  %v725_v18 = vld [vmem:[%s909_s1 + $0x8] sm:$0xff]  ;;  %v724_v21 = vld [vmem:[%s909_s1] sm:$0xff]  ;;  %v613_v26 = vld [vmem:[%s207_s10 + $0xc] sm:$0xf0] }
  0x12   : > { %463 = vmatpush.bf16.msra.mxu2 %v746_v5  ;;  %v733_v19 = vld [vmem:[%s909_s1 + $0x48] sm:$0xff]  ;;  %v732_v22 = vld [vmem:[%s909_s1 + $0x40] sm:$0xff]  ;;  %v723_v29 = vld [vmem:[%s207_s10 + $0x10] sm:$0xf0]  ;;  %v764_v42 = vpop.eup %763 }
  0x13   : > { %v741_v20 = vld [vmem:[%s909_s1 + $0x88] sm:$0xff]  ;;  %v611_v23 = vld [vmem:[%s207_s10] sm:$0xf]  ;;  %v721_v25 = vld [vmem:[%s207_s10 + $0x4] sm:$0xf]  ;;  %v487_v46 = vmul.f32 16.0, %v764_v42  ;;  %vm491_vm1 = vweird.f32 %v764_v42 }
  0x14   : > { %436 = vmatpush.bf16.msra.mxu0 %v729_v6  ;;  %v722_v24 = vld [vmem:[%s207_s10 + $0x8] sm:$0xf0]  ;;  %v740_v27 = vld [vmem:[%s909_s1 + $0x80] sm:$0xff]  ;;  %v619_v28 = vld [vmem:[%s207_s10 + $0x8] sm:$0xf]  ;;  %v616_v31 = vor.u32 %v721_v25, %v613_v26 }
  0x15   : > { %450 = vmatpush.bf16.msra.mxu1 %v737_v7  ;;  %v612_v30 = vor.u32 %v722_v24, %v611_v23  ;;  %v620_v32 = vor.u32 %v723_v29, %v619_v28  ;;  %v762_v34 = vld [vmem:[%s910_s2] ss:$0 sm:$0xff]  ;;  %v488_v51 = vsub.f32 1.0, %v487_v46 }
  0x16   : > { %464 = vmatpush.bf16.msra.mxu2 %v745_v8 }
  0x17   : > { %v489_v54 = vmul.f32 %v764_v42, %v488_v51 }
  0x18   : > { %437 = vmatpush.bf16.msra.mxu0 %v728_v9 }
  0x19   : > { %451 = vmatpush.bf16.msra.mxu1 %v736_v10  ;;  %v490_v57 = vadd.f32 %v764_v42, %v489_v54 }
  0x1a   : > { %465 = vmatpush.bf16.msra.mxu2 %v744_v11 }
  0x1b   : > { %v492_v60 = vsel %vm491_vm1, %v764_v42, %v490_v57 }
  0x1c   : > { %438 = vmatpush.bf16.msra.mxu0 %v727_v12 }
  0x1d   : > { %452 = vmatpush.bf16.msra.mxu1 %v735_v13 }
  0x1e   : > { %466 = vmatpush.bf16.msra.mxu2 %v743_v14 }
  0x20   : > { %439 = vmatpush.bf16.msra.mxu0 %v726_v15 }
  0x21   : > { %453 = vmatpush.bf16.msra.mxu1 %v734_v16 }
  0x22   : > { %467 = vmatpush.bf16.msra.mxu2 %v742_v17 }
  0x24   : > { %440 = vmatpush.bf16.msra.mxu0 %v725_v18 }
  0x25   : > { %454 = vmatpush.bf16.msra.mxu1 %v733_v19  ;;  %v749_v19 = vld [vmem:[%s212_s26] sm:$0xff]  }
  0x26   : > { %468 = vmatpush.bf16.msra.mxu2 %v741_v20 }
  0x28   : > { %441 = vmatpush.bf16.msra.mxu0 %v724_v21  ;;  %v750_v21 = vunpack.c.l.bf16 %v749_v19 }
  0x29   : > { %455 = vmatpush.bf16.msra.mxu1 %v732_v22  ;;  %v751_v22 = vunpack.c.h.bf16 %v749_v19 }
  0x2a   : > { %469 = vmatpush.bf16.msra.mxu2 %v740_v27 }
  0x2b   : > { %442 = vmatmul.bf16.vlgmr.msra.gmra.mxu0 %v612_v30 }
  0x2c   : > { %456 = vmatmul.bf16.vlgmr.msra.gmra.mxu1 %v616_v31 }
  0x2d   : > { %470 = vmatmul.bf16.vlgmr.msra.gmra.mxu2 %v620_v32 }
  0xa8   : > { %v443_v33 = vpop.f32.mrf.mxu0 }
  0xa9   : > { %v457_v35 = vpop.f32.mrf.mxu1  ;;  %v444_v37 = vadd.f32 %v762_v34, %v443_v33 }
  0xab   : > { %v458_v40 = vadd.f32 %v457_v35, %v444_v37 }
  0xb0   : > { %v471_v38 = vpop.f32.mrf.mxu2  ;;  %v445_v39 = vpop.f32.mrf.mxu0 }
  0xb1   : > { %v446_v41 = vadd.f32 %v762_v34, %v445_v39  ;;  %v459_v43 = vpop.f32.mrf.mxu1  ;;  %v472_v44 = vadd.f32 %v471_v38, %v458_v40 }
  0xb3   : > { %v460_v45 = vadd.f32 %v459_v43, %v446_v41  ;;  %v477_v49 = vsel %vm476_vm0, %v472_v44, 0.0 }
  0xb8   : > { %v473_v47 = vpop.f32.mrf.mxu2 }
  0xb9   : > { %v474_v48 = vadd.f32 %v473_v47, %v460_v45 }
  0xbb   : > { %v478_v50 = vsel %vm476_vm0, %v474_v48, 0.0 }
  0xbc   : > { %v479_v52 = vadd.f32 %v478_v50, %v477_v49 }
  0xbe   : > { %v480_v53 = vrot.slane %v479_v52, 4 }
  0xc0   : > { %v481_v55 = vadd.f32 %v480_v53, %v479_v52 }
  0xc2   : > { %v482_v56 = vrot.slane %v481_v55, 2 }
  0xc4   : > { %v483_v58 = vadd.f32 %v482_v56, %v481_v55 }
  0xc6   : > { %v484_v59 = vrot.slane %v483_v58, 1 }
  0xc8   : > { %v485_v61 = vadd.f32 %v484_v59, %v483_v58 }
  0xca   : > { %v493_v62 = vmul.f32 %v492_v60, %v485_v61 }
  0xcc   : > { %v494_v63 = vsub.f32 %v472_v44, %v493_v62  ;;  %v495_v0 = vsub.f32 %v474_v48, %v493_v62 }
  0xce   : > { %v496_v1 = vmul.f32 %v494_v63, %v494_v63  ;;  %v497_v2 = vmul.f32 %v495_v0, %v495_v0 }
  0xd0   : > { %v498_v3 = vsel %vm476_vm0, %v496_v1, 0.0  ;;  %v499_v4 = vsel %vm476_vm0, %v497_v2, 0.0 }
  0xd1   : > { %v500_v5 = vadd.f32 %v499_v4, %v498_v3 }
  0xd3   : > { %v501_v6 = vrot.slane %v500_v5, 4 }
  0xd5   : > { %v502_v7 = vadd.f32 %v501_v6, %v500_v5 }
  0xd7   : > { %v503_v8 = vrot.slane %v502_v7, 2 }
  0xd9   : > { %v504_v9 = vadd.f32 %v503_v8, %v502_v7 }
  0xdb   : > { %v505_v10 = vrot.slane %v504_v9, 1 }
  0xdd   : > { %v506_v11 = vadd.f32 %v505_v10, %v504_v9 }
  0xdf   : > { %v507_v12 = vmul.f32 %v506_v11, %v492_v60 }
  0xe1   : > { %v508_v13 = vadd.f32 1e-05, %v507_v12 }
  0xe3   : > { %765 = vrsqrt.f32 %v508_v13  ;;  %vm515_vm3 = vweird.f32 %v508_v13 }
  0xe9   : > { %v766_v14 = vpop.eup %765 }
  0xea   : > { %v510_v15 = vmul.f32 %v766_v14, %v508_v13  ;;  %vm516_vm2 = vweird.f32 %v766_v14 }
  0xeb   : > { %vm517_vm4 = vmor %vm515_vm3, %vm516_vm2 }
  0xec   : > { %v511_v16 = vmul.f32 %v766_v14, %v510_v15 }
  0xee   : > { %v512_v17 = vmul.f32 0.5, %v511_v16 }
  0xf0   : > { %v513_v18 = vsub.f32 1.5, %v512_v17 }
  0xf2   : > { %v514_v20 = vmul.f32 %v766_v14, %v513_v18 }
  0xf4   : > { %v518_v23 = vsel %vm517_vm4, %v766_v14, %v514_v20 }
  0xf5   : > { %v519_v24 = vmul.f32 %v518_v23, %v494_v63  ;;  %v520_v25 = vmul.f32 %v518_v23, %v495_v0 }
  0xf7   : > { %v525_v26 = vadd.f32 %v750_v21, %v519_v24  ;;  %v526_v27 = vadd.f32 %v751_v22, %v520_v25 }
  0xf9   : > { %v527_v28 = vpack.c.bf16 %v525_v26, %v525_v26  ;;  %v528_v29 = vpack.c.bf16 %v526_v27, %v526_v27 }
  0xfb   : > { %530 = vst.msk [vmem:[%s217_s28] sm:$0xf] %vm529_vm5, %v527_v28 }
  0xfc   : > { %531 = vst.msk [vmem:[%s217_s28 + $0x4] sm:$0xf] %vm529_vm5, %v528_v29 }
  0xfd PF: > { %s14_s15 = sadd.s32 1, %s773_s15  }
  0xfe   : > { %p11_p4 = scmp.ge.s32.totalorder %s14_s15, 4  }
 0x100   :  { %13 = sbr.rel (!%p11_p4) target bundleno = 1 (0x1), region = 69 }

// kernel: generator_forward.18
= control target key start
LH: loop header
LB: loop body
LE: loop exit
PB: predicated region body
PF: predicated region fallthrough
CT: control target
= control target key end

     0   :  { %s429_s18 = smov 0   ;;  %s469_s0 = inlined_call_operand.vmem [shape: bf16[2,16,32], index: 0, kind: input, shape index: {}]   ;;  %s470_s1 = inlined_call_operand.vmem [shape: f32[2,32], index: 1, kind: input, shape index: {}]   ;;  %s471_s2 = inlined_call_operand.vmem [shape: f32[2,1], index: 2, kind: input, shape index: {}]   ;;  %s472_s3 = inlined_call_operand.vmem [shape: f32[2,32], index: 3, kind: input, shape index: {}]   ;;  %s473_s4 = inlined_call_operand.vmem [shape: f32[1,32], index: 4, kind: input, shape index: {}]   ;;  %s474_s5 = inlined_call_operand.vmem [shape: bf16[2,16,32], index: 5, kind: output, shape index: {}]  }
   0x1 LB: > { %s354_s19 = sadd.s32 4294967295, %s395_s18   ;;  %p358_p0 = scmp.ge.s32.totalorder %s395_s18, 1  ;;  %s395_s18 = sphi %s429_s18, %s15_s18  }
   0x2   : > { %p187_p1 = scmp.lt.s32.totalorder %s395_s18, 3 }
   0x4   : > { %p188_p2 = pnand %p358_p0, %p187_p1 }
   0x5   : > { %p215_p3 = scmp.lt.s32.totalorder (!%p188_p2), %s354_s19, 1 }
   0x6   : > { %191 = sbr.rel (%p188_p2) target bundleno = 325 (0x145), region = 40 }
   0xb   : > { %v397_v0 = vmov 16.0   ;;  %s476_s19 = smov (!%p215_p3, %s354_s19), 1  ;;  %vm229_vm0 = vcmask 261120   ;;  %v247_v19 = vld [vmem:[%s470_s1] sm:$0x3]  ;;  %vm249_vm2 = vcmask 254976  }
   0xc   : > { %383 = vrcp.f32 %v397_v0  ;;  %s366_s20 = sshll.u32 %s476_s19, 3  ;;  %v398_v23 = vmov 0   ;;  %v253_v24 = vld [vmem:[%s471_s2] sm:$0x3]  ;;  %vm296_vm7 = vcmask 257024  }
   0xd   : > { %s219_s23 = scalar_lea.vmem %s469_s0, %s366_s20  ;;  %382 = vset.pattern.permute.xlu0 %v398_v23  ;;  %v256_v28 = vld [vmem:[%s472_s3] sm:$0x3]  ;;  %s224_s9 = scalar_lea.vmem %s474_s5, %s366_s20 }
   0xe   : > { %v445_v1 = vld [vmem:[%s219_s23] sm:$0xff]  }
   0xf   : > { %v370_v3 = vunpack.c.l.bf16 %v445_v1  ;;  %v371_v4 = vunpack.c.h.bf16 %v445_v1  ;;  %v270_v37 = vld [vmem:[%s473_s4] sm:$0x1] }
  0x11   : > { %v230_v6 = vsel %vm229_vm0, %v370_v3, 0.0  ;;  %v231_v7 = vsel %vm229_vm0, %v371_v4, 0.0 }
  0x12   : > { %v384_v2 = vpop.eup %383  ;;  %v232_v8 = vadd.f32 %v231_v7, %v230_v6 }
  0x13   : > { %v240_v5 = vmul.f32 16.0, %v384_v2  ;;  %vm244_vm1 = vweird.f32 %v384_v2 }
  0x14   : > { %v233_v10 = vrot.slane %v232_v8, 4 }
  0x15   : > { %v241_v9 = vsub.f32 1.0, %v240_v5 }
  0x16   : > { %v234_v12 = vadd.f32 %v233_v10, %v232_v8 }
  0x17   : > { %v242_v11 = vmul.f32 %v384_v2, %v241_v9 }
  0x18   : > { %v235_v13 = vrot.slane %v234_v12, 2 }
  0x19   : > { %v243_v14 = vadd.f32 %v384_v2, %v242_v11 }
  0x1a   : > { %v236_v15 = vadd.f32 %v235_v13, %v234_v12 }
  0x1b   : > { %v245_v17 = vsel %vm244_vm1, %v384_v2, %v243_v14 }
  0x1c   : > { %v237_v16 = vrot.slane %v236_v15, 1 }
  0x1e   : > { %v238_v18 = vadd.f32 %v237_v16, %v236_v15 }
  0x20   : > { %v246_v20 = vmul.f32 %v245_v17, %v238_v18 }
  0x22   : > { %v248_v21 = vmul.f32 %v247_v19, %v246_v20 }
  0x24   : > { %v250_v22 = vsel %vm249_vm2, %v248_v21, 0.0 }
  0x25   : > { %251 = vadd.xlane.f32.xlu0 %v250_v22 }
  0x98   : > { %v252_v25 = vpop.xlane.xlu0 %251 }
  0x99   : > { %v254_v26 = vadd.f32 %v253_v24, %v252_v25 }
  0x9b   : > { %v255_v27 = vmax.f32 %v254_v26, 0.0 }
  0x9d   : > { %259 = vperm.xlu0 %382, %v255_v27  }
 0x10f   : > { %v260_v29 = vpop.permute.xlu0 %259 }
 0x110   : > { %v262_v30 = vmul.f32 %v260_v29, %v256_v28 }
 0x112   : > { %v263_v31 = vsel %vm249_vm2, %v262_v30, 0.0 }
 0x113   : > { %v264_v32 = vrot.slane %v263_v31, 4 }
 0x115   : > { %v265_v33 = vadd.f32 %v264_v32, %v263_v31 }
 0x117   : > { %v266_v34 = vrot.slane %v265_v33, 2 }
 0x119   : > { %v267_v35 = vadd.f32 %v266_v34, %v265_v33 }
 0x11b   : > { %v268_v36 = vrot.slane %v267_v35, 1 }
 0x11d   : > { %v269_v38 = vadd.f32 %v268_v36, %v267_v35 }
 0x11f   : > { %v271_v39 = vadd.f32 %v270_v37, %v269_v38 }
 0x121   : > { %v363_v40 = vmul.f32 -1.442695, %v271_v39 }
 0x123   : > { %385 = vpow2.f32 %v363_v40 }
 0x129   : > { %v386_v41 = vpop.eup %385 }
 0x12a   : > { %v275_v42 = vadd.f32 1.0, %v386_v41 }
 0x12c   : > { %387 = vrcp.f32 %v275_v42  ;;  %v287_v46 = vand.u32 2147483648, %v275_v42  ;;  %v285_v48 = vand.u32 2147483647, %v275_v42  ;;  %vm281_vm4 = vweird.f32 %v275_v42 }
 0x12e   : > { %v288_v50 = vor.u32 1.1754944e-38, %v287_v46  ;;  %vm286_vm6 = vcmp.eq.f32.partialorder %v285_v48, 8.507059e+37 }
 0x132   : > { %v388_v43 = vpop.eup %387 }
 0x133   : > { %v277_v44 = vmul.f32 %v388_v43, %v275_v42  ;;  %vm282_vm3 = vweird.f32 %v388_v43 }
 0x134   : > { %vm283_vm5 = vmor %vm281_vm4, %vm282_vm3 }
 0x135   : > { %v278_v45 = vsub.f32 1.0, %v277_v44 }
 0x137   : > { %v279_v47 = vmul.f32 %v388_v43, %v278_v45 }
 0x139   : > { %v280_v49 = vadd.f32 %v388_v43, %v279_v47 }
 0x13b   : > { %v284_v51 = vsel %vm283_vm5, %v388_v43, %v280_v49 }
 0x13c   : > { %v289_v52 = vsel %vm286_vm6, %v288_v50, %v284_v51 }
 0x13d   : > { %v291_v53 = vperm.slane %v289_v52, 0 }
 0x13f   : > { %v292_v54 = vmul.f32 %v370_v3, %v291_v53  ;;  %v293_v55 = vmul.f32 %v371_v4, %v291_v53 }
 0x141   : > { %v294_v56 = vpack.c.bf16 %v292_v54, %v292_v54  ;;  %v295_v57 = vpack.c.bf16 %v293_v55, %v293_v55 }
 0x143   : > { %297 = vst.msk [vmem:[%s224_s9] sm:$0xf] %vm296_vm7, %v294_v56 }
 0x144   : > { %298 = vst.msk [vmem:[%s224_s9 + $0x4] sm:$0xf] %vm296_vm7, %v295_v57 }
 0x145 PF: > { %s15_s18 = sadd.s32 1, %s395_s18  }
 0x146   : > { %p12_p4 = scmp.ge.s32.totalorder %s15_s18, 4  }
 0x148   :  { %14 = sbr.rel (!%p12_p4) target bundleno = 1 (0x1), region = 70 }

// kernel: generator_forward.19
= control target key start
LH: loop header
LB: loop body
LE: loop exit
PB: predicated region body
PF: predicated region fallthrough
CT: control target
= control target key end

     0   :  { %s553_s12 = smov 0   ;;  %s626_s0 = inlined_call_operand.vmem [shape: bf16[2,16,128], index: 0, kind: input, shape index: {}]   ;;  %s627_s1 = inlined_call_operand.vmem [shape: bf16[128,64], index: 1, kind: input, shape index: {}]   ;;  %s628_s2 = inlined_call_operand.vmem [shape: f32[1,64], index: 2, kind: input, shape index: {}]   ;;  %s629_s3 = inlined_call_operand.vmem [shape: bf16[2,16,64], index: 3, kind: output, shape index: {}]  }
   0x1 LB: > { %s436_s13 = sadd.s32 4294967295, %s523_s12   ;;  %p440_p0 = scmp.ge.s32.totalorder %s523_s12, 1  ;;  %s523_s12 = sphi %s553_s12, %s13_s12  }
   0x2   : > { %p137_p1 = scmp.lt.s32.totalorder %s523_s12, 3 }
   0x4   : > { %p138_p2 = pnand %p440_p0, %p137_p1 }
   0x5   : > { %p161_p3 = scmp.lt.s32.totalorder (!%p138_p2), %s436_s13, 1  ;;  %s526_s9 = smov (!%p138_p2), 80  }
   0x6   : > { %141 = sbr.rel (%p138_p2) target bundleno = 739 (0x2e3), region = 32  ;;  %s527_s10 = smov (!%p138_p2), 112  }
   0x7   : > { %s528_s11 = smov (!%p138_p2), 96   ;;  %s530_s14 = smov (!%p138_p2), 32  }
   0x8   : > { %s531_s15 = smov (!%p138_p2), 16   ;;  %s532_s16 = smov (!%p138_p2), 48  }
   0xb   : > { %v493_v0 = vld [vmem:[%s627_s1 + $0x38] sm:$0xff]  ;;  %v492_v1 = vld [vmem:[%s627_s1 + $0x30] sm:$0xff]  ;;  %v491_v2 = vld [vmem:[%s627_s1 + $0x28] sm:$0xff]  ;;  %s631_s13 = smov (!%p161_p3, %s436_s13), 1  ;;  %v525_v9 = vmov 16.0   ;;  %vm261_vm0 = vcmask 523264  }
   0xc   : > { %247 = vmatpush.bf16.msra.mxu0 %v493_v0  ;;  %v490_v3 = vld [vmem:[%s627_s1 + $0x20] sm:$0xff]  ;;  %v489_v4 = vld [vmem:[%s627_s1 + $0x18] sm:$0xff]  ;;  %v488_v5 = vld [vmem:[%s627_s1 + $0x10] sm:$0xff]  ;;  %s483_s28 = sshll.u32 %s631_s13, 3  ;;  %511 = vrcp.f32 %v525_v9  ;;  %v529_v31 = vmov 4.0   ;;  %vm311_vm3 = vcmask 130048  }
   0xd   : > { %v487_v6 = vld [vmem:[%s627_s1 + $0x8] sm:$0xff]  ;;  %v486_v7 = vld [vmem:[%s627_s1] sm:$0xff]  ;;  %s165_s6 = scalar_lea.vmem %s626_s0, %s483_s28  ;;  %513 = vrcp.f32 %v529_v31  ;;  %vm313_vm4 = vcmask 261120   ;;  %vm315_vm5 = vcmask 392192   ;;  %s170_s19 = scalar_lea.vmem %s629_s3, %s483_s28  ;;  %vm378_vm9 = vcmask 519168  }
   0xe   : > { %v485_v8 = vld [vmem:[%s165_s6] sm:$0xff] }
   0xf   : > { %v510_v11 = vld [vmem:[%s628_s2] ss:$0 sm:$0xff] }
  0x10   : > { %248 = vmatpush.bf16.msra.mxu0 %v492_v1 }
  0x12   : > { %v512_v12 = vpop.eup %511 }
  0x13   : > { %v272_v14 = vmul.f32 16.0, %v512_v12  ;;  %vm276_vm1 = vweird.f32 %v512_v12  ;;  %v514_v32 = vpop.eup %513 }
  0x14   : > { %249 = vmatpush.bf16.msra.mxu0 %v491_v2  ;;  %v294_v33 = vmul.f32 4.0, %v514_v32  ;;  %vm298_vm2 = vweird.f32 %v514_v32 }
  0x15   : > { %v273_v19 = vsub.f32 1.0, %v272_v14 }
  0x16   : > { %v295_v34 = vsub.f32 1.0, %v294_v33 }
  0x17   : > { %v274_v22 = vmul.f32 %v512_v12, %v273_v19 }
  0x18   : > { %250 = vmatpush.bf16.msra.mxu0 %v490_v3  ;;  %v296_v36 = vmul.f32 %v514_v32, %v295_v34 }
  0x19   : > { %v275_v25 = vadd.f32 %v512_v12, %v274_v22 }
  0x1a   : > { %v297_v37 = vadd.f32 %v514_v32, %v296_v36 }
  0x1b   : > { %v277_v28 = vsel %vm276_vm1, %v512_v12, %v275_v25 }
  0x1c   : > { %251 = vmatpush.bf16.msra.mxu0 %v489_v4  ;;  %v299_v42 = vsel %vm298_vm2, %v514_v32, %v297_v37 }
  0x20   : > { %252 = vmatpush.bf16.msra.mxu0 %v488_v5 }
  0x24   : > { %253 = vmatpush.bf16.msra.mxu0 %v487_v6 }
  0x28   : > { %254 = vmatpush.bf16.msra.mxu0 %v486_v7 }
  0x2b   : > { %255 = vmatmul.bf16.vlgmr.msra.gmra.mxu0 %v485_v8 }
  0xa8   : > { %v256_v10 = vpop.f32.mrf.mxu0 }
  0xa9   : > { %v257_v13 = vadd.f32 %v510_v11, %v256_v10 }
  0xab   : > { %v262_v17 = vsel %vm261_vm0, %v257_v13, 0.0 }
  0xb0   : > { %v258_v15 = vpop.f32.mrf.mxu0 }
  0xb1   : > { %v259_v16 = vadd.f32 %v510_v11, %v258_v15 }
  0xb3   : > { %v263_v18 = vsel %vm261_vm0, %v259_v16, 0.0 }
  0xb4   : > { %v264_v20 = vadd.f32 %v263_v18, %v262_v17 }
  0xb6   : > { %v265_v21 = vrot.slane %v264_v20, 4 }
  0xb8   : > { %v266_v23 = vadd.f32 %v265_v21, %v264_v20 }
  0xba   : > { %v267_v24 = vrot.slane %v266_v23, 2 }
  0xbc   : > { %v268_v26 = vadd.f32 %v267_v24, %v266_v23 }
  0xbe   : > { %v269_v27 = vrot.slane %v268_v26, 1 }
  0xc0   : > { %v270_v29 = vadd.f32 %v269_v27, %v268_v26 }
  0xc2   : > { %v278_v30 = vmul.f32 %v277_v28, %v270_v29 }
  0xc4   : > { %289 = vrot.lane.b32.xlu1 %v278_v30, %s526_s9  ;;  %281 = vrot.lane.b32.xlu0 %v278_v30, %s527_s10 }
  0xcc   : > { %285 = vrot.lane.b32.xlu0 %v278_v30, %s528_s11 }
 0x136   : > { %v282_v35 = vpop.permute.xlu0 %281  ;;  %v290_v41 = vpop.permute.xlu1 %289 }
 0x137   : > { %v284_v38 = vadd.f32 %v282_v35, %v278_v30 }
 0x13e   : > { %v286_v39 = vpop.permute.xlu0 %285 }
 0x13f   : > { %v288_v40 = vadd.f32 %v286_v39, %v284_v38 }
 0x141   : > { %v292_v43 = vadd.f32 %v290_v41, %v288_v40 }
 0x143   : > { %v300_v44 = vmul.f32 %v299_v42, %v292_v43 }
 0x145   : > { %305 = vrot.lane.b32.xlu2 %v300_v44, %s530_s14  ;;  %302 = vrot.lane.b32.xlu1 %v300_v44, %s531_s15 }
 0x14d   : > { %308 = vrot.lane.b32.xlu2 %v300_v44, %s532_s16 }
 0x19f   : > { %v306_v45 = vpop.permute.xlu2 %305 }
 0x1a7   : > { %v309_v48 = vpop.permute.xlu2 %308 }
 0x1b7   : > { %v303_v46 = vpop.permute.xlu1 %302 }
 0x1b8   : > { %v312_v47 = vsel %vm311_vm3, %v300_v44, %v303_v46 }
 0x1b9   : > { %v314_v49 = vsel %vm313_vm4, %v312_v47, %v306_v45 }
 0x1ba   : > { %v316_v50 = vsel %vm315_vm5, %v314_v49, %v309_v48 }
 0x1bb   : > { %v317_v51 = vperm.slane %v316_v50, 0 }
 0x1bd   : > { %v318_v52 = vsub.f32 %v257_v13, %v317_v51  ;;  %v319_v53 = vsub.f32 %v259_v16, %v317_v51 }
 0x1bf   : > { %v320_v54 = vmul.f32 %v318_v52, %v318_v52  ;;  %v321_v55 = vmul.f32 %v319_v53, %v319_v53 }
 0x1c1   : > { %v322_v56 = vsel %vm261_vm0, %v320_v54, 0.0  ;;  %v323_v57 = vsel %vm261_vm0, %v321_v55, 0.0 }
 0x1c2   : > { %v324_v58 = vadd.f32 %v323_v57, %v322_v56 }
 0x1c4   : > { %v325_v59 = vrot.slane %v324_v58, 4 }
 0x1c6   : > { %v326_v60 = vadd.f32 %v325_v59, %v324_v58 }
 0x1c8   : > { %v327_v61 = vrot.slane %v326_v60, 2 }
 0x1ca   : > { %v328_v62 = vadd.f32 %v327_v61, %v326_v60 }
 0x1cc   : > { %v329_v63 = vrot.slane %v328_v62, 1 }
 0x1ce   : > { %v330_v0 = vadd.f32 %v329_v63, %v328_v62 }
 0x1d0   : > { %v331_v1 = vmul.f32 %v330_v0, %v277_v28 }
 0x1d2   : > { %342 = vrot.lane.b32.xlu2 %v331_v1, %s526_s9  ;;  %338 = vrot.lane.b32.xlu1 %v331_v1, %s528_s11 }
 0x1d3   : > { %334 = vrot.lane.b32.xlu0 %v331_v1, %s527_s10 }
 0x22c   : > { %v343_v6 = vpop.permute.xlu2 %342 }
 0x244   : > { %v339_v4 = vpop.permute.xlu1 %338 }
 0x245   : > { %v335_v2 = vpop.permute.xlu0 %334 }
 0x246   : > { %v337_v3 = vadd.f32 %v335_v2, %v331_v1 }
 0x248   : > { %v341_v5 = vadd.f32 %v339_v4, %v337_v3 }
 0x24a   : > { %v345_v7 = vadd.f32 %v343_v6, %v341_v5 }
 0x24c   : > { %v346_v8 = vmul.f32 %v345_v7, %v299_v42 }
 0x24e   : > { %v347_v9 = vadd.f32 1e-05, %v346_v8 }
 0x250   : > { %515 = vrsqrt.f32 %v347_v9  ;;  %vm354_vm7 = vweird.f32 %v347_v9 }
 0x256   : > { %v516_v10 = vpop.eup %515 }
 0x257   : > { %v349_v11 = vmul.f32 %v516_v10, %v347_v9  ;;  %vm355_vm6 = vweird.f32 %v516_v10 }
 0x258   : > { %vm356_vm8 = vmor %vm354_vm7, %vm355_vm6 }
 0x259   : > { %v350_v12 = vmul.f32 %v516_v10, %v349_v11 }
 0x25b   : > { %v351_v13 = vmul.f32 0.5, %v350_v12 }
 0x25d   : > { %v352_v14 = vsub.f32 1.5, %v351_v13 }
 0x25f   : > { %v353_v15 = vmul.f32 %v516_v10, %v352_v14 }
 0x261   : > { %v357_v16 = vsel %vm356_vm8, %v516_v10, %v353_v15 }
 0x262   : > { %365 = vrot.lane.b32.xlu2 %v357_v16, %s532_s16  ;;  %362 = vrot.lane.b32.xlu1 %v357_v16, %s530_s14 }
 0x263   : > { %359 = vrot.lane.b32.xlu0 %v357_v16, %s531_s15 }
 0x2bc   : > { %v366_v20 = vpop.permute.xlu2 %365 }
 0x2d4   : > { %v363_v17 = vpop.permute.xlu1 %362 }
 0x2d5   : > { %v360_v18 = vpop.permute.xlu0 %359 }
 0x2d6   : > { %v368_v19 = vsel %vm311_vm3, %v357_v16, %v360_v18 }
 0x2d7   : > { %v369_v21 = vsel %vm313_vm4, %v368_v19, %v363_v17 }
 0x2d8   : > { %v370_v22 = vsel %vm315_vm5, %v369_v21, %v366_v20 }
 0x2d9   : > { %v371_v23 = vperm.slane %v370_v22, 0 }
 0x2db   : > { %v372_v24 = vmul.f32 %v371_v23, %v318_v52  ;;  %v373_v25 = vmul.f32 %v371_v23, %v319_v53 }
 0x2dd   : > { %v374_v26 = vmax.f32 %v372_v24, 0.0  ;;  %v375_v27 = vmax.f32 %v373_v25, 0.0 }
 0x2df   : > { %v376_v28 = vpack.c.bf16 %v374_v26, %v374_v26  ;;  %v377_v29 = vpack.c.bf16 %v375_v27, %v375_v27 }
 0x2e1   : > { %379 = vst.msk [vmem:[%s170_s19] sm:$0xf] %vm378_vm9, %v376_v28 }
 0x2e2   : > { %380 = vst.msk [vmem:[%s170_s19 + $0x4] sm:$0xf] %vm378_vm9, %v377_v29 }
 0x2e3 PF: > { %s13_s12 = sadd.s32 1, %s523_s12  }
 0x2e4   : > { %p10_p4 = scmp.ge.s32.totalorder %s13_s12, 4  }
 0x2e6   :  { %12 = sbr.rel (!%p10_p4) target bundleno = 1 (0x1), region = 62 }

// kernel: generator_forward.20
= control target key start
LH: loop header
LB: loop body
LE: loop exit
PB: predicated region body
PF: predicated region fallthrough
CT: control target
= control target key end

     0   :  { %s691_s12 = smov 0   ;;  %s863_s0 = inlined_call_operand.vmem [shape: bf16[2,64,128], index: 0, kind: input, shape index: {}]   ;;  %s864_s1 = inlined_call_operand.vmem [shape: bf16[128,32], index: 1, kind: input, shape index: {}]   ;;  %s865_s2 = inlined_call_operand.vmem [shape: f32[1,32], index: 2, kind: input, shape index: {}]   ;;  %s866_s3 = inlined_call_operand.vmem [shape: bf16[2,64,32], index: 3, kind: output, shape index: {}]  }
   0x1 LB: > { %s535_s13 = sadd.s32 4294967295, %s661_s12   ;;  %p539_p0 = scmp.ge.s32.totalorder %s661_s12, 1  ;;  %s661_s12 = sphi %s691_s12, %s13_s12  }
   0x2   : > { %p137_p1 = scmp.lt.s32.totalorder %s661_s12, 3 }
   0x4   : > { %p138_p2 = pnand %p539_p0, %p137_p1 }
   0x5   : > { %p161_p3 = scmp.lt.s32.totalorder (!%p138_p2), %s535_s13, 1  ;;  %s664_s9 = smov (!%p138_p2), 104  }
   0x6   : > { %141 = sbr.rel (%p138_p2) target bundleno = 769 (0x301), region = 32  ;;  %s665_s10 = smov (!%p138_p2), 120  }
   0x7   : > { %s666_s11 = smov (!%p138_p2), 112   ;;  %s668_s14 = smov (!%p138_p2), 16  }
   0x8   : > { %s669_s15 = smov (!%p138_p2), 8   ;;  %s670_s16 = smov (!%p138_p2), 24  }
   0xb   : > { %v607_v0 = vld [vmem:[%s864_s1 + $0x38] sm:$0xff]  ;;  %v606_v1 = vld [vmem:[%s864_s1 + $0x30] sm:$0xff]  ;;  %v605_v2 = vld [vmem:[%s864_s1 + $0x28] sm:$0xff]  ;;  %s868_s13 = smov (!%p161_p3, %s535_s13), 1  ;;  %vm300_vm0 = vcmask 261120   ;;  %v663_v22 = vmov 64.0  }
   0xc   : > { %271 = vmatpush.bf16.msra.mxu0 %v607_v0  ;;  %608 = vmatpush.bf16.msra.mxu1 %v607_v0  ;;  %v604_v3 = vld [vmem:[%s864_s1 + $0x20] sm:$0xff]  ;;  %v603_v4 = vld [vmem:[%s864_s1 + $0x18] sm:$0xff]  ;;  %v602_v5 = vld [vmem:[%s864_s1 + $0x10] sm:$0xff]  ;;  %s594_s28 = sshll.u32 %s868_s13, 5  ;;  %649 = vrcp.f32 %v663_v22  ;;  %v667_v58 = vmov 4.0   ;;  %vm362_vm3 = vcmask 64512  }
   0xd   : > { %609 = vmatpush.bf16.msra.mxu2 %v607_v0  ;;  %610 = vmatpush.bf16.msra.mxu3 %v607_v0  ;;  %v601_v6 = vld [vmem:[%s864_s1 + $0x8] sm:$0xff]  ;;  %v600_v7 = vld [vmem:[%s864_s1] sm:$0xff]  ;;  %s165_s6 = scalar_lea.vmem %s863_s0, %s594_s28  ;;  %651 = vrcp.f32 %v667_v58  ;;  %vm364_vm4 = vcmask 130048   ;;  %vm366_vm5 = vcmask 195584   ;;  %s170_s19 = scalar_lea.vmem %s866_s3, %s594_s28  ;;  %vm471_vm9 = vcmask 257024  }
   0xe   : > { %v596_v8 = vld [vmem:[%s165_s6] sm:$0xff]  ;;  %v597_v9 = vld [vmem:[%s165_s6 + $0x8] sm:$0xff]  ;;  %v598_v10 = vld [vmem:[%s165_s6 + $0x10] sm:$0xff] }
   0xf   : > { %v599_v11 = vld [vmem:[%s165_s6 + $0x18] sm:$0xff]  ;;  %v648_v14 = vld [vmem:[%s865_s2] ss:$0 sm:$0xff] }
  0x10   : > { %272 = vmatpush.bf16.msra.mxu0 %v606_v1  ;;  %611 = vmatpush.bf16.msra.mxu1 %v606_v1 }
  0x11   : > { %612 = vmatpush.bf16.msra.mxu2 %v606_v1  ;;  %613 = vmatpush.bf16.msra.mxu3 %v606_v1 }
  0x12   : > { %v650_v32 = vpop.eup %649 }
  0x13   : > { %v323_v41 = vmul.f32 64.0, %v650_v32  ;;  %vm327_vm1 = vweird.f32 %v650_v32  ;;  %v652_v59 = vpop.eup %651 }
  0x14   : > { %273 = vmatpush.bf16.msra.mxu0 %v605_v2  ;;  %614 = vmatpush.bf16.msra.mxu1 %v605_v2  ;;  %v345_v60 = vmul.f32 4.0, %v652_v59  ;;  %vm349_vm2 = vweird.f32 %v652_v59 }
  0x15   : > { %615 = vmatpush.bf16.msra.mxu2 %v605_v2  ;;  %616 = vmatpush.bf16.msra.mxu3 %v605_v2  ;;  %v324_v46 = vsub.f32 1.0, %v323_v41 }
  0x16   : > { %v346_v61 = vsub.f32 1.0, %v345_v60 }
  0x17   : > { %v325_v49 = vmul.f32 %v650_v32, %v324_v46 }
  0x18   : > { %274 = vmatpush.bf16.msra.mxu0 %v604_v3  ;;  %617 = vmatpush.bf16.msra.mxu1 %v604_v3  ;;  %v347_v63 = vmul.f32 %v652_v59, %v346_v61 }
  0x19   : > { %618 = vmatpush.bf16.msra.mxu2 %v604_v3  ;;  %619 = vmatpush.bf16.msra.mxu3 %v604_v3  ;;  %v326_v52 = vadd.f32 %v650_v32, %v325_v49 }
  0x1a   : > { %v348_v0 = vadd.f32 %v652_v59, %v347_v63 }
  0x1b   : > { %v770_v55 = vsel %vm327_vm1, %v650_v32, %v326_v52 }
  0x1c   : > { %275 = vmatpush.bf16.msra.mxu0 %v603_v4  ;;  %620 = vmatpush.bf16.msra.mxu1 %v603_v4 }
  0x1d   : > { %621 = vmatpush.bf16.msra.mxu2 %v603_v4  ;;  %622 = vmatpush.bf16.msra.mxu3 %v603_v4 }
  0x20   : > { %276 = vmatpush.bf16.msra.mxu0 %v602_v5  ;;  %623 = vmatpush.bf16.msra.mxu1 %v602_v5 }
  0x21   : > { %624 = vmatpush.bf16.msra.mxu2 %v602_v5  ;;  %625 = vmatpush.bf16.msra.mxu3 %v602_v5  ;;  %v776_v5 = vsel %vm349_vm2, %v652_v59, %v348_v0 }
  0x24   : > { %277 = vmatpush.bf16.msra.mxu0 %v601_v6  ;;  %626 = vmatpush.bf16.msra.mxu1 %v601_v6 }
  0x25   : > { %627 = vmatpush.bf16.msra.mxu2 %v601_v6  ;;  %628 = vmatpush.bf16.msra.mxu3 %v601_v6 }
  0x28   : > { %278 = vmatpush.bf16.msra.mxu0 %v600_v7  ;;  %629 = vmatpush.bf16.msra.mxu1 %v600_v7 }
  0x29   : > { %630 = vmatpush.bf16.msra.mxu2 %v600_v7  ;;  %631 = vmatpush.bf16.msra.mxu3 %v600_v7 }
  0x2b   : > { %279 = vmatmul.bf16.vlgmr.msra.gmra.mxu0 %v596_v8  ;;  %284 = vmatmul.bf16.vlgmr.msra.gmra.mxu1 %v597_v9 }
  0x2c   : > { %289 = vmatmul.bf16.vlgmr.msra.gmra.mxu2 %v598_v10  ;;  %294 = vmatmul.bf16.vlgmr.msra.gmra.mxu3 %v599_v11 }
  0xa8   : > { %v280_v12 = vpop.f32.mrf.mxu0  ;;  %v285_v13 = vpop.f32.mrf.mxu1 }
  0xa9   : > { %v738_v15 = vadd.f32 %v648_v14, %v280_v12  ;;  %v740_v20 = vadd.f32 %v648_v14, %v285_v13 }
  0xab   : > { %v301_v23 = vsel %vm300_vm0, %v738_v15, 0.0  ;;  %v304_v27 = vsel %vm300_vm0, %v740_v20, 0.0 }
  0xaf   : > { %v290_v16 = vpop.f32.mrf.mxu2  ;;  %v295_v17 = vpop.f32.mrf.mxu3 }
  0xb0   : > { %v282_v18 = vpop.f32.mrf.mxu0  ;;  %v287_v19 = vpop.f32.mrf.mxu1  ;;  %v752_v28 = vadd.f32 %v648_v14, %v290_v16  ;;  %v760_v37 = vadd.f32 %v648_v14, %v295_v17 }
  0xb1   : > { %v742_v21 = vadd.f32 %v648_v14, %v282_v18  ;;  %v748_v25 = vadd.f32 %v648_v14, %v287_v19 }
  0xb2   : > { %v308_v36 = vsel %vm300_vm0, %v752_v28, 0.0  ;;  %v312_v43 = vsel %vm300_vm0, %v760_v37, 0.0 }
  0xb3   : > { %v302_v24 = vsel %vm300_vm0, %v742_v21, 0.0  ;;  %v306_v30 = vsel %vm300_vm0, %v748_v25, 0.0 }
  0xb4   : > { %v303_v26 = vadd.f32 %v302_v24, %v301_v23 }
  0xb6   : > { %v305_v29 = vadd.f32 %v304_v27, %v303_v26 }
  0xb7   : > { %v292_v31 = vpop.f32.mrf.mxu2  ;;  %v297_v35 = vpop.f32.mrf.mxu3 }
  0xb8   : > { %v307_v33 = vadd.f32 %v306_v30, %v305_v29  ;;  %v756_v34 = vadd.f32 %v648_v14, %v292_v31  ;;  %v764_v40 = vadd.f32 %v648_v14, %v297_v35 }
  0xba   : > { %v309_v38 = vadd.f32 %v308_v36, %v307_v33  ;;  %v310_v39 = vsel %vm300_vm0, %v756_v34, 0.0  ;;  %v314_v45 = vsel %vm300_vm0, %v764_v40, 0.0 }
  0xbc   : > { %v311_v42 = vadd.f32 %v310_v39, %v309_v38 }
  0xbe   : > { %v313_v44 = vadd.f32 %v312_v43, %v311_v42 }
  0xc0   : > { %v315_v47 = vadd.f32 %v314_v45, %v313_v44 }
  0xc2   : > { %v316_v48 = vrot.slane %v315_v47, 4 }
  0xc4   : > { %v317_v50 = vadd.f32 %v316_v48, %v315_v47 }
  0xc6   : > { %v318_v51 = vrot.slane %v317_v50, 2 }
  0xc8   : > { %v319_v53 = vadd.f32 %v318_v51, %v317_v50 }
  0xca   : > { %v320_v54 = vrot.slane %v319_v53, 1 }
  0xcc   : > { %v321_v56 = vadd.f32 %v320_v54, %v319_v53 }
  0xce   : > { %v329_v57 = vmul.f32 %v770_v55, %v321_v56 }
  0xd0   : > { %340 = vrot.lane.b32.xlu1 %v329_v57, %s664_s9  ;;  %332 = vrot.lane.b32.xlu0 %v329_v57, %s665_s10 }
  0xd8   : > { %336 = vrot.lane.b32.xlu0 %v329_v57, %s666_s11 }
 0x142   : > { %v333_v62 = vpop.permute.xlu0 %332  ;;  %v341_v4 = vpop.permute.xlu1 %340 }
 0x143   : > { %v335_v1 = vadd.f32 %v333_v62, %v329_v57 }
 0x14a   : > { %v337_v2 = vpop.permute.xlu0 %336 }
 0x14b   : > { %v339_v3 = vadd.f32 %v337_v2, %v335_v1 }
 0x14d   : > { %v343_v6 = vadd.f32 %v341_v4, %v339_v3 }
 0x14f   : > { %v351_v7 = vmul.f32 %v776_v5, %v343_v6 }
 0x151   : > { %356 = vrot.lane.b32.xlu2 %v351_v7, %s668_s14  ;;  %353 = vrot.lane.b32.xlu1 %v351_v7, %s669_s15 }
 0x159   : > { %359 = vrot.lane.b32.xlu2 %v351_v7, %s670_s16 }
 0x1ab   : > { %v357_v8 = vpop.permute.xlu2 %356 }
 0x1b3   : > { %v360_v11 = vpop.permute.xlu2 %359 }
 0x1c3   : > { %v354_v9 = vpop.permute.xlu1 %353 }
 0x1c4   : > { %v363_v10 = vsel %vm362_vm3, %v351_v7, %v354_v9 }
 0x1c5   : > { %v365_v12 = vsel %vm364_vm4, %v363_v10, %v357_v8 }
 0x1c6   : > { %v367_v13 = vsel %vm366_vm5, %v365_v12, %v360_v11 }
 0x1c7   : > { %v368_v14 = vperm.slane %v367_v13, 0 }
 0x1c9   : > { %v786_v16 = vsub.f32 %v738_v15, %v368_v14  ;;  %v789_v17 = vsub.f32 %v742_v21, %v368_v14  ;;  %v792_v18 = vsub.f32 %v740_v20, %v368_v14  ;;  %v795_v19 = vsub.f32 %v748_v25, %v368_v14 }
 0x1ca   : > { %v798_v22 = vsub.f32 %v752_v28, %v368_v14  ;;  %v807_v21 = vsub.f32 %v756_v34, %v368_v14  ;;  %v814_v28 = vsub.f32 %v760_v37, %v368_v14  ;;  %v376_v32 = vsub.f32 %v764_v40, %v368_v14 }
 0x1cb   : > { %v377_v23 = vmul.f32 %v786_v16, %v786_v16  ;;  %v378_v24 = vmul.f32 %v789_v17, %v789_v17  ;;  %v379_v15 = vmul.f32 %v792_v18, %v792_v18  ;;  %v380_v20 = vmul.f32 %v795_v19, %v795_v19 }
 0x1cc   : > { %v381_v29 = vmul.f32 %v798_v22, %v798_v22  ;;  %v382_v33 = vmul.f32 %v807_v21, %v807_v21  ;;  %v383_v36 = vmul.f32 %v814_v28, %v814_v28  ;;  %v384_v39 = vmul.f32 %v376_v32, %v376_v32 }
 0x1cd   : > { %v385_v25 = vsel %vm300_vm0, %v377_v23, 0.0  ;;  %v386_v26 = vsel %vm300_vm0, %v378_v24, 0.0  ;;  %v388_v30 = vsel %vm300_vm0, %v379_v15, 0.0  ;;  %v390_v34 = vsel %vm300_vm0, %v380_v20, 0.0 }
 0x1ce   : > { %v387_v27 = vadd.f32 %v386_v26, %v385_v25  ;;  %v392_v37 = vsel %vm300_vm0, %v381_v29, 0.0  ;;  %v394_v41 = vsel %vm300_vm0, %v382_v33, 0.0  ;;  %v396_v43 = vsel %vm300_vm0, %v383_v36, 0.0 }
 0x1cf   : > { %v398_v40 = vsel %vm300_vm0, %v384_v39, 0.0 }
 0x1d0   : > { %v389_v31 = vadd.f32 %v388_v30, %v387_v27 }
 0x1d2   : > { %v391_v35 = vadd.f32 %v390_v34, %v389_v31 }
 0x1d4   : > { %v393_v38 = vadd.f32 %v392_v37, %v391_v35 }
 0x1d6   : > { %v395_v42 = vadd.f32 %v394_v41, %v393_v38 }
 0x1d8   : > { %v397_v44 = vadd.f32 %v396_v43, %v395_v42 }
 0x1da   : > { %v399_v45 = vadd.f32 %v398_v40, %v397_v44 }
 0x1dc   : > { %v400_v46 = vrot.slane %v399_v45, 4 }
 0x1de   : > { %v401_v47 = vadd.f32 %v400_v46, %v399_v45 }
 0x1e0   : > { %v402_v48 = vrot.slane %v401_v47, 2 }
 0x1e2   : > { %v403_v49 = vadd.f32 %v402_v48, %v401_v47 }
 0x1e4   : > { %v404_v50 = vrot.slane %v403_v49, 1 }
 0x1e6   : > { %v405_v51 = vadd.f32 %v404_v50, %v403_v49 }
 0x1e8   : > { %v406_v52 = vmul.f32 %v405_v51, %v770_v55 }
 0x1ea   : > { %417 = vrot.lane.b32.xlu2 %v406_v52, %s664_s9  ;;  %413 = vrot.lane.b32.xlu1 %v406_v52, %s666_s11 }
 0x1eb   : > { %409 = vrot.lane.b32.xlu0 %v406_v52, %s665_s10 }
 0x244   : > { %v418_v58 = vpop.permute.xlu2 %417 }
 0x25c   : > { %v414_v56 = vpop.permute.xlu1 %413 }
 0x25d   : > { %v410_v53 = vpop.permute.xlu0 %409 }
 0x25e   : > { %v412_v54 = vadd.f32 %v410_v53, %v406_v52 }
 0x260   : > { %v416_v57 = vadd.f32 %v414_v56, %v412_v54 }
 0x262   : > { %v420_v59 = vadd.f32 %v418_v58, %v416_v57 }
 0x264   : > { %v421_v60 = vmul.f32 %v420_v59, %v776_v5 }
 0x266   : > { %v422_v61 = vadd.f32 1e-05, %v421_v60 }
 0x268   : > { %653 = vrsqrt.f32 %v422_v61  ;;  %vm429_vm7 = vweird.f32 %v422_v61 }
 0x26e   : > { %v654_v62 = vpop.eup %653 }
 0x26f   : > { %v424_v63 = vmul.f32 %v654_v62, %v422_v61  ;;  %vm430_vm6 = vweird.f32 %v654_v62 }
 0x270   : > { %vm431_vm8 = vmor %vm429_vm7, %vm430_vm6 }
 0x271   : > { %v425_v0 = vmul.f32 %v654_v62, %v424_v63 }
 0x273   : > { %v426_v55 = vmul.f32 0.5, %v425_v0 }
 0x275   : > { %v427_v1 = vsub.f32 1.5, %v426_v55 }
 0x277   : > { %v428_v2 = vmul.f32 %v654_v62, %v427_v1 }
 0x279   : > { %v432_v3 = vsel %vm431_vm8, %v654_v62, %v428_v2 }
 0x27a   : > { %440 = vrot.lane.b32.xlu2 %v432_v3, %s670_s16  ;;  %437 = vrot.lane.b32.xlu1 %v432_v3, %s668_s14 }
 0x27b   : > { %434 = vrot.lane.b32.xlu0 %v432_v3, %s669_s15 }
 0x2d4   : > { %v441_v7 = vpop.permute.xlu2 %440 }
 0x2ec   : > { %v438_v4 = vpop.permute.xlu1 %437 }
 0x2ed   : > { %v435_v5 = vpop.permute.xlu0 %434 }
 0x2ee   : > { %v443_v6 = vsel %vm362_vm3, %v432_v3, %v435_v5 }
 0x2ef   : > { %v444_v8 = vsel %vm364_vm4, %v443_v6, %v438_v4 }
 0x2f0   : > { %v445_v9 = vsel %vm366_vm5, %v444_v8, %v441_v7 }
 0x2f1   : > { %v446_v10 = vperm.slane %v445_v9, 0 }
 0x2f3   : > { %v447_v11 = vmul.f32 %v446_v10, %v786_v16  ;;  %v448_v12 = vmul.f32 %v446_v10, %v789_v17  ;;  %v449_v13 = vmul.f32 %v446_v10, %v792_v18  ;;  %v450_v14 = vmul.f32 %v446_v10, %v795_v19 }
 0x2f4   : > { %v451_v23 = vmul.f32 %v446_v10, %v798_v22  ;;  %v452_v24 = vmul.f32 %v446_v10, %v807_v21  ;;  %v453_v15 = vmul.f32 %v446_v10, %v814_v28  ;;  %v454_v20 = vmul.f32 %v446_v10, %v376_v32 }
 0x2f5   : > { %v455_v25 = vmax.f32 %v447_v11, 0.0  ;;  %v456_v26 = vmax.f32 %v448_v12, 0.0  ;;  %v457_v27 = vmax.f32 %v449_v13, 0.0  ;;  %v458_v29 = vmax.f32 %v450_v14, 0.0 }
 0x2f6   : > { %v459_v16 = vmax.f32 %v451_v23, 0.0  ;;  %v460_v17 = vmax.f32 %v452_v24, 0.0  ;;  %v461_v18 = vmax.f32 %v453_v15, 0.0  ;;  %v462_v21 = vmax.f32 %v454_v20, 0.0 }
 0x2f7   : > { %v463_v19 = vpack.c.bf16 %v455_v25, %v455_v25  ;;  %v464_v22 = vpack.c.bf16 %v456_v26, %v456_v26  ;;  %v465_v30 = vpack.c.bf16 %v457_v27, %v457_v27  ;;  %v466_v31 = vpack.c.bf16 %v458_v29, %v458_v29 }
 0x2f8   : > { %v467_v28 = vpack.c.bf16 %v459_v16, %v459_v16  ;;  %v468_v32 = vpack.c.bf16 %v460_v17, %v460_v17  ;;  %v469_v33 = vpack.c.bf16 %v461_v18, %v461_v18  ;;  %v470_v34 = vpack.c.bf16 %v462_v21, %v462_v21 }
 0x2f9   : > { %472 = vst.msk [vmem:[%s170_s19] sm:$0xf] %vm471_vm9, %v463_v19 }
 0x2fa   : > { %473 = vst.msk [vmem:[%s170_s19 + $0x4] sm:$0xf] %vm471_vm9, %v464_v22 }
 0x2fb   : > { %474 = vst.msk [vmem:[%s170_s19 + $0x8] sm:$0xf] %vm471_vm9, %v465_v30 }
 0x2fc   : > { %475 = vst.msk [vmem:[%s170_s19 + $0xc] sm:$0xf] %vm471_vm9, %v466_v31 }
 0x2fd   : > { %476 = vst.msk [vmem:[%s170_s19 + $0x10] sm:$0xf] %vm471_vm9, %v467_v28 }
 0x2fe   : > { %477 = vst.msk [vmem:[%s170_s19 + $0x14] sm:$0xf] %vm471_vm9, %v468_v32 }
 0x2ff   : > { %478 = vst.msk [vmem:[%s170_s19 + $0x18] sm:$0xf] %vm471_vm9, %v469_v33 }
 0x300   : > { %479 = vst.msk [vmem:[%s170_s19 + $0x1c] sm:$0xf] %vm471_vm9, %v470_v34 }
 0x301 PF: > { %s13_s12 = sadd.s32 1, %s661_s12  }
 0x302   : > { %p10_p4 = scmp.ge.s32.totalorder %s13_s12, 4  }
 0x304   :  { %12 = sbr.rel (!%p10_p4) target bundleno = 1 (0x1), region = 62 }

// kernel: generator_forward.21
= control target key start
LH: loop header
LB: loop body
LE: loop exit
PB: predicated region body
PF: predicated region fallthrough
CT: control target
= control target key end

     0   :  { %s1885_s12 = smov 0   ;;  %s2239_s0 = inlined_call_operand.vmem [shape: bf16[2,256,512], index: 0, kind: input, shape index: {}]   ;;  %s2240_s1 = inlined_call_operand.vmem [shape: bf16[512,3], index: 1, kind: input, shape index: {}]   ;;  %s2241_s2 = inlined_call_operand.vmem [shape: f32[1,3], index: 2, kind: input, shape index: {}]   ;;  %s2242_s3 = inlined_call_operand.vmem [shape: f32[2,256,3], index: 3, kind: output, shape index: {}]  }
   0x1 LB: > { %s1291_s13 = sadd.s32 4294967295, %s1863_s12   ;;  %p1295_p0 = scmp.ge.s32.totalorder %s1863_s12, 1  ;;  %s1863_s12 = sphi %s1885_s12, %s13_s12  }
   0x2   : > { %p137_p1 = scmp.lt.s32.totalorder %s1863_s12, 3 }
   0x4   : > { %p138_p2 = pnand %p1295_p0, %p137_p1 }
   0x5   : > { %p161_p3 = scmp.lt.s32.totalorder (!%p138_p2), %s1291_s13, 1 }
   0x6   : > { %141 = sbr.rel (%p138_p2) target bundleno = 437 (0x1b5), region = 32 }
   0xb   : > { %v1759_v0 = vld [vmem:[%s2240_s1 + $0x38] sm:$0xff]  ;;  %v1758_v4 = vld [vmem:[%s2240_s1 + $0x30] sm:$0xff]  ;;  %v1757_v8 = vld [vmem:[%s2240_s1 + $0x28] sm:$0xff]  ;;  %s2244_s13 = smov (!%p161_p3, %s1291_s13), 1  ;;  %vm1203_vm0 = vcmask 23552  }
   0xc   : > { %v1767_v1 = vld [vmem:[%s2240_s1 + $0x78] sm:$0xff]  ;;  %815 = vmatpush.bf16.msra.mxu0 %v1759_v0  ;;  %v1766_v5 = vld [vmem:[%s2240_s1 + $0x70] sm:$0xff]  ;;  %v1765_v9 = vld [vmem:[%s2240_s1 + $0x68] sm:$0xff]  ;;  %s1686_s10 = sshll.u32 %s2244_s13, 9  ;;  %s1687_s7 = sshll.u32 %s2244_s13, 8 }
   0xd   : > { %v1775_v2 = vld [vmem:[%s2240_s1 + $0xb8] sm:$0xff]  ;;  %904 = vmatpush.bf16.msra.mxu1 %v1767_v1  ;;  %v1774_v6 = vld [vmem:[%s2240_s1 + $0xb0] sm:$0xff]  ;;  %v1773_v10 = vld [vmem:[%s2240_s1 + $0xa8] sm:$0xff]  ;;  %s1981_s19 = scalar_lea.vmem %s2239_s0, %s1686_s10  ;;  %s2092_s10 = scalar_lea.vmem %s2242_s3, %s1687_s7 }
   0xe   : > { %v1783_v3 = vld [vmem:[%s2240_s1 + $0xf8] sm:$0xff]  ;;  %993 = vmatpush.bf16.msra.mxu2 %v1775_v2  ;;  %v1782_v7 = vld [vmem:[%s2240_s1 + $0xf0] sm:$0xff]  ;;  %v1781_v11 = vld [vmem:[%s2240_s1 + $0xe8] sm:$0xff] }
   0xf   : > { %1082 = vmatpush.bf16.msra.mxu3 %v1783_v3  ;;  %v1756_v12 = vld [vmem:[%s2240_s1 + $0x20] sm:$0xff]  ;;  %v1755_v16 = vld [vmem:[%s2240_s1 + $0x18] sm:$0xff]  ;;  %v1754_v20 = vld [vmem:[%s2240_s1 + $0x10] sm:$0xff] }
  0x10   : > { %816 = vmatpush.bf16.msra.mxu0 %v1758_v4  ;;  %v1764_v13 = vld [vmem:[%s2240_s1 + $0x60] sm:$0xff]  ;;  %v1763_v17 = vld [vmem:[%s2240_s1 + $0x58] sm:$0xff]  ;;  %v1762_v21 = vld [vmem:[%s2240_s1 + $0x50] sm:$0xff] }
  0x11   : > { %905 = vmatpush.bf16.msra.mxu1 %v1766_v5  ;;  %v1772_v14 = vld [vmem:[%s2240_s1 + $0xa0] sm:$0xff]  ;;  %v1771_v18 = vld [vmem:[%s2240_s1 + $0x98] sm:$0xff]  ;;  %v1770_v22 = vld [vmem:[%s2240_s1 + $0x90] sm:$0xff] }
  0x12   : > { %994 = vmatpush.bf16.msra.mxu2 %v1774_v6  ;;  %v1780_v15 = vld [vmem:[%s2240_s1 + $0xe0] sm:$0xff]  ;;  %v1779_v19 = vld [vmem:[%s2240_s1 + $0xd8] sm:$0xff]  ;;  %v1778_v23 = vld [vmem:[%s2240_s1 + $0xd0] sm:$0xff] }
  0x13   : > { %1083 = vmatpush.bf16.msra.mxu3 %v1782_v7  ;;  %v1753_v24 = vld [vmem:[%s2240_s1 + $0x8] sm:$0xff]  ;;  %v1752_v28 = vld [vmem:[%s2240_s1] sm:$0xff]  ;;  %v1690_v33 = vld [vmem:[%s1981_s19 + $0xc] sm:$0xf0] }
  0x14   : > { %817 = vmatpush.bf16.msra.mxu0 %v1757_v8  ;;  %v1761_v25 = vld [vmem:[%s2240_s1 + $0x48] sm:$0xff]  ;;  %v1760_v29 = vld [vmem:[%s2240_s1 + $0x40] sm:$0xff]  ;;  %v1304_v35 = vld [vmem:[%s1981_s19 + $0x10] sm:$0xf0] }
  0x15   : > { %906 = vmatpush.bf16.msra.mxu1 %v1765_v9  ;;  %v1769_v26 = vld [vmem:[%s2240_s1 + $0x88] sm:$0xff]  ;;  %v1768_v30 = vld [vmem:[%s2240_s1 + $0x80] sm:$0xff]  ;;  %v1691_v37 = vld [vmem:[%s1981_s19 + $0x14] sm:$0xf0] }
  0x16   : > { %995 = vmatpush.bf16.msra.mxu2 %v1773_v10  ;;  %v1777_v27 = vld [vmem:[%s2240_s1 + $0xc8] sm:$0xff]  ;;  %v1776_v31 = vld [vmem:[%s2240_s1 + $0xc0] sm:$0xff]  ;;  %v1312_v39 = vld [vmem:[%s1981_s19 + $0x18] sm:$0xf0] }
  0x17   : > { %1084 = vmatpush.bf16.msra.mxu3 %v1781_v11  ;;  %v1302_v32 = vld [vmem:[%s1981_s19] sm:$0xf]  ;;  %v1688_v34 = vld [vmem:[%s1981_s19 + $0x4] sm:$0xf]  ;;  %v1310_v36 = vld [vmem:[%s1981_s19 + $0x8] sm:$0xf] }
  0x18   : > { %818 = vmatpush.bf16.msra.mxu0 %v1756_v12  ;;  %v1689_v38 = vld [vmem:[%s1981_s19 + $0xc] sm:$0xf]  ;;  %v1303_v40 = vor.u32 %v1690_v33, %v1302_v32  ;;  %v1307_v41 = vor.u32 %v1688_v34, %v1304_v35  ;;  %v1311_v42 = vor.u32 %v1691_v37, %v1310_v36  ;;  %v1318_v44 = vld [vmem:[%s1981_s19 + $0x20] sm:$0xf]  ;;  %v1694_v45 = vld [vmem:[%s1981_s19 + $0x2c] sm:$0xf0] }
  0x19   : > { %907 = vmatpush.bf16.msra.mxu1 %v1764_v13  ;;  %v1315_v43 = vor.u32 %v1689_v38, %v1312_v39  ;;  %v1692_v46 = vld [vmem:[%s1981_s19 + $0x24] sm:$0xf]  ;;  %v1320_v47 = vld [vmem:[%s1981_s19 + $0x30] sm:$0xf0]  ;;  %v1326_v48 = vld [vmem:[%s1981_s19 + $0x28] sm:$0xf]  ;;  %v1319_v52 = vor.u32 %v1694_v45, %v1318_v44 }
  0x1a   : > { %996 = vmatpush.bf16.msra.mxu2 %v1772_v14  ;;  %v1695_v49 = vld [vmem:[%s1981_s19 + $0x34] sm:$0xf0]  ;;  %v1693_v50 = vld [vmem:[%s1981_s19 + $0x2c] sm:$0xf]  ;;  %v1328_v51 = vld [vmem:[%s1981_s19 + $0x38] sm:$0xf0]  ;;  %v1323_v53 = vor.u32 %v1692_v46, %v1320_v47 }
  0x1b   : > { %1085 = vmatpush.bf16.msra.mxu3 %v1780_v15  ;;  %v1327_v54 = vor.u32 %v1695_v49, %v1326_v48  ;;  %v1331_v55 = vor.u32 %v1693_v50, %v1328_v51  ;;  %v1334_v56 = vld [vmem:[%s1981_s19 + $0x40] sm:$0xf]  ;;  %v1698_v57 = vld [vmem:[%s1981_s19 + $0x4c] sm:$0xf0]  ;;  %v1696_v58 = vld [vmem:[%s1981_s19 + $0x44] sm:$0xf] }
  0x1c   : > { %819 = vmatpush.bf16.msra.mxu0 %v1755_v16  ;;  %v1336_v59 = vld [vmem:[%s1981_s19 + $0x50] sm:$0xf0]  ;;  %v1342_v60 = vld [vmem:[%s1981_s19 + $0x48] sm:$0xf]  ;;  %v1699_v61 = vld [vmem:[%s1981_s19 + $0x54] sm:$0xf0]  ;;  %v1335_v0 = vor.u32 %v1698_v57, %v1334_v56 }
  0x1d   : > { %908 = vmatpush.bf16.msra.mxu1 %v1763_v17  ;;  %v1697_v62 = vld [vmem:[%s1981_s19 + $0x4c] sm:$0xf]  ;;  %v1344_v63 = vld [vmem:[%s1981_s19 + $0x58] sm:$0xf0]  ;;  %v1339_v1 = vor.u32 %v1696_v58, %v1336_v59  ;;  %v1343_v2 = vor.u32 %v1699_v61, %v1342_v60  ;;  %v1350_v4 = vld [vmem:[%s1981_s19 + $0x60] sm:$0xf] }
  0x1e   : > { %997 = vmatpush.bf16.msra.mxu2 %v1771_v18  ;;  %v1347_v3 = vor.u32 %v1697_v62, %v1344_v63  ;;  %v1702_v5 = vld [vmem:[%s1981_s19 + $0x6c] sm:$0xf0]  ;;  %v1700_v6 = vld [vmem:[%s1981_s19 + $0x64] sm:$0xf]  ;;  %v1352_v7 = vld [vmem:[%s1981_s19 + $0x70] sm:$0xf0] }
  0x1f   : > { %1086 = vmatpush.bf16.msra.mxu3 %v1779_v19  ;;  %v1358_v8 = vld [vmem:[%s1981_s19 + $0x68] sm:$0xf]  ;;  %v1703_v9 = vld [vmem:[%s1981_s19 + $0x74] sm:$0xf0]  ;;  %v1701_v10 = vld [vmem:[%s1981_s19 + $0x6c] sm:$0xf]  ;;  %v1351_v12 = vor.u32 %v1702_v5, %v1350_v4  ;;  %v1355_v13 = vor.u32 %v1700_v6, %v1352_v7 }
  0x20   : > { %820 = vmatpush.bf16.msra.mxu0 %v1754_v20  ;;  %v1360_v11 = vld [vmem:[%s1981_s19 + $0x78] sm:$0xf0]  ;;  %v1359_v14 = vor.u32 %v1703_v9, %v1358_v8  ;;  %v1366_v16 = vld [vmem:[%s1981_s19 + $0x80] sm:$0xf]  ;;  %v1706_v17 = vld [vmem:[%s1981_s19 + $0x8c] sm:$0xf0] }
  0x21   : > { %909 = vmatpush.bf16.msra.mxu1 %v1762_v21  ;;  %v1363_v15 = vor.u32 %v1701_v10, %v1360_v11  ;;  %v1704_v18 = vld [vmem:[%s1981_s19 + $0x84] sm:$0xf]  ;;  %v1368_v19 = vld [vmem:[%s1981_s19 + $0x90] sm:$0xf0]  ;;  %v1374_v20 = vld [vmem:[%s1981_s19 + $0x88] sm:$0xf] }
  0x22   : > { %998 = vmatpush.bf16.msra.mxu2 %v1770_v22  ;;  %v1707_v21 = vld [vmem:[%s1981_s19 + $0x94] sm:$0xf0]  ;;  %v1705_v22 = vld [vmem:[%s1981_s19 + $0x8c] sm:$0xf]  ;;  %v1390_v32 = vld [vmem:[%s1981_s19 + $0xa8] sm:$0xf] }
  0x23   : > { %1087 = vmatpush.bf16.msra.mxu3 %v1778_v23  ;;  %v1376_v23 = vld [vmem:[%s1981_s19 + $0x98] sm:$0xf0]  ;;  %v1711_v33 = vld [vmem:[%s1981_s19 + $0xb4] sm:$0xf0]  ;;  %v1709_v34 = vld [vmem:[%s1981_s19 + $0xac] sm:$0xf] }
  0x24   : > { %821 = vmatpush.bf16.msra.mxu0 %v1753_v24  ;;  %v1367_v24 = vor.u32 %v1706_v17, %v1366_v16  ;;  %v1392_v35 = vld [vmem:[%s1981_s19 + $0xb8] sm:$0xf0]  ;;  %v1391_v38 = vor.u32 %v1711_v33, %v1390_v32  ;;  %v1406_v44 = vld [vmem:[%s1981_s19 + $0xc8] sm:$0xf]  ;;  %v1715_v45 = vld [vmem:[%s1981_s19 + $0xd4] sm:$0xf0] }
  0x25   : > { %910 = vmatpush.bf16.msra.mxu1 %v1761_v25  ;;  %v1371_v25 = vor.u32 %v1704_v18, %v1368_v19  ;;  %v1395_v39 = vor.u32 %v1709_v34, %v1392_v35  ;;  %v1713_v46 = vld [vmem:[%s1981_s19 + $0xcc] sm:$0xf]  ;;  %v1408_v47 = vld [vmem:[%s1981_s19 + $0xd8] sm:$0xf0]  ;;  %v1407_v50 = vor.u32 %v1715_v45, %v1406_v44  ;;  %v1422_v56 = vld [vmem:[%s1981_s19 + $0xe8] sm:$0xf] }
  0x26   : > { %999 = vmatpush.bf16.msra.mxu2 %v1769_v26  ;;  %v1375_v26 = vor.u32 %v1707_v21, %v1374_v20  ;;  %v1411_v51 = vor.u32 %v1713_v46, %v1408_v47  ;;  %v1719_v57 = vld [vmem:[%s1981_s19 + $0xf4] sm:$0xf0]  ;;  %v1717_v58 = vld [vmem:[%s1981_s19 + $0xec] sm:$0xf]  ;;  %v1424_v59 = vld [vmem:[%s1981_s19 + $0xf8] sm:$0xf0] }
  0x27   : > { %1088 = vmatpush.bf16.msra.mxu3 %v1777_v27  ;;  %v1379_v27 = vor.u32 %v1705_v22, %v1376_v23  ;;  %v1423_v62 = vor.u32 %v1719_v57, %v1422_v56  ;;  %v1427_v63 = vor.u32 %v1717_v58, %v1424_v59  ;;  %v1432_v4 = vld [vmem:[%s1981_s19 + $0x110] sm:$0xf0]  ;;  %v1438_v5 = vld [vmem:[%s1981_s19 + $0x108] sm:$0xf]  ;;  %v1723_v6 = vld [vmem:[%s1981_s19 + $0x114] sm:$0xf0] }
  0x28   : > { %822 = vmatpush.bf16.msra.mxu0 %v1752_v28  ;;  %v1382_v28 = vld [vmem:[%s1981_s19 + $0xa0] sm:$0xf]  ;;  %v1721_v7 = vld [vmem:[%s1981_s19 + $0x10c] sm:$0xf]  ;;  %v1440_v8 = vld [vmem:[%s1981_s19 + $0x118] sm:$0xf0] }
  0x29   : > { %911 = vmatpush.bf16.msra.mxu1 %v1760_v29  ;;  %v1710_v29 = vld [vmem:[%s1981_s19 + $0xac] sm:$0xf0]  ;;  %v1728_v56 = vld [vmem:[%s1981_s19 + $0x144] sm:$0xf]  ;;  %v1464_v57 = vld [vmem:[%s1981_s19 + $0x150] sm:$0xf0] }
  0x2a   : > { %1000 = vmatpush.bf16.msra.mxu2 %v1768_v30  ;;  %v1708_v30 = vld [vmem:[%s1981_s19 + $0xa4] sm:$0xf]  ;;  %v1383_v36 = vor.u32 %v1710_v29, %v1382_v28  ;;  %v1454_v28 = vld [vmem:[%s1981_s19 + $0x128] sm:$0xf]  ;;  %v1727_v29 = vld [vmem:[%s1981_s19 + $0x134] sm:$0xf0] }
  0x2b   : > { %1089 = vmatpush.bf16.msra.mxu3 %v1776_v31  ;;  %823 = vmatmul.bf16.vlgmr.msra.gmra.mxu0 %v1303_v40  ;;  %v1384_v31 = vld [vmem:[%s1981_s19 + $0xb0] sm:$0xf0]  ;;  %v1398_v40 = vld [vmem:[%s1981_s19 + $0xc0] sm:$0xf]  ;;  %v1470_v58 = vld [vmem:[%s1981_s19 + $0x148] sm:$0xf] }
  0x2c   : > { %912 = vmatmul.bf16.vlgmr.msra.gmra.mxu1 %v1307_v41  ;;  %v1387_v37 = vor.u32 %v1708_v30, %v1384_v31  ;;  %v1714_v41 = vld [vmem:[%s1981_s19 + $0xcc] sm:$0xf0]  ;;  %v1725_v30 = vld [vmem:[%s1981_s19 + $0x12c] sm:$0xf]  ;;  %v1456_v31 = vld [vmem:[%s1981_s19 + $0x138] sm:$0xf0] }
  0x2d   : > { %1001 = vmatmul.bf16.vlgmr.msra.gmra.mxu2 %v1311_v42  ;;  %v1712_v42 = vld [vmem:[%s1981_s19 + $0xc4] sm:$0xf]  ;;  %v1399_v48 = vor.u32 %v1714_v41, %v1398_v40  ;;  %v1455_v40 = vor.u32 %v1727_v29, %v1454_v28  ;;  %v1459_v41 = vor.u32 %v1725_v30, %v1456_v31  ;;  %v1731_v59 = vld [vmem:[%s1981_s19 + $0x154] sm:$0xf0]  ;;  %v1488_v28 = vld [vmem:[%s1981_s19 + $0x178] sm:$0xf0] }
  0x2e   : > { %1090 = vmatmul.bf16.vlgmr.msra.gmra.mxu3 %v1315_v43  ;;  %v1400_v43 = vld [vmem:[%s1981_s19 + $0xd0] sm:$0xf0] }
  0x2f   : > { %v1403_v49 = vor.u32 %v1712_v42, %v1400_v43 }
  0x3b   : > { %828 = vmatmul.bf16.gmra.mxu0 %v1319_v52  ;;  %v1414_v52 = vld [vmem:[%s1981_s19 + $0xe0] sm:$0xf] }
  0x3c   : > { %917 = vmatmul.bf16.gmra.mxu1 %v1323_v53  ;;  %v1718_v53 = vld [vmem:[%s1981_s19 + $0xec] sm:$0xf0] }
  0x3d   : > { %1006 = vmatmul.bf16.gmra.mxu2 %v1327_v54  ;;  %v1716_v54 = vld [vmem:[%s1981_s19 + $0xe4] sm:$0xf]  ;;  %v1415_v60 = vor.u32 %v1718_v53, %v1414_v52 }
  0x3e   : > { %1095 = vmatmul.bf16.gmra.mxu3 %v1331_v55  ;;  %v1416_v55 = vld [vmem:[%s1981_s19 + $0xf0] sm:$0xf0] }
  0x3f   : > { %v1419_v61 = vor.u32 %v1716_v54, %v1416_v55  ;;  %v1462_v54 = vld [vmem:[%s1981_s19 + $0x140] sm:$0xf]  ;;  %v1730_v55 = vld [vmem:[%s1981_s19 + $0x14c] sm:$0xf0] }
  0x4b   : > { %833 = vmatmul.bf16.gmra.mxu0 %v1335_v0  ;;  %v2068_v0 = vld [vmem:[%s2241_s2] ss:$0 sm:$0xff] }
  0x4c   : > { %922 = vmatmul.bf16.gmra.mxu1 %v1339_v1  ;;  %v1430_v1 = vld [vmem:[%s1981_s19 + $0x100] sm:$0xf] }
  0x4d   : > { %1011 = vmatmul.bf16.gmra.mxu2 %v1343_v2  ;;  %v1722_v2 = vld [vmem:[%s1981_s19 + $0x10c] sm:$0xf0] }
  0x4e   : > { %1100 = vmatmul.bf16.gmra.mxu3 %v1347_v3  ;;  %v1720_v3 = vld [vmem:[%s1981_s19 + $0x104] sm:$0xf]  ;;  %v1431_v9 = vor.u32 %v1722_v2, %v1430_v1  ;;  %v1463_v2 = vor.u32 %v1730_v55, %v1462_v54  ;;  %v1496_v54 = vld [vmem:[%s1981_s19 + $0x190] sm:$0xf0]  ;;  %v1502_v55 = vld [vmem:[%s1981_s19 + $0x188] sm:$0xf] }
  0x4f   : > { %v1435_v10 = vor.u32 %v1720_v3, %v1432_v4  ;;  %v1467_v3 = vor.u32 %v1728_v56, %v1464_v57  ;;  %v1739_v56 = vld [vmem:[%s1981_s19 + $0x194] sm:$0xf0]  ;;  %v1737_v57 = vld [vmem:[%s1981_s19 + $0x18c] sm:$0xf] }
  0x5b   : > { %838 = vmatmul.bf16.gmra.mxu0 %v1351_v12 }
  0x5c   : > { %927 = vmatmul.bf16.gmra.mxu1 %v1355_v13  ;;  %v1439_v13 = vor.u32 %v1723_v6, %v1438_v5 }
  0x5d   : > { %1016 = vmatmul.bf16.gmra.mxu2 %v1359_v14  ;;  %v1443_v14 = vor.u32 %v1721_v7, %v1440_v8  ;;  %v1471_v7 = vor.u32 %v1731_v59, %v1470_v58  ;;  %v1504_v58 = vld [vmem:[%s1981_s19 + $0x198] sm:$0xf0] }
  0x5e   : > { %1105 = vmatmul.bf16.gmra.mxu3 %v1363_v15 }
  0x6b   : > { %843 = vmatmul.bf16.gmra.mxu0 %v1367_v24  ;;  %v1446_v24 = vld [vmem:[%s1981_s19 + $0x120] sm:$0xf] }
  0x6c   : > { %932 = vmatmul.bf16.gmra.mxu1 %v1371_v25  ;;  %v1726_v25 = vld [vmem:[%s1981_s19 + $0x12c] sm:$0xf0] }
  0x6d   : > { %1021 = vmatmul.bf16.gmra.mxu2 %v1375_v26  ;;  %v1724_v26 = vld [vmem:[%s1981_s19 + $0x124] sm:$0xf]  ;;  %v1447_v35 = vor.u32 %v1726_v25, %v1446_v24  ;;  %v1480_v24 = vld [vmem:[%s1981_s19 + $0x170] sm:$0xf0]  ;;  %v1486_v25 = vld [vmem:[%s1981_s19 + $0x168] sm:$0xf] }
  0x6e   : > { %1110 = vmatmul.bf16.gmra.mxu3 %v1379_v27  ;;  %v1448_v27 = vld [vmem:[%s1981_s19 + $0x130] sm:$0xf0] }
  0x7b   : > { %848 = vmatmul.bf16.gmra.mxu0 %v1383_v36  ;;  %v1451_v36 = vor.u32 %v1724_v26, %v1448_v27  ;;  %v1735_v26 = vld [vmem:[%s1981_s19 + $0x174] sm:$0xf0]  ;;  %v1733_v27 = vld [vmem:[%s1981_s19 + $0x16c] sm:$0xf] }
  0x7c   : > { %937 = vmatmul.bf16.gmra.mxu1 %v1387_v37 }
  0x7d   : > { %1026 = vmatmul.bf16.gmra.mxu2 %v1391_v38 }
  0x7e   : > { %1115 = vmatmul.bf16.gmra.mxu3 %v1395_v39 }
  0x8b   : > { %853 = vmatmul.bf16.gmra.mxu0 %v1399_v48 }
  0x8c   : > { %942 = vmatmul.bf16.gmra.mxu1 %v1403_v49 }
  0x8d   : > { %1031 = vmatmul.bf16.gmra.mxu2 %v1407_v50 }
  0x8e   : > { %1120 = vmatmul.bf16.gmra.mxu3 %v1411_v51 }
  0x9b   : > { %858 = vmatmul.bf16.gmra.mxu0 %v1415_v60  ;;  %v1729_v60 = vld [vmem:[%s1981_s19 + $0x14c] sm:$0xf] }
  0x9c   : > { %947 = vmatmul.bf16.gmra.mxu1 %v1419_v61  ;;  %v1472_v61 = vld [vmem:[%s1981_s19 + $0x158] sm:$0xf0] }
  0x9d   : > { %1036 = vmatmul.bf16.gmra.mxu2 %v1423_v62  ;;  %v1475_v8 = vor.u32 %v1729_v60, %v1472_v61 }
  0x9e   : > { %1125 = vmatmul.bf16.gmra.mxu3 %v1427_v63 }
  0xa8   : > { %v824_v11 = vpop.f32.mrf.mxu0 }
  0xa9   : > { %v913_v12 = vpop.f32.mrf.mxu1  ;;  %v825_v15 = vadd.f32 %v2068_v0, %v824_v11 }
  0xab   : > { %863 = vmatmul.bf16.gmra.mxu0 %v1431_v9  ;;  %v914_v16 = vadd.f32 %v913_v12, %v825_v15 }
  0xac   : > { %952 = vmatmul.bf16.gmra.mxu1 %v1435_v10 }
  0xad   : > { %1041 = vmatmul.bf16.gmra.mxu2 %v1439_v13 }
  0xae   : > { %1130 = vmatmul.bf16.gmra.mxu3 %v1443_v14 }
  0xb0   : > { %v1002_v17 = vpop.f32.mrf.mxu2  ;;  %v826_v20 = vpop.f32.mrf.mxu0 }
  0xb1   : > { %v1091_v18 = vpop.f32.mrf.mxu3  ;;  %v1003_v19 = vadd.f32 %v1002_v17, %v914_v16  ;;  %v915_v21 = vpop.f32.mrf.mxu1  ;;  %v827_v23 = vadd.f32 %v2068_v0, %v826_v20 }
  0xb3   : > { %v1092_v22 = vadd.f32 %v1091_v18, %v1003_v19  ;;  %v916_v32 = vadd.f32 %v915_v21, %v827_v23  ;;  %v1478_v21 = vld [vmem:[%s1981_s19 + $0x160] sm:$0xf]  ;;  %v1732_v23 = vld [vmem:[%s1981_s19 + $0x164] sm:$0xf] }
  0xb5   : > { %1793 = vtanh.f32 %v1092_v22  ;;  %v1734_v22 = vld [vmem:[%s1981_s19 + $0x16c] sm:$0xf0] }
  0xb8   : > { %v1004_v33 = vpop.f32.mrf.mxu2  ;;  %v829_v38 = vpop.f32.mrf.mxu0 }
  0xb9   : > { %v1093_v34 = vpop.f32.mrf.mxu3  ;;  %v1005_v37 = vadd.f32 %v1004_v33, %v916_v32  ;;  %v918_v39 = vpop.f32.mrf.mxu1  ;;  %v830_v42 = vadd.f32 %v2068_v0, %v829_v38  ;;  %v1479_v32 = vor.u32 %v1734_v22, %v1478_v21  ;;  %v1483_v33 = vor.u32 %v1732_v23, %v1480_v24  ;;  %v1512_v21 = vld [vmem:[%s1981_s19 + $0x1b0] sm:$0xf0]  ;;  %v1518_v22 = vld [vmem:[%s1981_s19 + $0x1a8] sm:$0xf]  ;;  %v1743_v23 = vld [vmem:[%s1981_s19 + $0x1b4] sm:$0xf0] }
  0xba   : > { %v1491_v38 = vor.u32 %v1733_v27, %v1488_v28  ;;  %v1741_v24 = vld [vmem:[%s1981_s19 + $0x1ac] sm:$0xf] }
  0xbb   : > { %v1794_v43 = vpop.eup %1793  ;;  %v1094_v44 = vadd.f32 %v1093_v34, %v1005_v37  ;;  %868 = vmatmul.bf16.gmra.mxu0 %v1447_v35  ;;  %v919_v45 = vadd.f32 %v918_v39, %v830_v42  ;;  %v1487_v37 = vor.u32 %v1735_v26, %v1486_v25  ;;  %v1520_v25 = vld [vmem:[%s1981_s19 + $0x1b8] sm:$0xf0] }
  0xbc   : > { %1204 = vst.msk [vmem:[%s2092_s10] sm:$0xff] %vm1203_vm0, %v1794_v43  ;;  %957 = vmatmul.bf16.gmra.mxu1 %v1451_v36 }
  0xbd   : > { %1795 = vtanh.f32 %v1094_v44  ;;  %1046 = vmatmul.bf16.gmra.mxu2 %v1455_v40 }
  0xbe   : > { %1135 = vmatmul.bf16.gmra.mxu3 %v1459_v41 }
  0xc0   : > { %v1007_v46 = vpop.f32.mrf.mxu2  ;;  %v831_v49 = vpop.f32.mrf.mxu0 }
  0xc1   : > { %v1096_v47 = vpop.f32.mrf.mxu3  ;;  %v1008_v48 = vadd.f32 %v1007_v46, %v919_v45  ;;  %v920_v50 = vpop.f32.mrf.mxu1  ;;  %v832_v53 = vadd.f32 %v2068_v0, %v831_v49 }
  0xc3   : > { %v1796_v51 = vpop.eup %1795  ;;  %v1097_v52 = vadd.f32 %v1096_v47, %v1008_v48  ;;  %v921_v62 = vadd.f32 %v920_v50, %v832_v53  ;;  %v1736_v53 = vld [vmem:[%s1981_s19 + $0x184] sm:$0xf] }
  0xc4   : > { %1205 = vst.msk [vmem:[%s2092_s10 + $0x8] sm:$0xff] %vm1203_vm0, %v1796_v51  ;;  %v1494_v51 = vld [vmem:[%s1981_s19 + $0x180] sm:$0xf] }
  0xc5   : > { %1797 = vtanh.f32 %v1097_v52  ;;  %v1738_v52 = vld [vmem:[%s1981_s19 + $0x18c] sm:$0xf0] }
  0xc8   : > { %v1009_v63 = vpop.f32.mrf.mxu2  ;;  %v834_v5 = vpop.f32.mrf.mxu0 }
  0xc9   : > { %v1098_v1 = vpop.f32.mrf.mxu3  ;;  %v1010_v4 = vadd.f32 %v1009_v63, %v921_v62  ;;  %v923_v6 = vpop.f32.mrf.mxu1  ;;  %v835_v9 = vadd.f32 %v2068_v0, %v834_v5  ;;  %v1495_v62 = vor.u32 %v1738_v52, %v1494_v51  ;;  %v1499_v63 = vor.u32 %v1736_v53, %v1496_v54  ;;  %v1528_v51 = vld [vmem:[%s1981_s19 + $0x1d0] sm:$0xf0]  ;;  %v1534_v52 = vld [vmem:[%s1981_s19 + $0x1c8] sm:$0xf]  ;;  %v1747_v53 = vld [vmem:[%s1981_s19 + $0x1d4] sm:$0xf0] }
  0xca   : > { %v1507_v5 = vor.u32 %v1737_v57, %v1504_v58  ;;  %v1745_v54 = vld [vmem:[%s1981_s19 + $0x1cc] sm:$0xf] }
  0xcb   : > { %v1798_v10 = vpop.eup %1797  ;;  %v1099_v11 = vadd.f32 %v1098_v1, %v1010_v4  ;;  %873 = vmatmul.bf16.gmra.mxu0 %v1463_v2  ;;  %v924_v12 = vadd.f32 %v923_v6, %v835_v9  ;;  %v1503_v4 = vor.u32 %v1739_v56, %v1502_v55  ;;  %v1536_v55 = vld [vmem:[%s1981_s19 + $0x1d8] sm:$0xf0] }
  0xcc   : > { %1206 = vst.msk [vmem:[%s2092_s10 + $0x10] sm:$0xff] %vm1203_vm0, %v1798_v10  ;;  %962 = vmatmul.bf16.gmra.mxu1 %v1467_v3 }
  0xcd   : > { %1799 = vtanh.f32 %v1099_v11  ;;  %1051 = vmatmul.bf16.gmra.mxu2 %v1471_v7 }
  0xce   : > { %1140 = vmatmul.bf16.gmra.mxu3 %v1475_v8 }
  0xd0   : > { %v1012_v13 = vpop.f32.mrf.mxu2  ;;  %v836_v16 = vpop.f32.mrf.mxu0 }
  0xd1   : > { %v1101_v14 = vpop.f32.mrf.mxu3  ;;  %v1013_v15 = vadd.f32 %v1012_v13, %v924_v12  ;;  %v925_v17 = vpop.f32.mrf.mxu1  ;;  %v837_v20 = vadd.f32 %v2068_v0, %v836_v16 }
  0xd3   : > { %v1800_v18 = vpop.eup %1799  ;;  %v1102_v19 = vadd.f32 %v1101_v14, %v1013_v15  ;;  %v926_v29 = vadd.f32 %v925_v17, %v837_v20  ;;  %v1740_v20 = vld [vmem:[%s1981_s19 + $0x1a4] sm:$0xf] }
  0xd4   : > { %1207 = vst.msk [vmem:[%s2092_s10 + $0x18] sm:$0xff] %vm1203_vm0, %v1800_v18  ;;  %v1510_v18 = vld [vmem:[%s1981_s19 + $0x1a0] sm:$0xf] }
  0xd5   : > { %1801 = vtanh.f32 %v1102_v19  ;;  %v1742_v19 = vld [vmem:[%s1981_s19 + $0x1ac] sm:$0xf0] }
  0xd8   : > { %v1014_v30 = vpop.f32.mrf.mxu2  ;;  %v839_v35 = vpop.f32.mrf.mxu0 }
  0xd9   : > { %v1103_v31 = vpop.f32.mrf.mxu3  ;;  %v1015_v34 = vadd.f32 %v1014_v30, %v926_v29  ;;  %v928_v36 = vpop.f32.mrf.mxu1  ;;  %v840_v39 = vadd.f32 %v2068_v0, %v839_v35  ;;  %v1511_v29 = vor.u32 %v1742_v19, %v1510_v18  ;;  %v1515_v30 = vor.u32 %v1740_v20, %v1512_v21  ;;  %v1544_v18 = vld [vmem:[%s1981_s19 + $0x1f0] sm:$0xf0]  ;;  %v1550_v19 = vld [vmem:[%s1981_s19 + $0x1e8] sm:$0xf]  ;;  %v1751_v20 = vld [vmem:[%s1981_s19 + $0x1f4] sm:$0xf0] }
  0xda   : > { %v1523_v35 = vor.u32 %v1741_v24, %v1520_v25  ;;  %v1749_v21 = vld [vmem:[%s1981_s19 + $0x1ec] sm:$0xf] }
  0xdb   : > { %v1802_v40 = vpop.eup %1801  ;;  %v1104_v41 = vadd.f32 %v1103_v31, %v1015_v34  ;;  %878 = vmatmul.bf16.gmra.mxu0 %v1479_v32  ;;  %v929_v42 = vadd.f32 %v928_v36, %v840_v39  ;;  %v1519_v34 = vor.u32 %v1743_v23, %v1518_v22  ;;  %v1552_v22 = vld [vmem:[%s1981_s19 + $0x1f8] sm:$0xf0] }
  0xdc   : > { %1208 = vst.msk [vmem:[%s2092_s10 + $0x20] sm:$0xff] %vm1203_vm0, %v1802_v40  ;;  %967 = vmatmul.bf16.gmra.mxu1 %v1483_v33 }
  0xdd   : > { %1803 = vtanh.f32 %v1104_v41  ;;  %1056 = vmatmul.bf16.gmra.mxu2 %v1487_v37 }
  0xde   : > { %1145 = vmatmul.bf16.gmra.mxu3 %v1491_v38 }
  0xe0   : > { %v1017_v43 = vpop.f32.mrf.mxu2  ;;  %v841_v46 = vpop.f32.mrf.mxu0 }
  0xe1   : > { %v1106_v44 = vpop.f32.mrf.mxu3  ;;  %v1018_v45 = vadd.f32 %v1017_v43, %v929_v42  ;;  %v930_v47 = vpop.f32.mrf.mxu1  ;;  %v842_v50 = vadd.f32 %v2068_v0, %v841_v46 }
  0xe3   : > { %v1804_v48 = vpop.eup %1803  ;;  %v1107_v49 = vadd.f32 %v1106_v44, %v1018_v45  ;;  %v931_v59 = vadd.f32 %v930_v47, %v842_v50  ;;  %v1744_v50 = vld [vmem:[%s1981_s19 + $0x1c4] sm:$0xf] }
  0xe4   : > { %1209 = vst.msk [vmem:[%s2092_s10 + $0x28] sm:$0xff] %vm1203_vm0, %v1804_v48  ;;  %v1526_v48 = vld [vmem:[%s1981_s19 + $0x1c0] sm:$0xf] }
  0xe5   : > { %1805 = vtanh.f32 %v1107_v49  ;;  %v1746_v49 = vld [vmem:[%s1981_s19 + $0x1cc] sm:$0xf0] }
  0xe8   : > { %v1019_v60 = vpop.f32.mrf.mxu2  ;;  %v844_v2 = vpop.f32.mrf.mxu0 }
  0xe9   : > { %v1108_v61 = vpop.f32.mrf.mxu3  ;;  %v1020_v1 = vadd.f32 %v1019_v60, %v931_v59  ;;  %v933_v3 = vpop.f32.mrf.mxu1  ;;  %v845_v6 = vadd.f32 %v2068_v0, %v844_v2  ;;  %v1527_v59 = vor.u32 %v1746_v49, %v1526_v48  ;;  %v1531_v60 = vor.u32 %v1744_v50, %v1528_v51 }
  0xea   : > { %v1539_v2 = vor.u32 %v1745_v54, %v1536_v55 }
  0xeb   : > { %v1806_v7 = vpop.eup %1805  ;;  %v1109_v8 = vadd.f32 %v1108_v61, %v1020_v1  ;;  %883 = vmatmul.bf16.gmra.mxu0 %v1495_v62  ;;  %v934_v9 = vadd.f32 %v933_v3, %v845_v6  ;;  %v1535_v1 = vor.u32 %v1747_v53, %v1534_v52 }
  0xec   : > { %1210 = vst.msk [vmem:[%s2092_s10 + $0x30] sm:$0xff] %vm1203_vm0, %v1806_v7  ;;  %972 = vmatmul.bf16.gmra.mxu1 %v1499_v63 }
  0xed   : > { %1807 = vtanh.f32 %v1109_v8  ;;  %1061 = vmatmul.bf16.gmra.mxu2 %v1503_v4 }
  0xee   : > { %1150 = vmatmul.bf16.gmra.mxu3 %v1507_v5 }
  0xf0   : > { %v1022_v10 = vpop.f32.mrf.mxu2  ;;  %v846_v13 = vpop.f32.mrf.mxu0 }
  0xf1   : > { %v1111_v11 = vpop.f32.mrf.mxu3  ;;  %v1023_v12 = vadd.f32 %v1022_v10, %v934_v9  ;;  %v935_v14 = vpop.f32.mrf.mxu1  ;;  %v847_v17 = vadd.f32 %v2068_v0, %v846_v13 }
  0xf3   : > { %v1808_v15 = vpop.eup %1807  ;;  %v1112_v16 = vadd.f32 %v1111_v11, %v1023_v12  ;;  %v936_v26 = vadd.f32 %v935_v14, %v847_v17  ;;  %v1748_v17 = vld [vmem:[%s1981_s19 + $0x1e4] sm:$0xf] }
  0xf4   : > { %1211 = vst.msk [vmem:[%s2092_s10 + $0x38] sm:$0xff] %vm1203_vm0, %v1808_v15  ;;  %v1542_v15 = vld [vmem:[%s1981_s19 + $0x1e0] sm:$0xf] }
  0xf5   : > { %1809 = vtanh.f32 %v1112_v16  ;;  %v1750_v16 = vld [vmem:[%s1981_s19 + $0x1ec] sm:$0xf0] }
  0xf8   : > { %v1024_v27 = vpop.f32.mrf.mxu2  ;;  %v849_v32 = vpop.f32.mrf.mxu0 }
  0xf9   : > { %v1113_v28 = vpop.f32.mrf.mxu3  ;;  %v1025_v31 = vadd.f32 %v1024_v27, %v936_v26  ;;  %v938_v33 = vpop.f32.mrf.mxu1  ;;  %v850_v36 = vadd.f32 %v2068_v0, %v849_v32  ;;  %v1543_v26 = vor.u32 %v1750_v16, %v1542_v15  ;;  %v1547_v27 = vor.u32 %v1748_v17, %v1544_v18 }
  0xfa   : > { %v1555_v32 = vor.u32 %v1749_v21, %v1552_v22 }
  0xfb   : > { %v1810_v37 = vpop.eup %1809  ;;  %v1114_v38 = vadd.f32 %v1113_v28, %v1025_v31  ;;  %888 = vmatmul.bf16.gmra.mxu0 %v1511_v29  ;;  %v939_v39 = vadd.f32 %v938_v33, %v850_v36  ;;  %v1551_v31 = vor.u32 %v1751_v20, %v1550_v19 }
  0xfc   : > { %1212 = vst.msk [vmem:[%s2092_s10 + $0x40] sm:$0xff] %vm1203_vm0, %v1810_v37  ;;  %977 = vmatmul.bf16.gmra.mxu1 %v1515_v30 }
  0xfd   : > { %1811 = vtanh.f32 %v1114_v38  ;;  %1066 = vmatmul.bf16.gmra.mxu2 %v1519_v34 }
  0xfe   : > { %1155 = vmatmul.bf16.gmra.mxu3 %v1523_v35 }
 0x100   : > { %v1027_v40 = vpop.f32.mrf.mxu2  ;;  %v851_v43 = vpop.f32.mrf.mxu0 }
 0x101   : > { %v1116_v41 = vpop.f32.mrf.mxu3  ;;  %v1028_v42 = vadd.f32 %v1027_v40, %v939_v39  ;;  %v940_v44 = vpop.f32.mrf.mxu1  ;;  %v852_v47 = vadd.f32 %v2068_v0, %v851_v43 }
 0x103   : > { %v1812_v45 = vpop.eup %1811  ;;  %v1117_v46 = vadd.f32 %v1116_v41, %v1028_v42  ;;  %v941_v56 = vadd.f32 %v940_v44, %v852_v47 }
 0x104   : > { %1213 = vst.msk [vmem:[%s2092_s10 + $0x48] sm:$0xff] %vm1203_vm0, %v1812_v45 }
 0x105   : > { %1813 = vtanh.f32 %v1117_v46 }
 0x108   : > { %v1029_v57 = vpop.f32.mrf.mxu2  ;;  %v854_v62 = vpop.f32.mrf.mxu0 }
 0x109   : > { %v1118_v58 = vpop.f32.mrf.mxu3  ;;  %v1030_v61 = vadd.f32 %v1029_v57, %v941_v56  ;;  %v943_v63 = vpop.f32.mrf.mxu1  ;;  %v855_v3 = vadd.f32 %v2068_v0, %v854_v62 }
 0x10b   : > { %v1814_v4 = vpop.eup %1813  ;;  %v1119_v5 = vadd.f32 %v1118_v58, %v1030_v61  ;;  %893 = vmatmul.bf16.gmra.mxu0 %v1527_v59  ;;  %v944_v6 = vadd.f32 %v943_v63, %v855_v3 }
 0x10c   : > { %1214 = vst.msk [vmem:[%s2092_s10 + $0x50] sm:$0xff] %vm1203_vm0, %v1814_v4  ;;  %982 = vmatmul.bf16.gmra.mxu1 %v1531_v60 }
 0x10d   : > { %1815 = vtanh.f32 %v1119_v5  ;;  %1071 = vmatmul.bf16.gmra.mxu2 %v1535_v1 }
 0x10e   : > { %1160 = vmatmul.bf16.gmra.mxu3 %v1539_v2 }
 0x110   : > { %v1032_v7 = vpop.f32.mrf.mxu2  ;;  %v856_v10 = vpop.f32.mrf.mxu0 }
 0x111   : > { %v1121_v8 = vpop.f32.mrf.mxu3  ;;  %v1033_v9 = vadd.f32 %v1032_v7, %v944_v6  ;;  %v945_v11 = vpop.f32.mrf.mxu1  ;;  %v857_v14 = vadd.f32 %v2068_v0, %v856_v10 }
 0x113   : > { %v1816_v12 = vpop.eup %1815  ;;  %v1122_v13 = vadd.f32 %v1121_v8, %v1033_v9  ;;  %v946_v23 = vadd.f32 %v945_v11, %v857_v14 }
 0x114   : > { %1215 = vst.msk [vmem:[%s2092_s10 + $0x58] sm:$0xff] %vm1203_vm0, %v1816_v12 }
 0x115   : > { %1817 = vtanh.f32 %v1122_v13 }
 0x118   : > { %v1034_v24 = vpop.f32.mrf.mxu2  ;;  %v859_v29 = vpop.f32.mrf.mxu0 }
 0x119   : > { %v1123_v25 = vpop.f32.mrf.mxu3  ;;  %v1035_v28 = vadd.f32 %v1034_v24, %v946_v23  ;;  %v948_v30 = vpop.f32.mrf.mxu1  ;;  %v860_v33 = vadd.f32 %v2068_v0, %v859_v29 }
 0x11b   : > { %v1818_v34 = vpop.eup %1817  ;;  %v1124_v35 = vadd.f32 %v1123_v25, %v1035_v28  ;;  %898 = vmatmul.bf16.gmra.mxu0 %v1543_v26  ;;  %v949_v36 = vadd.f32 %v948_v30, %v860_v33 }
 0x11c   : > { %1216 = vst.msk [vmem:[%s2092_s10 + $0x60] sm:$0xff] %vm1203_vm0, %v1818_v34  ;;  %987 = vmatmul.bf16.gmra.mxu1 %v1547_v27 }
 0x11d   : > { %1819 = vtanh.f32 %v1124_v35  ;;  %1076 = vmatmul.bf16.gmra.mxu2 %v1551_v31 }
 0x11e   : > { %1165 = vmatmul.bf16.gmra.mxu3 %v1555_v32 }
 0x120   : > { %v1037_v37 = vpop.f32.mrf.mxu2  ;;  %v861_v40 = vpop.f32.mrf.mxu0 }
 0x121   : > { %v1126_v38 = vpop.f32.mrf.mxu3  ;;  %v1038_v39 = vadd.f32 %v1037_v37, %v949_v36  ;;  %v950_v41 = vpop.f32.mrf.mxu1  ;;  %v862_v44 = vadd.f32 %v2068_v0, %v861_v40 }
 0x123   : > { %v1820_v42 = vpop.eup %1819  ;;  %v1127_v43 = vadd.f32 %v1126_v38, %v1038_v39  ;;  %v951_v45 = vadd.f32 %v950_v41, %v862_v44 }
 0x124   : > { %1217 = vst.msk [vmem:[%s2092_s10 + $0x68] sm:$0xff] %vm1203_vm0, %v1820_v42 }
 0x125   : > { %1821 = vtanh.f32 %v1127_v43 }
 0x128   : > { %v1039_v46 = vpop.f32.mrf.mxu2  ;;  %v864_v49 = vpop.f32.mrf.mxu0 }
 0x129   : > { %v1128_v47 = vpop.f32.mrf.mxu3  ;;  %v1040_v48 = vadd.f32 %v1039_v46, %v951_v45  ;;  %v953_v50 = vpop.f32.mrf.mxu1  ;;  %v865_v51 = vadd.f32 %v2068_v0, %v864_v49 }
 0x12b   : > { %v1822_v52 = vpop.eup %1821  ;;  %v1129_v53 = vadd.f32 %v1128_v47, %v1040_v48  ;;  %v954_v54 = vadd.f32 %v953_v50, %v865_v51 }
 0x12c   : > { %1218 = vst.msk [vmem:[%s2092_s10 + $0x70] sm:$0xff] %vm1203_vm0, %v1822_v52 }
 0x12d   : > { %1823 = vtanh.f32 %v1129_v53 }
 0x130   : > { %v1042_v55 = vpop.f32.mrf.mxu2  ;;  %v866_v58 = vpop.f32.mrf.mxu0 }
 0x131   : > { %v1131_v56 = vpop.f32.mrf.mxu3  ;;  %v1043_v57 = vadd.f32 %v1042_v55, %v954_v54  ;;  %v955_v59 = vpop.f32.mrf.mxu1  ;;  %v867_v62 = vadd.f32 %v2068_v0, %v866_v58 }
 0x133   : > { %v1824_v60 = vpop.eup %1823  ;;  %v1132_v61 = vadd.f32 %v1131_v56, %v1043_v57  ;;  %v956_v63 = vadd.f32 %v955_v59, %v867_v62 }
 0x134   : > { %1219 = vst.msk [vmem:[%s2092_s10 + $0x78] sm:$0xff] %vm1203_vm0, %v1824_v60 }
 0x135   : > { %1825 = vtanh.f32 %v1132_v61 }
 0x138   : > { %v1044_v1 = vpop.f32.mrf.mxu2  ;;  %v869_v4 = vpop.f32.mrf.mxu0 }
 0x139   : > { %v1133_v2 = vpop.f32.mrf.mxu3  ;;  %v1045_v3 = vadd.f32 %v1044_v1, %v956_v63  ;;  %v958_v5 = vpop.f32.mrf.mxu1  ;;  %v870_v6 = vadd.f32 %v2068_v0, %v869_v4 }
 0x13b   : > { %v1826_v7 = vpop.eup %1825  ;;  %v1134_v8 = vadd.f32 %v1133_v2, %v1045_v3  ;;  %v959_v9 = vadd.f32 %v958_v5, %v870_v6 }
 0x13c   : > { %1220 = vst.msk [vmem:[%s2092_s10 + $0x80] sm:$0xff] %vm1203_vm0, %v1826_v7 }
 0x13d   : > { %1827 = vtanh.f32 %v1134_v8 }
 0x140   : > { %v1047_v10 = vpop.f32.mrf.mxu2  ;;  %v871_v13 = vpop.f32.mrf.mxu0 }
 0x141   : > { %v1136_v11 = vpop.f32.mrf.mxu3  ;;  %v1048_v12 = vadd.f32 %v1047_v10, %v959_v9  ;;  %v960_v14 = vpop.f32.mrf.mxu1  ;;  %v872_v17 = vadd.f32 %v2068_v0, %v871_v13 }
 0x143   : > { %v1828_v15 = vpop.eup %1827  ;;  %v1137_v16 = vadd.f32 %v1136_v11, %v1048_v12  ;;  %v961_v18 = vadd.f32 %v960_v14, %v872_v17 }
 0x144   : > { %1221 = vst.msk [vmem:[%s2092_s10 + $0x88] sm:$0xff] %vm1203_vm0, %v1828_v15 }
 0x145   : > { %1829 = vtanh.f32 %v1137_v16 }
 0x148   : > { %v1049_v19 = vpop.f32.mrf.mxu2  ;;  %v874_v22 = vpop.f32.mrf.mxu0 }
 0x149   : > { %v1138_v20 = vpop.f32.mrf.mxu3  ;;  %v1050_v21 = vadd.f32 %v1049_v19, %v961_v18  ;;  %v963_v23 = vpop.f32.mrf.mxu1  ;;  %v875_v24 = vadd.f32 %v2068_v0, %v874_v22 }
 0x14b   : > { %v1830_v25 = vpop.eup %1829  ;;  %v1139_v26 = vadd.f32 %v1138_v20, %v1050_v21  ;;  %v964_v27 = vadd.f32 %v963_v23, %v875_v24 }
 0x14c   : > { %1222 = vst.msk [vmem:[%s2092_s10 + $0x90] sm:$0xff] %vm1203_vm0, %v1830_v25 }
 0x14d   : > { %1831 = vtanh.f32 %v1139_v26 }
 0x150   : > { %v1052_v28 = vpop.f32.mrf.mxu2  ;;  %v876_v31 = vpop.f32.mrf.mxu0 }
 0x151   : > { %v1141_v29 = vpop.f32.mrf.mxu3  ;;  %v1053_v30 = vadd.f32 %v1052_v28, %v964_v27  ;;  %v965_v32 = vpop.f32.mrf.mxu1  ;;  %v877_v35 = vadd.f32 %v2068_v0, %v876_v31 }
 0x153   : > { %v1832_v33 = vpop.eup %1831  ;;  %v1142_v34 = vadd.f32 %v1141_v29, %v1053_v30  ;;  %v966_v36 = vadd.f32 %v965_v32, %v877_v35 }
 0x154   : > { %1223 = vst.msk [vmem:[%s2092_s10 + $0x98] sm:$0xff] %vm1203_vm0, %v1832_v33 }
 0x155   : > { %1833 = vtanh.f32 %v1142_v34 }
 0x158   : > { %v1054_v37 = vpop.f32.mrf.mxu2  ;;  %v879_v40 = vpop.f32.mrf.mxu0 }
 0x159   : > { %v1143_v38 = vpop.f32.mrf.mxu3  ;;  %v1055_v39 = vadd.f32 %v1054_v37, %v966_v36  ;;  %v968_v41 = vpop.f32.mrf.mxu1  ;;  %v880_v42 = vadd.f32 %v2068_v0, %v879_v40 }
 0x15b   : > { %v1834_v43 = vpop.eup %1833  ;;  %v1144_v44 = vadd.f32 %v1143_v38, %v1055_v39  ;;  %v969_v45 = vadd.f32 %v968_v41, %v880_v42 }
 0x15c   : > { %1224 = vst.msk [vmem:[%s2092_s10 + $0xa0] sm:$0xff] %vm1203_vm0, %v1834_v43 }
 0x15d   : > { %1835 = vtanh.f32 %v1144_v44 }
 0x160   : > { %v1057_v46 = vpop.f32.mrf.mxu2  ;;  %v881_v49 = vpop.f32.mrf.mxu0 }
 0x161   : > { %v1146_v47 = vpop.f32.mrf.mxu3  ;;  %v1058_v48 = vadd.f32 %v1057_v46, %v969_v45  ;;  %v970_v50 = vpop.f32.mrf.mxu1  ;;  %v882_v53 = vadd.f32 %v2068_v0, %v881_v49 }
 0x163   : > { %v1836_v51 = vpop.eup %1835  ;;  %v1147_v52 = vadd.f32 %v1146_v47, %v1058_v48  ;;  %v971_v54 = vadd.f32 %v970_v50, %v882_v53 }
 0x164   : > { %1225 = vst.msk [vmem:[%s2092_s10 + $0xa8] sm:$0xff] %vm1203_vm0, %v1836_v51 }
 0x165   : > { %1837 = vtanh.f32 %v1147_v52 }
 0x168   : > { %v1059_v55 = vpop.f32.mrf.mxu2  ;;  %v884_v58 = vpop.f32.mrf.mxu0 }
 0x169   : > { %v1148_v56 = vpop.f32.mrf.mxu3  ;;  %v1060_v57 = vadd.f32 %v1059_v55, %v971_v54  ;;  %v973_v59 = vpop.f32.mrf.mxu1  ;;  %v885_v60 = vadd.f32 %v2068_v0, %v884_v58 }
 0x16b   : > { %v1838_v61 = vpop.eup %1837  ;;  %v1149_v62 = vadd.f32 %v1148_v56, %v1060_v57  ;;  %v974_v63 = vadd.f32 %v973_v59, %v885_v60 }
 0x16c   : > { %1226 = vst.msk [vmem:[%s2092_s10 + $0xb0] sm:$0xff] %vm1203_vm0, %v1838_v61 }
 0x16d   : > { %1839 = vtanh.f32 %v1149_v62 }
 0x170   : > { %v1062_v1 = vpop.f32.mrf.mxu2  ;;  %v886_v4 = vpop.f32.mrf.mxu0 }
 0x171   : > { %v1151_v2 = vpop.f32.mrf.mxu3  ;;  %v1063_v3 = vadd.f32 %v1062_v1, %v974_v63  ;;  %v975_v5 = vpop.f32.mrf.mxu1  ;;  %v887_v8 = vadd.f32 %v2068_v0, %v886_v4 }
 0x173   : > { %v1840_v6 = vpop.eup %1839  ;;  %v1152_v7 = vadd.f32 %v1151_v2, %v1063_v3  ;;  %v976_v9 = vadd.f32 %v975_v5, %v887_v8 }
 0x174   : > { %1227 = vst.msk [vmem:[%s2092_s10 + $0xb8] sm:$0xff] %vm1203_vm0, %v1840_v6 }
 0x175   : > { %1841 = vtanh.f32 %v1152_v7 }
 0x178   : > { %v1064_v10 = vpop.f32.mrf.mxu2  ;;  %v889_v13 = vpop.f32.mrf.mxu0 }
 0x179   : > { %v1153_v11 = vpop.f32.mrf.mxu3  ;;  %v1065_v12 = vadd.f32 %v1064_v10, %v976_v9  ;;  %v978_v14 = vpop.f32.mrf.mxu1  ;;  %v890_v15 = vadd.f32 %v2068_v0, %v889_v13 }
 0x17b   : > { %v1842_v16 = vpop.eup %1841  ;;  %v1154_v17 = vadd.f32 %v1153_v11, %v1065_v12  ;;  %v979_v18 = vadd.f32 %v978_v14, %v890_v15 }
 0x17c   : > { %1228 = vst.msk [vmem:[%s2092_s10 + $0xc0] sm:$0xff] %vm1203_vm0, %v1842_v16 }
 0x17d   : > { %1843 = vtanh.f32 %v1154_v17 }
 0x180   : > { %v1067_v19 = vpop.f32.mrf.mxu2  ;;  %v891_v22 = vpop.f32.mrf.mxu0 }
 0x181   : > { %v1156_v20 = vpop.f32.mrf.mxu3  ;;  %v1068_v21 = vadd.f32 %v1067_v19, %v979_v18  ;;  %v980_v23 = vpop.f32.mrf.mxu1  ;;  %v892_v26 = vadd.f32 %v2068_v0, %v891_v22 }
 0x183   : > { %v1844_v24 = vpop.eup %1843  ;;  %v1157_v25 = vadd.f32 %v1156_v20, %v1068_v21  ;;  %v981_v27 = vadd.f32 %v980_v23, %v892_v26 }
 0x184   : > { %1229 = vst.msk [vmem:[%s2092_s10 + $0xc8] sm:$0xff] %vm1203_vm0, %v1844_v24 }
 0x185   : > { %1845 = vtanh.f32 %v1157_v25 }
 0x188   : > { %v1069_v28 = vpop.f32.mrf.mxu2  ;;  %v894_v31 = vpop.f32.mrf.mxu0 }
 0x189   : > { %v1158_v29 = vpop.f32.mrf.mxu3  ;;  %v1070_v30 = vadd.f32 %v1069_v28, %v981_v27  ;;  %v983_v32 = vpop.f32.mrf.mxu1  ;;  %v895_v33 = vadd.f32 %v2068_v0, %v894_v31 }
 0x18b   : > { %v1846_v34 = vpop.eup %1845  ;;  %v1159_v35 = vadd.f32 %v1158_v29, %v1070_v30  ;;  %v984_v36 = vadd.f32 %v983_v32, %v895_v33 }
 0x18c   : > { %1230 = vst.msk [vmem:[%s2092_s10 + $0xd0] sm:$0xff] %vm1203_vm0, %v1846_v34 }
 0x18d   : > { %1847 = vtanh.f32 %v1159_v35 }
 0x190   : > { %v1072_v37 = vpop.f32.mrf.mxu2  ;;  %v896_v40 = vpop.f32.mrf.mxu0 }
 0x191   : > { %v1161_v38 = vpop.f32.mrf.mxu3  ;;  %v1073_v39 = vadd.f32 %v1072_v37, %v984_v36  ;;  %v985_v41 = vpop.f32.mrf.mxu1  ;;  %v897_v44 = vadd.f32 %v2068_v0, %v896_v40 }
 0x193   : > { %v1848_v42 = vpop.eup %1847  ;;  %v1162_v43 = vadd.f32 %v1161_v38, %v1073_v39  ;;  %v986_v45 = vadd.f32 %v985_v41, %v897_v44 }
 0x194   : > { %1231 = vst.msk [vmem:[%s2092_s10 + $0xd8] sm:$0xff] %vm1203_vm0, %v1848_v42 }
 0x195   : > { %1849 = vtanh.f32 %v1162_v43 }
 0x198   : > { %v1074_v46 = vpop.f32.mrf.mxu2  ;;  %v899_v49 = vpop.f32.mrf.mxu0 }
 0x199   : > { %v1163_v47 = vpop.f32.mrf.mxu3  ;;  %v1075_v48 = vadd.f32 %v1074_v46, %v986_v45  ;;  %v900_v50 = vadd.f32 %v2068_v0, %v899_v49  ;;  %v988_v53 = vpop.f32.mrf.mxu1 }
 0x19b   : > { %v1850_v51 = vpop.eup %1849  ;;  %v1164_v52 = vadd.f32 %v1163_v47, %v1075_v48  ;;  %v989_v54 = vadd.f32 %v988_v53, %v900_v50 }
 0x19c   : > { %1232 = vst.msk [vmem:[%s2092_s10 + $0xe0] sm:$0xff] %vm1203_vm0, %v1850_v51 }
 0x19d   : > { %1851 = vtanh.f32 %v1164_v52 }
 0x1a0   : > { %v1077_v55 = vpop.f32.mrf.mxu2  ;;  %v901_v58 = vpop.f32.mrf.mxu0 }
 0x1a1   : > { %v1166_v56 = vpop.f32.mrf.mxu3  ;;  %v1078_v57 = vadd.f32 %v1077_v55, %v989_v54  ;;  %v902_v61 = vadd.f32 %v2068_v0, %v901_v58  ;;  %v990_v62 = vpop.f32.mrf.mxu1 }
 0x1a3   : > { %v1852_v59 = vpop.eup %1851  ;;  %v1167_v60 = vadd.f32 %v1166_v56, %v1078_v57  ;;  %v991_v63 = vadd.f32 %v990_v62, %v902_v61 }
 0x1a4   : > { %1233 = vst.msk [vmem:[%s2092_s10 + $0xe8] sm:$0xff] %vm1203_vm0, %v1852_v59 }
 0x1a5   : > { %1853 = vtanh.f32 %v1167_v60 }
 0x1a8   : > { %v1079_v1 = vpop.f32.mrf.mxu2 }
 0x1a9   : > { %v1080_v2 = vadd.f32 %v1079_v1, %v991_v63  ;;  %v1168_v3 = vpop.f32.mrf.mxu3 }
 0x1ab   : > { %v1854_v4 = vpop.eup %1853  ;;  %v1169_v5 = vadd.f32 %v1168_v3, %v1080_v2 }
 0x1ac   : > { %1234 = vst.msk [vmem:[%s2092_s10 + $0xf0] sm:$0xff] %vm1203_vm0, %v1854_v4 }
 0x1ad   : > { %1855 = vtanh.f32 %v1169_v5 }
 0x1b3   : > { %v1856_v6 = vpop.eup %1855 }
 0x1b4   : > { %1235 = vst.msk [vmem:[%s2092_s10 + $0xf8] sm:$0xff] %vm1203_vm0, %v1856_v6 }
 0x1b5 PF: > { %s13_s12 = sadd.s32 1, %s1863_s12  }
 0x1b6   : > { %p10_p4 = scmp.ge.s32.totalorder %s13_s12, 4  }
 0x1b8   :  { %12 = sbr.rel (!%p10_p4) target bundleno = 1 (0x1), region = 62 }

</bundles_post_ra>
